<compile_context>
chip_gen: v6e
topology: v6e:2x2x1
jax: 0.10.0
libtpu: 0.0.40
codegen_flags: <defaults>
</compile_context>

<pallas_src>
import functools
import math

import jax
import jax.numpy as jnp
from jax.experimental import pallas as pl
from jax.experimental.pallas import tpu as pltpu

VMEM_SPEC = pl.BlockSpec(memory_space=pltpu.MemorySpace.VMEM)
TYPES = ("cpu", "mem", "net", "fs", "mub")
VIEWS = ("internal", "invoke", "resource", "latent")
LOG_2PI = math.log(2.0 * math.pi)


# ----------------------------------------------------------------------------------
# Kernel 1: fused 5-type TCN  (one block-structured matmul + ReLU)
# ----------------------------------------------------------------------------------

def _tcn_kernel(x_ref, w_ref, b_ref, o_ref):
    # TODO(synk): TCN source unavailable; implemented as a causal Conv1d evaluated at the
    # last timestep (== linear over the flattened last-K window) + ReLU.  The 5 types are
    # block-structured along the contraction axis so a single dot serves all of them.
    y = jnp.dot(x_ref[...], w_ref[...], preferred_element_type=jnp.float32) + b_ref[...]
    o_ref[...] = jnp.maximum(y, 0.0)


def tcn_fused(x_all, w_all, b_rows):
    n_rows = x_all.shape[0]
    conv_out = w_all.shape[-1]
    return pl.pallas_call(
        _tcn_kernel,
        out_shape=jax.ShapeDtypeStruct((n_rows, conv_out), jnp.float32),
        in_specs=[VMEM_SPEC] * 3,
        out_specs=VMEM_SPEC,
    )(x_all, w_all, b_rows)


# ----------------------------------------------------------------------------------
# Kernel 2: fused 4-view GatedGraphConv (grid over views, both TCs busy on v7x)
# ----------------------------------------------------------------------------------

def _ggnn_view_kernel(d_ref, a_ref, w_ref, wg_ref, bg_ref, o_ref, *, num_layers):
    # One graph view: all GatedGraphConv layers (mean aggregation + GRUCell) unrolled.
    # TODO(synk): switch the unrolled Python loop to lax.fori_loop if ggnn_layers/H grow.
    h = d_ref.shape[-1]
    x = d_ref[...]                                            # (Np, H)  f32
    a = a_ref[0]                                              # (Np, Np) raw edge counts
    # adjacency row-normalization folded in-kernel (mean aggregation)
    deg = jnp.sum(a, axis=1, keepdims=True)
    inv_deg = 1.0 / jnp.maximum(deg, 1.0)
    a_bf = a.astype(jnp.bfloat16)
    wg = wg_ref[0]                                            # (2H, 4H) bf16
    bg = bg_ref[0]                                            # (1, 4H)  f32
    for layer in range(num_layers):
        x_bf = x.astype(jnp.bfloat16)
        msg = jnp.dot(x_bf, w_ref[0, layer], preferred_element_type=jnp.float32)
        m = jnp.dot(a_bf, msg.astype(jnp.bfloat16), preferred_element_type=jnp.float32)
        m = m * inv_deg
        # fused GRU gates: [m | x] @ [[Wir,Wiz,Win, 0 ],[Whr,Whz, 0 ,Whn]]  -> [r|z|n_m|n_x]
        mx = jnp.concatenate([m.astype(jnp.bfloat16), x_bf], axis=1)   # (Np, 2H)
        g = jnp.dot(mx, wg, preferred_element_type=jnp.float32) + bg   # (Np, 4H)
        r = jax.nn.sigmoid(g[:, :h])
        zg = jax.nn.sigmoid(g[:, h:2 * h])
        n = jnp.tanh(g[:, 2 * h:3 * h] + r * g[:, 3 * h:4 * h])
        x = (1.0 - zg) * n + zg * x
    o_ref[0] = x


def ggnn_fused(d_pad, a_stack, w_stack, wg_stack, bg_stack):
    # TODO(synk): for large node counts the dense (Np, Np) adjacency should be tiled /
    # kept in HBM (memory_space=pl.ANY) -- v7x only has 64 MiB VMEM.  Fine at Np=24.
    n_views, n_pad, _ = a_stack.shape
    h = d_pad.shape[1]
    n_layers = w_stack.shape[1]
    return pl.pallas_call(
        functools.partial(_ggnn_view_kernel, num_layers=n_layers),
        out_shape=jax.ShapeDtypeStruct((n_views, n_pad, h), jnp.float32),
        grid=(n_views,),
        in_specs=[
            pl.BlockSpec((n_pad, h), lambda i: (0, 0)),
            pl.BlockSpec((1, n_pad, n_pad), lambda i: (i, 0, 0)),
            pl.BlockSpec((1, n_layers, h, h), lambda i: (i, 0, 0, 0)),
            pl.BlockSpec((1, 2 * h, 4 * h), lambda i: (i, 0, 0)),
            pl.BlockSpec((1, 1, 4 * h), lambda i: (i, 0, 0)),
        ],
        out_specs=pl.BlockSpec((1, n_pad, h), lambda i: (i, 0, 0)),
        compiler_params=pltpu.CompilerParams(dimension_semantics=("parallel",)),
    )(d_pad, a_stack, w_stack, wg_stack, bg_stack)


# ----------------------------------------------------------------------------------
# Kernel 3: attention + encoder/prior heads + reparam + decoders + KL / rec losses
# ----------------------------------------------------------------------------------

def _head_dec_kernel(h_ref, i_ref, u_ref, eps_ref, rep_ref, nmask_ref,
                     sel_ref, x_ref, cmask_ref,
                     wa_ref, ba_ref, wo_ref, bo_ref,
                     we_ref, be_ref, wp_ref, bp_ref,
                     wd_ref, bd_ref,
                     kl_ref, rec_ref,
                     *, n_types, z_size, cl, inv_c, inv_n_nodes, inv_n_dec):
    # TODO(synk): attention_net / VAE_encoder / prior_network / VAE_decoder sources
    # unavailable; internals inferred (softmax attention over views, tanh projection,
    # (mu, softplus-scale) heads, decoder output broadcast over time).
    hv = h_ref[...]                                           # (V, Np, H) f32

    # --- view attention: scores on the VPU (no MXU for a 1-lane output) ---
    s = jnp.sum(hv * wa_ref[...], axis=-1, keepdims=True) + ba_ref[...]   # (V, Np, 1)
    m = jnp.max(s, axis=0)
    e = jnp.exp(s - m)
    w = e / jnp.sum(e, axis=0)                                # exact division (loss path)
    ctx = jnp.sum(w * hv, axis=0)                             # (Np, H)
    att = jnp.tanh(jnp.dot(ctx.astype(jnp.bfloat16), wo_ref[...],
                           preferred_element_type=jnp.float32) + bo_ref[...])

    # --- fused encoder (mu | var) head ---
    q = jnp.dot(att.astype(jnp.bfloat16), we_ref[...],
                preferred_element_type=jnp.float32) + be_ref[...]         # (Np, 2Z)
    z_mu = q[:, :z_size]
    q_scale = jax.nn.softplus(q[:, z_size:]) + 1e-7

    # --- fused prior (mu | var) head + repeat-to-nodes via one-hot matmul ---
    i_flat = i_ref[...]
    pz = jnp.dot(i_flat.astype(jnp.bfloat16), wp_ref[...],
                 preferred_element_type=jnp.float32) + bp_ref[...]        # (B, 2Z)
    p_mu_g = pz[:, :z_size]
    p_scale_g = jax.nn.softplus(pz[:, z_size:]) + 1e-7
    graph_feat = jnp.concatenate([p_mu_g, p_scale_g, i_flat], axis=1)     # (B, 2Z + Ilen)
    rep = jnp.dot(rep_ref[...], graph_feat, preferred_element_type=jnp.float32)
    p_mu = rep[:, :z_size]
    p_scale = rep[:, z_size:2 * z_size]
    i_rep = rep[:, 2 * z_size:]

    # --- KL(q || p): sum over z, mean over real nodes (padded rows masked) ---
    ratio = q_scale / p_scale
    var_ratio = ratio * ratio
    t1 = (z_mu - p_mu) / p_scale
    kl = 0.5 * (var_ratio + t1 * t1 - 1.0 - jnp.log(var_ratio))
    kl_ref[...] = jnp.sum(kl * nmask_ref[...], keepdims=True) * inv_n_nodes

    # --- reparameterize + decoder input ---
    z = z_mu + q_scale * eps_ref[...]
    z_cat = jnp.concatenate([z * u_ref[...], i_rep], axis=1)              # (Np, dec_in)

    # --- per-type decoders + Gaussian log-prob (gather by one-hot matmul) ---
    rec_acc = jnp.zeros((1, 1), jnp.float32)
    for t in range(n_types):
        z_t = jnp.dot(sel_ref[t], z_cat, preferred_element_type=jnp.float32)   # (nt, dec_in)
        d = jnp.dot(z_t.astype(jnp.bfloat16), wd_ref[t],
                    preferred_element_type=jnp.float32) + bd_ref[t]            # (nt, 2*CL)
        mu = d[:, :cl]
        scale = jax.nn.softplus(d[:, cl:]) + 1e-6
        diff = (x_ref[t] - mu) / scale
        logp = (-0.5 * diff * diff - jnp.log(scale) - 0.5 * LOG_2PI) * cmask_ref[t]
        rec_acc = rec_acc + inv_c[t] * jnp.sum(logp, keepdims=True)
    rec_ref[...] = rec_acc * inv_n_dec


def head_dec_loss_fused(h_views, i_flat, u_pad, eps, rep_mat, node_mask, sel, x_flat,
                        params, inv_c, *, n_nodes_real, z_size, cl):
    n_types = x_flat.shape[0]
    n_dec = x_flat.shape[0] * x_flat.shape[1]
    kernel = functools.partial(
        _head_dec_kernel, n_types=n_types, z_size=z_size, cl=cl, inv_c=tuple(inv_c),
        inv_n_nodes=1.0 / n_nodes_real, inv_n_dec=1.0 / n_dec)
    kl, rec = pl.pallas_call(
        kernel,
        out_shape=(jax.ShapeDtypeStruct((1, 1), jnp.float32),
                   jax.ShapeDtypeStruct((1, 1), jnp.float32)),
        in_specs=[VMEM_SPEC] * 19,
        out_specs=(VMEM_SPEC, VMEM_SPEC),
    )(h_views, i_flat, u_pad, eps, rep_mat, node_mask, sel, x_flat, params["dec_cmask"],
      params["attn_wa"], params["attn_ba"], params["attn_wo"], params["attn_bo"],
      params["enc_w"], params["enc_b"], params["prior_w"], params["prior_b"],
      params["dec_w"], params["dec_b"])
    return kl[0, 0], rec[0, 0]


# ----------------------------------------------------------------------------------
# JAX glue (graph bookkeeping)
# ----------------------------------------------------------------------------------

def structure_learning(d, edge_index, edge_attr, k, n_dense):
    # TODO(synk): structure_learning source unavailable; implemented as keeping the top
    # ceil(k*E) candidate edges by node-embedding similarity.  Returns the RAW scatter-
    # added adjacency; row-normalization is fused into the GGNN kernel.
    del edge_attr
    src, dst = edge_index[0], edge_index[1]
    scores = jnp.sum(d[src] * d[dst], axis=-1)
    e = src.shape[0]
    keep = max(1, int(math.ceil(k * e)))
    thresh = jnp.sort(scores)[e - keep]
    mask = (scores >= thresh).astype(jnp.float32)
    return jnp.zeros((n_dense, n_dense), jnp.float32).at[dst, src].add(mask)


def feature_concat(batch):
    out = dict(batch)
    for t in TYPES:
        idx = batch[f"{t}_node_index"]
        graph_of = batch["batch"][idx]
        trace = batch["trace_series"][graph_of]                     # (n, P, Td, L)
        trace = trace[jnp.arange(trace.shape[0]), batch[f"{t}_pod_idx"]]
        intensity = batch["sys_qps"][graph_of]                      # (n, Id, L)
        out[f"{t}_x"] = jnp.concatenate((batch[f"{t}_x"], trace, intensity), axis=1)
    return out


# ----------------------------------------------------------------------------------
# Full forward (KL_loss, rec_loss)
# ----------------------------------------------------------------------------------

def fd_model_forward(params, batch_raw, cfg, sample_key):
    b, num_nodes = cfg["batch_num"], cfg["num_nodes"]
    L, K = cfg["L"], cfg["kernel_size"]
    extra = cfg["I_dim"] + cfg["trace_dim"]
    type_dims = [cfg[f"{t}_dim"] + extra for t in TYPES]
    c_max = max(type_dims)
    cl = c_max * L
    w_max = max(c * K for c in type_dims)
    h, emb, z = cfg["ggnn_out"], cfg["emb"], cfg["z_size"]
    conv_out = cfg["conv_out"]
    n_total = b * num_nodes
    n_pad = ((n_total + 7) // 8) * 8                                # sublane-align nodes

    i_flat = batch_raw["sys_qps"].reshape(b, -1).astype(jnp.float32)
    batch = feature_concat(batch_raw)

    # ---- kernel 1: fused 5-type TCN as one block-structured matmul ----
    rows, brows = [], []
    for t_idx, (t, c_t) in enumerate(zip(TYPES, type_dims)):
        x = batch[f"{t}_x"]                                         # (n_t, C_t, L)
        win = x[:, :, L - K:].reshape(x.shape[0], c_t * K)
        left = t_idx * w_max
        right = len(TYPES) * w_max - left - c_t * K
        rows.append(jnp.pad(win, ((0, 0), (left, right))))
        brows.append(jnp.broadcast_to(params["tcn_b"][t_idx], (x.shape[0], conv_out)))
    x_all = jnp.concatenate(rows, axis=0).astype(jnp.bfloat16)      # (n_total, 5*w_max)
    b_rows = jnp.concatenate(brows, axis=0)
    p_all = tcn_fused(x_all, params["tcn_w"], b_rows)               # (n_total, conv_out)

    node_index = jnp.concatenate([batch[f"{t}_node_index"] for t in TYPES], axis=0)
    p_sorted = p_all[jnp.argsort(node_index)]
    u = jnp.tile(params["embed"], (b, 1))                           # (n_total, emb)
    d = jnp.concatenate((p_sorted, u), axis=1)
    d_pad = jnp.pad(d, ((0, n_pad - n_total), (0, h - d.shape[1]))) # pad to GGNN width/rows

    # ---- structure learning (glue) + kernel 2: fused 4-view GGNN ----
    a_stack = jnp.stack(
        [structure_learning(d, batch[f"{v}_edge_index"],
                            batch.get(f"{v}_edge_attr"), cfg["topk"], n_pad)
         for v in VIEWS], 0)
    h_views = ggnn_fused(d_pad, a_stack, params["ggnn_w"], params["ggnn_wg"],
                         params["ggnn_bg"])                         # (4, n_pad, h)

    # ---- glue inputs for the fused head/decoder/loss kernel ----
    eps = jax.random.normal(sample_key, (n_pad, z), jnp.float32)
    u_pad = jnp.pad(u, ((0, n_pad - n_total), (0, 0)))
    node_mask = (jnp.arange(n_pad) < n_total).astype(jnp.float32).reshape(n_pad, 1)
    graph_of = jnp.where(jnp.arange(n_pad) < n_total, jnp.arange(n_pad) // num_nodes, 0)
    rep_mat = jax.nn.one_hot(graph_of, b, dtype=jnp.float32)        # (n_pad, b)
    sel = jnp.stack([jax.nn.one_hot(batch[f"{t}_node_index"], n_pad, dtype=jnp.float32)
                     for t in TYPES], 0)                            # (5, n_t, n_pad)
    xf = []
    for t, c_t in zip(TYPES, type_dims):
        xr = batch[f"{t}_x"].reshape(batch[f"{t}_x"].shape[0], c_t * L)
        xf.append(jnp.pad(xr, ((0, 0), (0, cl - c_t * L))))
    x_flat = jnp.stack(xf, 0)                                       # (5, n_t, C_max*L)

    inv_c = [1.0 / c for c in type_dims]

    # ---- kernel 3: attention + heads + reparam + decoders + KL / rec ----
    kl_loss, rec_loss = head_dec_loss_fused(
        h_views, i_flat, u_pad, eps, rep_mat, node_mask, sel, x_flat,
        params, inv_c, n_nodes_real=n_total, z_size=z, cl=cl)
    return kl_loss, rec_loss


# ----------------------------------------------------------------------------------
# Deterministic parameter / input construction
# ----------------------------------------------------------------------------------

def init_params(key, cfg):
    ks = iter(jax.random.split(key, 64))
    extra = cfg["I_dim"] + cfg["trace_dim"]
    K, L = cfg["kernel_size"], cfg["L"]
    conv_out, emb, z = cfg["conv_out"], cfg["emb"], cfg["z_size"]
    h, h_size = cfg["ggnn_out"], cfg["h_size"]
    type_dims = [cfg[f"{t}_dim"] + extra for t in TYPES]
    w_max = max(c * K for c in type_dims)
    c_max = max(type_dims)
    cl = c_max * L
    dec_in = 3 * L + emb
    nv, nl = len(VIEWS), cfg["ggnn_layers"]

    p = {}
    p["embed"] = 0.1 * jax.random.normal(next(ks), (cfg["num_nodes"], emb), jnp.float32)

    # TCN: block-structured weight for all 5 types (inert rows hit zero-padded input).
    p["tcn_w"] = (0.1 * jax.random.normal(next(ks), (len(TYPES) * w_max, conv_out),
                                          jnp.float32)).astype(jnp.bfloat16)
    p["tcn_b"] = jnp.zeros((len(TYPES), conv_out), jnp.float32)

    # GGNN: per-view per-layer message weights + fused GRU gate weight [r|z|n_m|n_x].
    p["ggnn_w"] = (0.1 * jax.random.normal(next(ks), (nv, nl, h, h),
                                           jnp.float32)).astype(jnp.bfloat16)
    wg = 0.1 * jax.random.normal(next(ks), (nv, 2 * h, 4 * h), jnp.float32)
    wg = wg.at[:, h:, 2 * h:3 * h].set(0.0)     # n_m block does not read the hidden state
    wg = wg.at[:, :h, 3 * h:].set(0.0)          # n_x block does not read the message
    p["ggnn_wg"] = wg.astype(jnp.bfloat16)
    # combined biases: [b_ir+b_hr | b_iz+b_hz | b_in | b_hn]
    p["ggnn_bg"] = jnp.zeros((nv, 1, 4 * h), jnp.float32)

    # attention over views (score weight kept as a (1, H) row vector -> VPU score).
    p["attn_wa"] = 0.1 * jax.random.normal(next(ks), (1, h), jnp.float32)
    p["attn_ba"] = jnp.zeros((1, 1), jnp.float32)
    p["attn_wo"] = (0.1 * jax.random.normal(next(ks), (h, h_size),
                                            jnp.float32)).astype(jnp.bfloat16)
    p["attn_bo"] = jnp.zeros((1, h_size), jnp.float32)

    # fused encoder / prior (mu | var) heads.
    p["enc_w"] = (0.1 * jax.random.normal(next(ks), (h_size, 2 * z),
                                          jnp.float32)).astype(jnp.bfloat16)
    p["enc_b"] = jnp.zeros((1, 2 * z), jnp.float32)
    prior_in = cfg["I_dim"] * L
    p["prior_w"] = (0.1 * jax.random.normal(next(ks), (prior_in, 2 * z),
                                            jnp.float32)).astype(jnp.bfloat16)
    p["prior_b"] = jnp.zeros((1, 2 * z), jnp.float32)

    # decoders: per-type (mu | var) heads, pre-expanded over L -> lane-dense (dec_in, 2*C_max*L).
    # TODO(synk): if L or dec_in grow, expand via a one-hot matmul instead of repeating W.
    wd, cm = [], []
    for c_t in type_dims:
        wm = 0.1 * jax.random.normal(next(ks), (dec_in, c_t), jnp.float32)
        wv = 0.1 * jax.random.normal(next(ks), (dec_in, c_t), jnp.float32)
        pad = (c_max - c_t) * L
        wm = jnp.pad(jnp.repeat(wm, L, axis=1), ((0, 0), (0, pad)))
        wv = jnp.pad(jnp.repeat(wv, L, axis=1), ((0, 0), (0, pad)))
        wd.append(jnp.concatenate([wm, wv], axis=1))
        cm.append(jnp.pad(jnp.ones((1, c_t * L), jnp.float32), ((0, 0), (0, pad))))
    p["dec_w"] = jnp.stack(wd, 0).astype(jnp.bfloat16)
    p["dec_b"] = jnp.zeros((len(TYPES), 1, 2 * cl), jnp.float32)
    p["dec_cmask"] = jnp.stack(cm, 0)
    return p


def make_batch(key, cfg):
    ks = iter(jax.random.split(key, 32))
    bnum, nnodes, length = cfg["batch_num"], cfg["num_nodes"], cfg["L"]
    dims = {t: cfg[f"{t}_dim"] for t in TYPES}
    batch = {
        "batch": jnp.repeat(jnp.arange(bnum, dtype=jnp.int32), nnodes),
        "sys_qps": jax.random.normal(next(ks), (bnum, cfg["I_dim"], length), jnp.float32),
        "trace_series": jax.random.normal(
            next(ks), (bnum, cfg["num_pods"], cfg["trace_dim"], length), jnp.float32),
    }
    n_total = bnum * nnodes
    # 2 nodes of each of the 5 types per graph (num_nodes = 10).
    for i, t in enumerate(TYPES):
        local = jnp.array([2 * i, 2 * i + 1], jnp.int32)
        idx = jnp.concatenate([local + g * nnodes for g in range(bnum)])
        batch[f"{t}_node_index"] = idx
        batch[f"{t}_x"] = jax.random.normal(next(ks), (idx.shape[0], dims[t], length),
                                            jnp.float32)
        batch[f"{t}_pod_idx"] = jax.random.randint(next(ks), (idx.shape[0],), 0,
                                                   cfg["num_pods"], jnp.int32)
    num_edges = 40
    for name in VIEWS:
        batch[f"{name}_edge_index"] = jax.random.randint(
            next(ks), (2, num_edges), 0, n_total, jnp.int32)
    batch["invoke_edge_attr"] = jax.random.normal(next(ks), (num_edges, 1), jnp.float32)
    return batch


if __name__ == "__main__":
    cfg = dict(batch_num=2, num_nodes=10, L=8, num_pods=3,
               conv_out=16, emb=32, z_size=32, ggnn_out=64, ggnn_layers=3,
               h_size=64, kernel_size=3, topk=0.7,
               cpu_dim=5, mem_dim=7, fs_dim=5, net_dim=4, mub_dim=5,
               I_dim=3, trace_dim=4)

    root = jax.random.PRNGKey(0)
    k_params, k_batch, k_sample = jax.random.split(root, 3)
    params = init_params(k_params, cfg)
    batch = make_batch(k_batch, cfg)

    fwd = jax.jit(lambda p_, b_, k_: fd_model_forward(p_, b_, cfg, k_))
    kl_loss, rec_loss = fwd(params, batch, k_sample)
    jax.block_until_ready((kl_loss, rec_loss))
    assert jnp.isfinite(kl_loss) and jnp.isfinite(rec_loss)
    print("KERNEL_OK")
</pallas_src>

<mosaic_0001>
module attributes {stable_mosaic.version = 11 : i64} {
  func.func private @main(%arg0: i32) attributes {dimension_semantics = [#tpu.dimension_semantics<core_parallel>], iteration_bounds = array<i64: 2>, tpu.core_type = #tpu.core_type<sc_scalar_subcore>, window_params = []} {
    return
  }
}

module attributes {stable_mosaic.version = 11 : i64} {
  func.func private @main(%arg0: i32) attributes {dimension_semantics = [#tpu.dimension_semantics<core_parallel>], iteration_bounds = array<i64: 2>, tpu.core_type = #tpu.core_type<sc_scalar_subcore>, window_params = []} {
    return
  }
}

module attributes {stable_mosaic.version = 11 : i64} {
  func.func @_tcn_kernel(%arg0: memref<20x210xbf16, #tpu.memory_space<vmem>>, %arg1: memref<210x16xbf16, #tpu.memory_space<vmem>>, %arg2: memref<20x16xf32, #tpu.memory_space<vmem>>, %arg3: memref<20x16xf32, #tpu.memory_space<vmem>>) attributes {dimension_semantics = [], scalar_prefetch = 0 : i64, scratch_operands = 0 : i64, tpu.core_type = #tpu.core_type<tc>} {
    %c0 = arith.constant 0 : index
    %c0_0 = arith.constant 0 : index
    %0 = vector.load %arg0[%c0, %c0_0] : memref<20x210xbf16, #tpu.memory_space<vmem>>, vector<20x210xbf16>
    %c0_1 = arith.constant 0 : index
    %c0_2 = arith.constant 0 : index
    %1 = vector.load %arg1[%c0_1, %c0_2] : memref<210x16xbf16, #tpu.memory_space<vmem>>, vector<210x16xbf16>
    %cst = arith.constant dense<0.000000e+00> : vector<20x16xf32>
    %2 = tpu.matmul %0, %1, %cst {dimension_numbers = #tpu.dot_dimension_numbers<[1], [0], [0], [1], [0, 0, 1, 1], [], []>} : vector<20x210xbf16>, vector<210x16xbf16>, vector<20x16xf32> -> vector<20x16xf32>
    %c0_3 = arith.constant 0 : index
    %c0_4 = arith.constant 0 : index
    %3 = vector.load %arg2[%c0_3, %c0_4] : memref<20x16xf32, #tpu.memory_space<vmem>>, vector<20x16xf32>
    %4 = arith.addf %2, %3 : vector<20x16xf32>
    %cst_5 = arith.constant 0.000000e+00 : f32
    %5 = vector.broadcast %cst_5 : f32 to vector<20x16xf32>
    %6 = arith.maximumf %4, %5 : vector<20x16xf32>
    %c0_6 = arith.constant 0 : index
    %c0_7 = arith.constant 0 : index
    %7 = vector.load %arg3[%c0_6, %c0_7] : memref<20x16xf32, #tpu.memory_space<vmem>>, vector<20x16xf32>
    tpu.vector_store %arg3[%c0_6, %c0_7], %6 {strides = array<i32>} : memref<20x16xf32, #tpu.memory_space<vmem>>, vector<20x16xf32>,
    return
  }
}

module attributes {stable_mosaic.version = 11 : i64} {
  func.func @_ggnn_view_kernel(%arg0: i32, %arg1: memref<24x64xf32, #tpu.memory_space<vmem>>, %arg2: memref<1x24x24xf32, #tpu.memory_space<vmem>>, %arg3: memref<1x3x64x64xbf16, #tpu.memory_space<vmem>>, %arg4: memref<1x128x256xbf16, #tpu.memory_space<vmem>>, %arg5: memref<1x1x256xf32, #tpu.memory_space<vmem>>, %arg6: memref<1x24x64xf32, #tpu.memory_space<vmem>>) attributes {dimension_semantics = [#tpu.dimension_semantics<parallel>], iteration_bounds = array<i64: 4>, scalar_prefetch = 0 : i64, scratch_operands = 0 : i64, tpu.core_type = #tpu.core_type<tc>, window_params = [{pipeline_mode = #tpu.pipeline_mode<synchronous>, transform_indices = @transform_0, window_bounds = array<i64: 24, 64>}, {transform_indices = @transform_1, window_bounds = array<i64: 1, 24, 24>}, {transform_indices = @transform_2, window_bounds = array<i64: 1, 3, 64, 64>}, {transform_indices = @transform_3, window_bounds = array<i64: 1, 128, 256>}, {transform_indices = @transform_4, window_bounds = array<i64: 1, 1, 256>}, {transform_indices = @transform_5, window_bounds = array<i64: 1, 24, 64>}]} {
    %c0 = arith.constant 0 : index
    %c0_0 = arith.constant 0 : index
    %0 = vector.load %arg1[%c0, %c0_0] : memref<24x64xf32, #tpu.memory_space<vmem>>, vector<24x64xf32>
    %c0_1 = arith.constant 0 : index
    %c0_2 = arith.constant 0 : index
    %c0_3 = arith.constant 0 : index
    %1 = vector.load %arg2[%c0_1, %c0_2, %c0_3] : memref<1x24x24xf32, #tpu.memory_space<vmem>>, vector<1x24x24xf32>
    %2 = vector.shape_cast %1 : vector<1x24x24xf32> to vector<24x24xf32>
    %cst = arith.constant dense<0.000000e+00> : vector<24xf32>
    %3 = vector.multi_reduction <add>, %2, %cst [1] : vector<24x24xf32> to vector<24xf32>
    %4 = vector.shape_cast %3 : vector<24xf32> to vector<24x1xf32>
    %cst_4 = arith.constant 1.000000e+00 : f32
    %5 = vector.broadcast %cst_4 : f32 to vector<24x1xf32>
    %6 = arith.maximumf %4, %5 : vector<24x1xf32>
    %cst_5 = arith.constant 1.000000e+00 : f32
    %7 = vector.broadcast %cst_5 : f32 to vector<24x1xf32>
    %8 = arith.divf %7, %6 : vector<24x1xf32>
    %9 = arith.truncf %2 : vector<24x24xf32> to vector<24x24xbf16>
    %c0_6 = arith.constant 0 : index
    %c0_7 = arith.constant 0 : index
    %c0_8 = arith.constant 0 : index
    %10 = vector.load %arg4[%c0_6, %c0_7, %c0_8] : memref<1x128x256xbf16, #tpu.memory_space<vmem>>, vector<1x128x256xbf16>
    %11 = vector.shape_cast %10 : vector<1x128x256xbf16> to vector<128x256xbf16>
    %c0_9 = arith.constant 0 : index
    %c0_10 = arith.constant 0 : index
    %c0_11 = arith.constant 0 : index
    %12 = vector.load %arg5[%c0_9, %c0_10, %c0_11] : memref<1x1x256xf32, #tpu.memory_space<vmem>>, vector<1x1x256xf32>
    %13 = vector.shape_cast %12 : vector<1x1x256xf32> to vector<1x256xf32>
    %14 = arith.truncf %0 : vector<24x64xf32> to vector<24x64xbf16>
    %c0_12 = arith.constant 0 : index
    %c0_13 = arith.constant 0 : index
    %c0_14 = arith.constant 0 : index
    %c0_15 = arith.constant 0 : index
    %15 = vector.load %arg3[%c0_12, %c0_13, %c0_14, %c0_15] : memref<1x3x64x64xbf16, #tpu.memory_space<vmem>>, vector<1x1x64x64xbf16>
    %16 = vector.shape_cast %15 : vector<1x1x64x64xbf16> to vector<64x64xbf16>
    %cst_16 = arith.constant dense<0.000000e+00> : vector<24x64xf32>
    %17 = tpu.matmul %14, %16, %cst_16 {dimension_numbers = #tpu.dot_dimension_numbers<[1], [0], [0], [1], [0, 0, 1, 1], [], []>} : vector<24x64xbf16>, vector<64x64xbf16>, vector<24x64xf32> -> vector<24x64xf32>
    %18 = arith.truncf %17 : vector<24x64xf32> to vector<24x64xbf16>
    %cst_17 = arith.constant dense<0.000000e+00> : vector<24x64xf32>
    %19 = tpu.matmul %9, %18, %cst_17 {dimension_numbers = #tpu.dot_dimension_numbers<[1], [0], [0], [1], [0, 0, 1, 1], [], []>} : vector<24x24xbf16>, vector<24x64xbf16>, vector<24x64xf32> -> vector<24x64xf32>
    %20 = vector.broadcast %8 : vector<24x1xf32> to vector<24x64xf32>
    %21 = arith.mulf %19, %20 : vector<24x64xf32>
    %22 = arith.truncf %21 : vector<24x64xf32> to vector<24x64xbf16>
    %23 = tpu.concatenate %22, %14 in 1 : vector<24x64xbf16>, vector<24x64xbf16> -> vector<24x128xbf16>
    %cst_18 = arith.constant dense<0.000000e+00> : vector<24x256xf32>
    %24 = tpu.matmul %23, %11, %cst_18 {dimension_numbers = #tpu.dot_dimension_numbers<[1], [0], [0], [1], [0, 0, 1, 1], [], []>} : vector<24x128xbf16>, vector<128x256xbf16>, vector<24x256xf32> -> vector<24x256xf32>
    %25 = vector.broadcast %13 : vector<1x256xf32> to vector<24x256xf32>
    %26 = arith.addf %24, %25 : vector<24x256xf32>
    %27 = vector.extract_strided_slice %26 {offsets = [0, 0], sizes = [24, 64], strides = [1, 1]} : vector<24x256xf32> to vector<24x64xf32>
    %28 = arith.negf %27 : vector<24x64xf32>
    %29 = math.exp %28 : vector<24x64xf32>
    %cst_19 = arith.constant 1.000000e+00 : f32
    %30 = vector.broadcast %cst_19 : f32 to vector<24x64xf32>
    %31 = arith.addf %30, %29 : vector<24x64xf32>
    %32 = arith.divf %30, %31 : vector<24x64xf32>
    %33 = vector.extract_strided_slice %26 {offsets = [0, 64], sizes = [24, 64], strides = [1, 1]} : vector<24x256xf32> to vector<24x64xf32>
    %34 = arith.negf %33 : vector<24x64xf32>
    %35 = math.exp %34 : vector<24x64xf32>
    %cst_20 = arith.constant 1.000000e+00 : f32
    %36 = vector.broadcast %cst_20 : f32 to vector<24x64xf32>
    %37 = arith.addf %36, %35 : vector<24x64xf32>
    %38 = arith.divf %36, %37 : vector<24x64xf32>
    %39 = vector.extract_strided_slice %26 {offsets = [0, 128], sizes = [24, 64], strides = [1, 1]} : vector<24x256xf32> to vector<24x64xf32>
    %40 = vector.extract_strided_slice %26 {offsets = [0, 192], sizes = [24, 64], strides = [1, 1]} : vector<24x256xf32> to vector<24x64xf32>
    %41 = arith.mulf %32, %40 : vector<24x64xf32>
    %42 = arith.addf %39, %41 : vector<24x64xf32>
    %43 = math.tanh %42 : vector<24x64xf32>
    %cst_21 = arith.constant 1.000000e+00 : f32
    %44 = vector.broadcast %cst_21 : f32 to vector<24x64xf32>
    %45 = arith.subf %44, %38 : vector<24x64xf32>
    %46 = arith.mulf %45, %43 : vector<24x64xf32>
    %47 = arith.mulf %38, %0 : vector<24x64xf32>
    %48 = arith.addf %46, %47 : vector<24x64xf32>
    %49 = arith.truncf %48 : vector<24x64xf32> to vector<24x64xbf16>
    %c0_22 = arith.constant 0 : index
    %c1 = arith.constant 1 : index
    %c0_23 = arith.constant 0 : index
    %c0_24 = arith.constant 0 : index
    %50 = vector.load %arg3[%c0_22, %c1, %c0_23, %c0_24] : memref<1x3x64x64xbf16, #tpu.memory_space<vmem>>, vector<1x1x64x64xbf16>
    %51 = vector.shape_cast %50 : vector<1x1x64x64xbf16> to vector<64x64xbf16>
    %cst_25 = arith.constant dense<0.000000e+00> : vector<24x64xf32>
    %52 = tpu.matmul %49, %51, %cst_25 {dimension_numbers = #tpu.dot_dimension_numbers<[1], [0], [0], [1], [0, 0, 1, 1], [], []>} : vector<24x64xbf16>, vector<64x64xbf16>, vector<24x64xf32> -> vector<24x64xf32>
    %53 = arith.truncf %52 : vector<24x64xf32> to vector<24x64xbf16>
    %cst_26 = arith.constant dense<0.000000e+00> : vector<24x64xf32>
    %54 = tpu.matmul %9, %53, %cst_26 {dimension_numbers = #tpu.dot_dimension_numbers<[1], [0], [0], [1], [0, 0, 1, 1], [], []>} : vector<24x24xbf16>, vector<24x64xbf16>, vector<24x64xf32> -> vector<24x64xf32>
    %55 = vector.broadcast %8 : vector<24x1xf32> to vector<24x64xf32>
    %56 = arith.mulf %54, %55 : vector<24x64xf32>
    %57 = arith.truncf %56 : vector<24x64xf32> to vector<24x64xbf16>
    %58 = tpu.concatenate %57, %49 in 1 : vector<24x64xbf16>, vector<24x64xbf16> -> vector<24x128xbf16>
    %cst_27 = arith.constant dense<0.000000e+00> : vector<24x256xf32>
    %59 = tpu.matmul %58, %11, %cst_27 {dimension_numbers = #tpu.dot_dimension_numbers<[1], [0], [0], [1], [0, 0, 1, 1], [], []>} : vector<24x128xbf16>, vector<128x256xbf16>, vector<24x256xf32> -> vector<24x256xf32>
    %60 = vector.broadcast %13 : vector<1x256xf32> to vector<24x256xf32>
    %61 = arith.addf %59, %60 : vector<24x256xf32>
    %62 = vector.extract_strided_slice %61 {offsets = [0, 0], sizes = [24, 64], strides = [1, 1]} : vector<24x256xf32> to vector<24x64xf32>
    %63 = arith.negf %62 : vector<24x64xf32>
    %64 = math.exp %63 : vector<24x64xf32>
    %cst_28 = arith.constant 1.000000e+00 : f32
    %65 = vector.broadcast %cst_28 : f32 to vector<24x64xf32>
    %66 = arith.addf %65, %64 : vector<24x64xf32>
    %67 = arith.divf %65, %66 : vector<24x64xf32>
    %68 = vector.extract_strided_slice %61 {offsets = [0, 64], sizes = [24, 64], strides = [1, 1]} : vector<24x256xf32> to vector<24x64xf32>
    %69 = arith.negf %68 : vector<24x64xf32>
    %70 = math.exp %69 : vector<24x64xf32>
    %cst_29 = arith.constant 1.000000e+00 : f32
    %71 = vector.broadcast %cst_29 : f32 to vector<24x64xf32>
    %72 = arith.addf %71, %70 : vector<24x64xf32>
    %73 = arith.divf %71, %72 : vector<24x64xf32>
    %74 = vector.extract_strided_slice %61 {offsets = [0, 128], sizes = [24, 64], strides = [1, 1]} : vector<24x256xf32> to vector<24x64xf32>
    %75 = vector.extract_strided_slice %61 {offsets = [0, 192], sizes = [24, 64], strides = [1, 1]} : vector<24x256xf32> to vector<24x64xf32>
    %76 = arith.mulf %67, %75 : vector<24x64xf32>
    %77 = arith.addf %74, %76 : vector<24x64xf32>
    %78 = math.tanh %77 : vector<24x64xf32>
    %cst_30 = arith.constant 1.000000e+00 : f32
    %79 = vector.broadcast %cst_30 : f32 to vector<24x64xf32>
    %80 = arith.subf %79, %73 : vector<24x64xf32>
    %81 = arith.mulf %80, %78 : vector<24x64xf32>
    %82 = arith.mulf %73, %48 : vector<24x64xf32>
    %83 = arith.addf %81, %82 : vector<24x64xf32>
    %84 = arith.truncf %83 : vector<24x64xf32> to vector<24x64xbf16>
    %c0_31 = arith.constant 0 : index
    %c2 = arith.constant 2 : index
    %c0_32 = arith.constant 0 : index
    %c0_33 = arith.constant 0 : index
    %85 = vector.load %arg3[%c0_31, %c2, %c0_32, %c0_33] : memref<1x3x64x64xbf16, #tpu.memory_space<vmem>>, vector<1x1x64x64xbf16>
    %86 = vector.shape_cast %85 : vector<1x1x64x64xbf16> to vector<64x64xbf16>
    %cst_34 = arith.constant dense<0.000000e+00> : vector<24x64xf32>
    %87 = tpu.matmul %84, %86, %cst_34 {dimension_numbers = #tpu.dot_dimension_numbers<[1], [0], [0], [1], [0, 0, 1, 1], [], []>} : vector<24x64xbf16>, vector<64x64xbf16>, vector<24x64xf32> -> vector<24x64xf32>
    %88 = arith.truncf %87 : vector<24x64xf32> to vector<24x64xbf16>
    %cst_35 = arith.constant dense<0.000000e+00> : vector<24x64xf32>
    %89 = tpu.matmul %9, %88, %cst_35 {dimension_numbers = #tpu.dot_dimension_numbers<[1], [0], [0], [1], [0, 0, 1, 1], [], []>} : vector<24x24xbf16>, vector<24x64xbf16>, vector<24x64xf32> -> vector<24x64xf32>
    %90 = vector.broadcast %8 : vector<24x1xf32> to vector<24x64xf32>
    %91 = arith.mulf %89, %90 : vector<24x64xf32>
    %92 = arith.truncf %91 : vector<24x64xf32> to vector<24x64xbf16>
    %93 = tpu.concatenate %92, %84 in 1 : vector<24x64xbf16>, vector<24x64xbf16> -> vector<24x128xbf16>
    %cst_36 = arith.constant dense<0.000000e+00> : vector<24x256xf32>
    %94 = tpu.matmul %93, %11, %cst_36 {dimension_numbers = #tpu.dot_dimension_numbers<[1], [0], [0], [1], [0, 0, 1, 1], [], []>} : vector<24x128xbf16>, vector<128x256xbf16>, vector<24x256xf32> -> vector<24x256xf32>
    %95 = vector.broadcast %13 : vector<1x256xf32> to vector<24x256xf32>
    %96 = arith.addf %94, %95 : vector<24x256xf32>
    %97 = vector.extract_strided_slice %96 {offsets = [0, 0], sizes = [24, 64], strides = [1, 1]} : vector<24x256xf32> to vector<24x64xf32>
    %98 = arith.negf %97 : vector<24x64xf32>
    %99 = math.exp %98 : vector<24x64xf32>
    %cst_37 = arith.constant 1.000000e+00 : f32
    %100 = vector.broadcast %cst_37 : f32 to vector<24x64xf32>
    %101 = arith.addf %100, %99 : vector<24x64xf32>
    %102 = arith.divf %100, %101 : vector<24x64xf32>
    %103 = vector.extract_strided_slice %96 {offsets = [0, 64], sizes = [24, 64], strides = [1, 1]} : vector<24x256xf32> to vector<24x64xf32>
    %104 = arith.negf %103 : vector<24x64xf32>
    %105 = math.exp %104 : vector<24x64xf32>
    %cst_38 = arith.constant 1.000000e+00 : f32
    %106 = vector.broadcast %cst_38 : f32 to vector<24x64xf32>
    %107 = arith.addf %106, %105 : vector<24x64xf32>
    %108 = arith.divf %106, %107 : vector<24x64xf32>
    %109 = vector.extract_strided_slice %96 {offsets = [0, 128], sizes = [24, 64], strides = [1, 1]} : vector<24x256xf32> to vector<24x64xf32>
    %110 = vector.extract_strided_slice %96 {offsets = [0, 192], sizes = [24, 64], strides = [1, 1]} : vector<24x256xf32> to vector<24x64xf32>
    %111 = arith.mulf %102, %110 : vector<24x64xf32>
    %112 = arith.addf %109, %111 : vector<24x64xf32>
    %113 = math.tanh %112 : vector<24x64xf32>
    %cst_39 = arith.constant 1.000000e+00 : f32
    %114 = vector.broadcast %cst_39 : f32 to vector<24x64xf32>
    %115 = arith.subf %114, %108 : vector<24x64xf32>
    %116 = arith.mulf %115, %113 : vector<24x64xf32>
    %117 = arith.mulf %108, %83 : vector<24x64xf32>
    %118 = arith.addf %116, %117 : vector<24x64xf32>
    %c0_40 = arith.constant 0 : index
    %c0_41 = arith.constant 0 : index
    %c0_42 = arith.constant 0 : index
    %119 = vector.load %arg6[%c0_40, %c0_41, %c0_42] : memref<1x24x64xf32, #tpu.memory_space<vmem>>, vector<1x24x64xf32>
    %120 = vector.shape_cast %119 : vector<1x24x64xf32> to vector<24x64xf32>
    %121 = vector.shape_cast %118 : vector<24x64xf32> to vector<1x24x64xf32>
    tpu.vector_store %arg6[%c0_40, %c0_41, %c0_42], %121 {strides = array<i32>} : memref<1x24x64xf32, #tpu.memory_space<vmem>>, vector<1x24x64xf32>,
    return
  }
  func.func @transform_0(%arg0: i32) -> (i32, i32) {
    %c0_i32 = arith.constant 0 : i32
    %c0_i32_0 = arith.constant 0 : i32
    %c0_i32_1 = arith.constant 0 : i32
    return %c0_i32, %c0_i32_0 : i32, i32
  }
  func.func @transform_1(%arg0: i32) -> (i32, i32, i32) {
    %c0_i32 = arith.constant 0 : i32
    %c0_i32_0 = arith.constant 0 : i32
    %c0_i32_1 = arith.constant 0 : i32
    return %arg0, %c0_i32, %c0_i32_0 : i32, i32, i32
  }
  func.func @transform_2(%arg0: i32) -> (i32, i32, i32, i32) {
    %c0_i32 = arith.constant 0 : i32
    %c0_i32_0 = arith.constant 0 : i32
    %c0_i32_1 = arith.constant 0 : i32
    %c0_i32_2 = arith.constant 0 : i32
    return %arg0, %c0_i32, %c0_i32_0, %c0_i32_1 : i32, i32, i32, i32
  }
  func.func @transform_3(%arg0: i32) -> (i32, i32, i32) {
    %c0_i32 = arith.constant 0 : i32
    %c0_i32_0 = arith.constant 0 : i32
    %c0_i32_1 = arith.constant 0 : i32
    return %arg0, %c0_i32, %c0_i32_0 : i32, i32, i32
  }
  func.func @transform_4(%arg0: i32) -> (i32, i32, i32) {
    %c0_i32 = arith.constant 0 : i32
    %c0_i32_0 = arith.constant 0 : i32
    %c0_i32_1 = arith.constant 0 : i32
    return %arg0, %c0_i32, %c0_i32_0 : i32, i32, i32
  }
  func.func @transform_5(%arg0: i32) -> (i32, i32, i32) {
    %c0_i32 = arith.constant 0 : i32
    %c0_i32_0 = arith.constant 0 : i32
    %c0_i32_1 = arith.constant 0 : i32
    return %arg0, %c0_i32, %c0_i32_0 : i32, i32, i32
  }
}

module attributes {stable_mosaic.version = 11 : i64} {
  func.func @_head_dec_kernel(%arg0: memref<4x24x64xf32, #tpu.memory_space<vmem>>, %arg1: memref<2x24xf32, #tpu.memory_space<vmem>>, %arg2: memref<24x32xf32, #tpu.memory_space<vmem>>, %arg3: memref<24x32xf32, #tpu.memory_space<vmem>>, %arg4: memref<24x2xf32, #tpu.memory_space<vmem>>, %arg5: memref<24x1xf32, #tpu.memory_space<vmem>>, %arg6: memref<5x4x24xf32, #tpu.memory_space<vmem>>, %arg7: memref<5x4x112xf32, #tpu.memory_space<vmem>>, %arg8: memref<5x1x112xf32, #tpu.memory_space<vmem>>, %arg9: memref<1x64xf32, #tpu.memory_space<vmem>>, %arg10: memref<1x1xf32, #tpu.memory_space<vmem>>, %arg11: memref<64x64xbf16, #tpu.memory_space<vmem>>, %arg12: memref<1x64xf32, #tpu.memory_space<vmem>>, %arg13: memref<64x64xbf16, #tpu.memory_space<vmem>>, %arg14: memref<1x64xf32, #tpu.memory_space<vmem>>, %arg15: memref<24x64xbf16, #tpu.memory_space<vmem>>, %arg16: memref<1x64xf32, #tpu.memory_space<vmem>>, %arg17: memref<5x56x224xbf16, #tpu.memory_space<vmem>>, %arg18: memref<5x1x224xf32, #tpu.memory_space<vmem>>, %arg19: memref<1x1xf32, #tpu.memory_space<vmem>>, %arg20: memref<1x1xf32, #tpu.memory_space<vmem>>) attributes {dimension_semantics = [], scalar_prefetch = 0 : i64, scratch_operands = 0 : i64, tpu.core_type = #tpu.core_type<tc>} {
    %c0 = arith.constant 0 : index
    %c0_0 = arith.constant 0 : index
    %c0_1 = arith.constant 0 : index
    %0 = vector.load %arg0[%c0, %c0_0, %c0_1] : memref<4x24x64xf32, #tpu.memory_space<vmem>>, vector<4x24x64xf32>
    %c0_2 = arith.constant 0 : index
    %c0_3 = arith.constant 0 : index
    %1 = vector.load %arg9[%c0_2, %c0_3] : memref<1x64xf32, #tpu.memory_space<vmem>>, vector<1x64xf32>
    %2 = vector.shape_cast %1 : vector<1x64xf32> to vector<1x1x64xf32>
    %3 = vector.broadcast %2 : vector<1x1x64xf32> to vector<4x24x64xf32>
    %4 = arith.mulf %0, %3 : vector<4x24x64xf32>
    %cst = arith.constant dense<0.000000e+00> : vector<4x24xf32>
    %5 = vector.multi_reduction <add>, %4, %cst [2] : vector<4x24x64xf32> to vector<4x24xf32>
    %6 = vector.shape_cast %5 : vector<4x24xf32> to vector<4x24x1xf32>
    %c0_4 = arith.constant 0 : index
    %c0_5 = arith.constant 0 : index
    %7 = vector.load %arg10[%c0_4, %c0_5] : memref<1x1xf32, #tpu.memory_space<vmem>>, vector<1x1xf32>
    %8 = vector.shape_cast %7 : vector<1x1xf32> to vector<1x1x1xf32>
    %9 = vector.broadcast %8 : vector<1x1x1xf32> to vector<4x24x1xf32>
    %10 = arith.addf %6, %9 : vector<4x24x1xf32>
    %cst_6 = arith.constant dense<0xFF800000> : vector<24x1xf32>
    %11 = vector.multi_reduction <maximumf>, %10, %cst_6 [0] : vector<4x24x1xf32> to vector<24x1xf32>
    %12 = vector.shape_cast %11 : vector<24x1xf32> to vector<1x24x1xf32>
    %13 = vector.broadcast %12 : vector<1x24x1xf32> to vector<4x24x1xf32>
    %14 = arith.subf %10, %13 : vector<4x24x1xf32>
    %15 = math.exp %14 : vector<4x24x1xf32>
    %cst_7 = arith.constant dense<0.000000e+00> : vector<24x1xf32>
    %16 = vector.multi_reduction <add>, %15, %cst_7 [0] : vector<4x24x1xf32> to vector<24x1xf32>
    %17 = vector.shape_cast %16 : vector<24x1xf32> to vector<1x24x1xf32>
    %18 = vector.broadcast %17 : vector<1x24x1xf32> to vector<4x24x1xf32>
    %19 = arith.divf %15, %18 : vector<4x24x1xf32>
    %20 = vector.broadcast %19 : vector<4x24x1xf32> to vector<4x24x64xf32>
    %21 = arith.mulf %20, %0 : vector<4x24x64xf32>
    %cst_8 = arith.constant dense<0.000000e+00> : vector<24x64xf32>
    %22 = vector.multi_reduction <add>, %21, %cst_8 [0] : vector<4x24x64xf32> to vector<24x64xf32>
    %23 = arith.truncf %22 : vector<24x64xf32> to vector<24x64xbf16>
    %c0_9 = arith.constant 0 : index
    %c0_10 = arith.constant 0 : index
    %24 = vector.load %arg11[%c0_9, %c0_10] : memref<64x64xbf16, #tpu.memory_space<vmem>>, vector<64x64xbf16>
    %cst_11 = arith.constant dense<0.000000e+00> : vector<24x64xf32>
    %25 = tpu.matmul %23, %24, %cst_11 {dimension_numbers = #tpu.dot_dimension_numbers<[1], [0], [0], [1], [0, 0, 1, 1], [], []>} : vector<24x64xbf16>, vector<64x64xbf16>, vector<24x64xf32> -> vector<24x64xf32>
    %c0_12 = arith.constant 0 : index
    %c0_13 = arith.constant 0 : index
    %26 = vector.load %arg12[%c0_12, %c0_13] : memref<1x64xf32, #tpu.memory_space<vmem>>, vector<1x64xf32>
    %27 = vector.broadcast %26 : vector<1x64xf32> to vector<24x64xf32>
    %28 = arith.addf %25, %27 : vector<24x64xf32>
    %29 = math.tanh %28 : vector<24x64xf32>
    %30 = arith.truncf %29 : vector<24x64xf32> to vector<24x64xbf16>
    %c0_14 = arith.constant 0 : index
    %c0_15 = arith.constant 0 : index
    %31 = vector.load %arg13[%c0_14, %c0_15] : memref<64x64xbf16, #tpu.memory_space<vmem>>, vector<64x64xbf16>
    %cst_16 = arith.constant dense<0.000000e+00> : vector<24x64xf32>
    %32 = tpu.matmul %30, %31, %cst_16 {dimension_numbers = #tpu.dot_dimension_numbers<[1], [0], [0], [1], [0, 0, 1, 1], [], []>} : vector<24x64xbf16>, vector<64x64xbf16>, vector<24x64xf32> -> vector<24x64xf32>
    %c0_17 = arith.constant 0 : index
    %c0_18 = arith.constant 0 : index
    %33 = vector.load %arg14[%c0_17, %c0_18] : memref<1x64xf32, #tpu.memory_space<vmem>>, vector<1x64xf32>
    %34 = vector.broadcast %33 : vector<1x64xf32> to vector<24x64xf32>
    %35 = arith.addf %32, %34 : vector<24x64xf32>
    %36 = vector.extract_strided_slice %35 {offsets = [0, 0], sizes = [24, 32], strides = [1, 1]} : vector<24x64xf32> to vector<24x32xf32>
    %37 = vector.extract_strided_slice %35 {offsets = [0, 32], sizes = [24, 32], strides = [1, 1]} : vector<24x64xf32> to vector<24x32xf32>
    %cst_19 = arith.constant 0.000000e+00 : f32
    %38 = vector.broadcast %cst_19 : f32 to vector<24x32xf32>
    %39 = arith.maximumf %37, %38 : vector<24x32xf32>
    %40 = vector.broadcast %cst_19 : f32 to vector<24x32xf32>
    %41 = arith.subf %37, %40 : vector<24x32xf32>
    %42 = arith.cmpf one, %41, %41 : vector<24x32xf32>
    %43 = vector.broadcast %cst_19 : f32 to vector<24x32xf32>
    %44 = arith.addf %37, %43 : vector<24x32xf32>
    %45 = math.absf %41 : vector<24x32xf32>
    %cst_20 = arith.constant 0.000000e+00 : f32
    %46 = vector.broadcast %cst_20 : f32 to vector<24x32xf32>
    %47 = arith.subf %46, %45 : vector<24x32xf32>
    %48 = math.exp %47 : vector<24x32xf32>
    %49 = math.log1p %48 : vector<24x32xf32>
    %50 = arith.addf %39, %49 : vector<24x32xf32>
    %51 = arith.select %42, %44, %50 : vector<24x32xi1>, vector<24x32xf32>
    %cst_21 = arith.constant 1.000000e-07 : f32
    %52 = vector.broadcast %cst_21 : f32 to vector<24x32xf32>
    %53 = arith.addf %51, %52 : vector<24x32xf32>
    %c0_22 = arith.constant 0 : index
    %c0_23 = arith.constant 0 : index
    %54 = vector.load %arg1[%c0_22, %c0_23] : memref<2x24xf32, #tpu.memory_space<vmem>>, vector<2x24xf32>
    %55 = arith.truncf %54 : vector<2x24xf32> to vector<2x24xbf16>
    %c0_24 = arith.constant 0 : index
    %c0_25 = arith.constant 0 : index
    %56 = vector.load %arg15[%c0_24, %c0_25] : memref<24x64xbf16, #tpu.memory_space<vmem>>, vector<24x64xbf16>
    %cst_26 = arith.constant dense<0.000000e+00> : vector<2x64xf32>
    %57 = tpu.matmul %55, %56, %cst_26 {dimension_numbers = #tpu.dot_dimension_numbers<[1], [0], [0], [1], [0, 0, 1, 1], [], []>} : vector<2x24xbf16>, vector<24x64xbf16>, vector<2x64xf32> -> vector<2x64xf32>
    %c0_27 = arith.constant 0 : index
    %c0_28 = arith.constant 0 : index
    %58 = vector.load %arg16[%c0_27, %c0_28] : memref<1x64xf32, #tpu.memory_space<vmem>>, vector<1x64xf32>
    %59 = vector.broadcast %58 : vector<1x64xf32> to vector<2x64xf32>
    %60 = arith.addf %57, %59 : vector<2x64xf32>
    %61 = vector.extract_strided_slice %60 {offsets = [0, 0], sizes = [2, 32], strides = [1, 1]} : vector<2x64xf32> to vector<2x32xf32>
    %62 = vector.extract_strided_slice %60 {offsets = [0, 32], sizes = [2, 32], strides = [1, 1]} : vector<2x64xf32> to vector<2x32xf32>
    %cst_29 = arith.constant 0.000000e+00 : f32
    %63 = vector.broadcast %cst_29 : f32 to vector<2x32xf32>
    %64 = arith.maximumf %62, %63 : vector<2x32xf32>
    %65 = vector.broadcast %cst_29 : f32 to vector<2x32xf32>
    %66 = arith.subf %62, %65 : vector<2x32xf32>
    %67 = arith.cmpf one, %66, %66 : vector<2x32xf32>
    %68 = vector.broadcast %cst_29 : f32 to vector<2x32xf32>
    %69 = arith.addf %62, %68 : vector<2x32xf32>
    %70 = math.absf %66 : vector<2x32xf32>
    %cst_30 = arith.constant 0.000000e+00 : f32
    %71 = vector.broadcast %cst_30 : f32 to vector<2x32xf32>
    %72 = arith.subf %71, %70 : vector<2x32xf32>
    %73 = math.exp %72 : vector<2x32xf32>
    %74 = math.log1p %73 : vector<2x32xf32>
    %75 = arith.addf %64, %74 : vector<2x32xf32>
    %76 = arith.select %67, %69, %75 : vector<2x32xi1>, vector<2x32xf32>
    %cst_31 = arith.constant 1.000000e-07 : f32
    %77 = vector.broadcast %cst_31 : f32 to vector<2x32xf32>
    %78 = arith.addf %76, %77 : vector<2x32xf32>
    %79 = tpu.concatenate %61, %78, %54 in 1 : vector<2x32xf32>, vector<2x32xf32>, vector<2x24xf32> -> vector<2x88xf32>
    %c0_32 = arith.constant 0 : index
    %c0_33 = arith.constant 0 : index
    %80 = vector.load %arg4[%c0_32, %c0_33] : memref<24x2xf32, #tpu.memory_space<vmem>>, vector<24x2xf32>
    %cst_34 = arith.constant dense<0.000000e+00> : vector<24x88xf32>
    %81 = tpu.matmul %80, %79, %cst_34 {dimension_numbers = #tpu.dot_dimension_numbers<[1], [0], [0], [1], [0, 0, 1, 1], [], []>} : vector<24x2xf32>, vector<2x88xf32>, vector<24x88xf32> -> vector<24x88xf32>
    %82 = vector.extract_strided_slice %81 {offsets = [0, 0], sizes = [24, 32], strides = [1, 1]} : vector<24x88xf32> to vector<24x32xf32>
    %83 = vector.extract_strided_slice %81 {offsets = [0, 32], sizes = [24, 32], strides = [1, 1]} : vector<24x88xf32> to vector<24x32xf32>
    %84 = vector.extract_strided_slice %81 {offsets = [0, 64], sizes = [24, 24], strides = [1, 1]} : vector<24x88xf32> to vector<24x24xf32>
    %85 = arith.divf %53, %83 : vector<24x32xf32>
    %86 = arith.mulf %85, %85 : vector<24x32xf32>
    %87 = arith.subf %36, %82 : vector<24x32xf32>
    %88 = arith.divf %87, %83 : vector<24x32xf32>
    %89 = arith.mulf %88, %88 : vector<24x32xf32>
    %90 = arith.addf %86, %89 : vector<24x32xf32>
    %cst_35 = arith.constant 1.000000e+00 : f32
    %91 = vector.broadcast %cst_35 : f32 to vector<24x32xf32>
    %92 = arith.subf %90, %91 : vector<24x32xf32>
    %93 = math.log %86 : vector<24x32xf32>
    %94 = arith.subf %92, %93 : vector<24x32xf32>
    %cst_36 = arith.constant 5.000000e-01 : f32
    %95 = vector.broadcast %cst_36 : f32 to vector<24x32xf32>
    %96 = arith.mulf %95, %94 : vector<24x32xf32>
    %c0_37 = arith.constant 0 : index
    %c0_38 = arith.constant 0 : index
    %97 = vector.load %arg5[%c0_37, %c0_38] : memref<24x1xf32, #tpu.memory_space<vmem>>, vector<24x1xf32>
    %98 = vector.broadcast %97 : vector<24x1xf32> to vector<24x32xf32>
    %99 = arith.mulf %96, %98 : vector<24x32xf32>
    %100 = vector.shape_cast %99 : vector<24x32xf32> to vector<1x24x32xf32>
    %cst_39 = arith.constant dense<0.000000e+00> : vector<1xf32>
    %101 = vector.multi_reduction <add>, %100, %cst_39 [1, 2] : vector<1x24x32xf32> to vector<1xf32>
    %102 = vector.shape_cast %101 : vector<1xf32> to vector<1x1x1xf32>
    %103 = vector.extract %102[0, 0, 0] : f32 from vector<1x1x1xf32>
    %104 = vector.broadcast %103 : f32 to vector<1x1xf32>
    %cst_40 = arith.constant 5.000000e-02 : f32
    %105 = vector.broadcast %cst_40 : f32 to vector<1x1xf32>
    %106 = arith.mulf %104, %105 : vector<1x1xf32>
    %c0_41 = arith.constant 0 : index
    %c0_42 = arith.constant 0 : index
    %107 = vector.load %arg19[%c0_41, %c0_42] : memref<1x1xf32, #tpu.memory_space<vmem>>, vector<1x1xf32>
    tpu.vector_store %arg19[%c0_41, %c0_42], %106 {strides = array<i32>} : memref<1x1xf32, #tpu.memory_space<vmem>>, vector<1x1xf32>,
    %c0_43 = arith.constant 0 : index
    %c0_44 = arith.constant 0 : index
    %108 = vector.load %arg3[%c0_43, %c0_44] : memref<24x32xf32, #tpu.memory_space<vmem>>, vector<24x32xf32>
    %109 = arith.mulf %53, %108 : vector<24x32xf32>
    %110 = arith.addf %36, %109 : vector<24x32xf32>
    %c0_45 = arith.constant 0 : index
    %c0_46 = arith.constant 0 : index
    %111 = vector.load %arg2[%c0_45, %c0_46] : memref<24x32xf32, #tpu.memory_space<vmem>>, vector<24x32xf32>
    %112 = arith.mulf %110, %111 : vector<24x32xf32>
    %113 = tpu.concatenate %112, %84 in 1 : vector<24x32xf32>, vector<24x24xf32> -> vector<24x56xf32>
    %cst_47 = arith.constant 0.000000e+00 : f32
    %114 = vector.broadcast %cst_47 : f32 to vector<1x1xf32>
    %c0_48 = arith.constant 0 : index
    %c0_49 = arith.constant 0 : index
    %c0_50 = arith.constant 0 : index
    %115 = vector.load %arg6[%c0_48, %c0_49, %c0_50] : memref<5x4x24xf32, #tpu.memory_space<vmem>>, vector<1x4x24xf32>
    %116 = vector.shape_cast %115 : vector<1x4x24xf32> to vector<4x24xf32>
    %cst_51 = arith.constant dense<0.000000e+00> : vector<4x56xf32>
    %117 = tpu.matmul %116, %113, %cst_51 {dimension_numbers = #tpu.dot_dimension_numbers<[1], [0], [0], [1], [0, 0, 1, 1], [], []>} : vector<4x24xf32>, vector<24x56xf32>, vector<4x56xf32> -> vector<4x56xf32>
    %118 = arith.truncf %117 : vector<4x56xf32> to vector<4x56xbf16>
    %c0_52 = arith.constant 0 : index
    %c0_53 = arith.constant 0 : index
    %c0_54 = arith.constant 0 : index
    %119 = vector.load %arg17[%c0_52, %c0_53, %c0_54] : memref<5x56x224xbf16, #tpu.memory_space<vmem>>, vector<1x56x224xbf16>
    %120 = vector.shape_cast %119 : vector<1x56x224xbf16> to vector<56x224xbf16>
    %cst_55 = arith.constant dense<0.000000e+00> : vector<4x224xf32>
    %121 = tpu.matmul %118, %120, %cst_55 {dimension_numbers = #tpu.dot_dimension_numbers<[1], [0], [0], [1], [0, 0, 1, 1], [], []>} : vector<4x56xbf16>, vector<56x224xbf16>, vector<4x224xf32> -> vector<4x224xf32>
    %c0_56 = arith.constant 0 : index
    %c0_57 = arith.constant 0 : index
    %c0_58 = arith.constant 0 : index
    %122 = vector.load %arg18[%c0_56, %c0_57, %c0_58] : memref<5x1x224xf32, #tpu.memory_space<vmem>>, vector<1x1x224xf32>
    %123 = vector.shape_cast %122 : vector<1x1x224xf32> to vector<1x224xf32>
    %124 = vector.broadcast %123 : vector<1x224xf32> to vector<4x224xf32>
    %125 = arith.addf %121, %124 : vector<4x224xf32>
    %126 = vector.extract_strided_slice %125 {offsets = [0, 0], sizes = [4, 112], strides = [1, 1]} : vector<4x224xf32> to vector<4x112xf32>
    %127 = vector.extract_strided_slice %125 {offsets = [0, 112], sizes = [4, 112], strides = [1, 1]} : vector<4x224xf32> to vector<4x112xf32>
    %cst_59 = arith.constant 0.000000e+00 : f32
    %128 = vector.broadcast %cst_59 : f32 to vector<4x112xf32>
    %129 = arith.maximumf %127, %128 : vector<4x112xf32>
    %130 = vector.broadcast %cst_59 : f32 to vector<4x112xf32>
    %131 = arith.subf %127, %130 : vector<4x112xf32>
    %132 = arith.cmpf one, %131, %131 : vector<4x112xf32>
    %133 = vector.broadcast %cst_59 : f32 to vector<4x112xf32>
    %134 = arith.addf %127, %133 : vector<4x112xf32>
    %135 = math.absf %131 : vector<4x112xf32>
    %cst_60 = arith.constant 0.000000e+00 : f32
    %136 = vector.broadcast %cst_60 : f32 to vector<4x112xf32>
    %137 = arith.subf %136, %135 : vector<4x112xf32>
    %138 = math.exp %137 : vector<4x112xf32>
    %139 = math.log1p %138 : vector<4x112xf32>
    %140 = arith.addf %129, %139 : vector<4x112xf32>
    %141 = arith.select %132, %134, %140 : vector<4x112xi1>, vector<4x112xf32>
    %cst_61 = arith.constant 9.99999997E-7 : f32
    %142 = vector.broadcast %cst_61 : f32 to vector<4x112xf32>
    %143 = arith.addf %141, %142 : vector<4x112xf32>
    %c0_62 = arith.constant 0 : index
    %c0_63 = arith.constant 0 : index
    %c0_64 = arith.constant 0 : index
    %144 = vector.load %arg7[%c0_62, %c0_63, %c0_64] : memref<5x4x112xf32, #tpu.memory_space<vmem>>, vector<1x4x112xf32>
    %145 = vector.shape_cast %144 : vector<1x4x112xf32> to vector<4x112xf32>
    %146 = arith.subf %145, %126 : vector<4x112xf32>
    %147 = arith.divf %146, %143 : vector<4x112xf32>
    %cst_65 = arith.constant -5.000000e-01 : f32
    %148 = vector.broadcast %cst_65 : f32 to vector<4x112xf32>
    %149 = arith.mulf %148, %147 : vector<4x112xf32>
    %150 = arith.mulf %149, %147 : vector<4x112xf32>
    %151 = math.log %143 : vector<4x112xf32>
    %152 = arith.subf %150, %151 : vector<4x112xf32>
    %cst_66 = arith.constant 0.918938517 : f32
    %153 = vector.broadcast %cst_66 : f32 to vector<4x112xf32>
    %154 = arith.subf %152, %153 : vector<4x112xf32>
    %c0_67 = arith.constant 0 : index
    %c0_68 = arith.constant 0 : index
    %c0_69 = arith.constant 0 : index
    %155 = vector.load %arg8[%c0_67, %c0_68, %c0_69] : memref<5x1x112xf32, #tpu.memory_space<vmem>>, vector<1x1x112xf32>
    %156 = vector.shape_cast %155 : vector<1x1x112xf32> to vector<1x112xf32>
    %157 = vector.broadcast %156 : vector<1x112xf32> to vector<4x112xf32>
    %158 = arith.mulf %154, %157 : vector<4x112xf32>
    %159 = vector.shape_cast %158 : vector<4x112xf32> to vector<1x4x112xf32>
    %cst_70 = arith.constant dense<0.000000e+00> : vector<1xf32>
    %160 = vector.multi_reduction <add>, %159, %cst_70 [1, 2] : vector<1x4x112xf32> to vector<1xf32>
    %161 = vector.shape_cast %160 : vector<1xf32> to vector<1x1x1xf32>
    %162 = vector.extract %161[0, 0, 0] : f32 from vector<1x1x1xf32>
    %163 = vector.broadcast %162 : f32 to vector<1x1xf32>
    %cst_71 = arith.constant 0.0833333358 : f32
    %164 = vector.broadcast %cst_71 : f32 to vector<1x1xf32>
    %165 = arith.mulf %164, %163 : vector<1x1xf32>
    %166 = arith.addf %114, %165 : vector<1x1xf32>
    %c1 = arith.constant 1 : index
    %c0_72 = arith.constant 0 : index
    %c0_73 = arith.constant 0 : index
    %167 = vector.load %arg6[%c1, %c0_72, %c0_73] : memref<5x4x24xf32, #tpu.memory_space<vmem>>, vector<1x4x24xf32>
    %168 = vector.shape_cast %167 : vector<1x4x24xf32> to vector<4x24xf32>
    %cst_74 = arith.constant dense<0.000000e+00> : vector<4x56xf32>
    %169 = tpu.matmul %168, %113, %cst_74 {dimension_numbers = #tpu.dot_dimension_numbers<[1], [0], [0], [1], [0, 0, 1, 1], [], []>} : vector<4x24xf32>, vector<24x56xf32>, vector<4x56xf32> -> vector<4x56xf32>
    %170 = arith.truncf %169 : vector<4x56xf32> to vector<4x56xbf16>
    %c1_75 = arith.constant 1 : index
    %c0_76 = arith.constant 0 : index
    %c0_77 = arith.constant 0 : index
    %171 = vector.load %arg17[%c1_75, %c0_76, %c0_77] : memref<5x56x224xbf16, #tpu.memory_space<vmem>>, vector<1x56x224xbf16>
    %172 = vector.shape_cast %171 : vector<1x56x224xbf16> to vector<56x224xbf16>
    %cst_78 = arith.constant dense<0.000000e+00> : vector<4x224xf32>
    %173 = tpu.matmul %170, %172, %cst_78 {dimension_numbers = #tpu.dot_dimension_numbers<[1], [0], [0], [1], [0, 0, 1, 1], [], []>} : vector<4x56xbf16>, vector<56x224xbf16>, vector<4x224xf32> -> vector<4x224xf32>
    %c1_79 = arith.constant 1 : index
    %c0_80 = arith.constant 0 : index
    %c0_81 = arith.constant 0 : index
    %174 = vector.load %arg18[%c1_79, %c0_80, %c0_81] : memref<5x1x224xf32, #tpu.memory_space<vmem>>, vector<1x1x224xf32>
    %175 = vector.shape_cast %174 : vector<1x1x224xf32> to vector<1x224xf32>
    %176 = vector.broadcast %175 : vector<1x224xf32> to vector<4x224xf32>
    %177 = arith.addf %173, %176 : vector<4x224xf32>
    %178 = vector.extract_strided_slice %177 {offsets = [0, 0], sizes = [4, 112], strides = [1, 1]} : vector<4x224xf32> to vector<4x112xf32>
    %179 = vector.extract_strided_slice %177 {offsets = [0, 112], sizes = [4, 112], strides = [1, 1]} : vector<4x224xf32> to vector<4x112xf32>
    %cst_82 = arith.constant 0.000000e+00 : f32
    %180 = vector.broadcast %cst_82 : f32 to vector<4x112xf32>
    %181 = arith.maximumf %179, %180 : vector<4x112xf32>
    %182 = vector.broadcast %cst_82 : f32 to vector<4x112xf32>
    %183 = arith.subf %179, %182 : vector<4x112xf32>
    %184 = arith.cmpf one, %183, %183 : vector<4x112xf32>
    %185 = vector.broadcast %cst_82 : f32 to vector<4x112xf32>
    %186 = arith.addf %179, %185 : vector<4x112xf32>
    %187 = math.absf %183 : vector<4x112xf32>
    %cst_83 = arith.constant 0.000000e+00 : f32
    %188 = vector.broadcast %cst_83 : f32 to vector<4x112xf32>
    %189 = arith.subf %188, %187 : vector<4x112xf32>
    %190 = math.exp %189 : vector<4x112xf32>
    %191 = math.log1p %190 : vector<4x112xf32>
    %192 = arith.addf %181, %191 : vector<4x112xf32>
    %193 = arith.select %184, %186, %192 : vector<4x112xi1>, vector<4x112xf32>
    %cst_84 = arith.constant 9.99999997E-7 : f32
    %194 = vector.broadcast %cst_84 : f32 to vector<4x112xf32>
    %195 = arith.addf %193, %194 : vector<4x112xf32>
    %c1_85 = arith.constant 1 : index
    %c0_86 = arith.constant 0 : index
    %c0_87 = arith.constant 0 : index
    %196 = vector.load %arg7[%c1_85, %c0_86, %c0_87] : memref<5x4x112xf32, #tpu.memory_space<vmem>>, vector<1x4x112xf32>
    %197 = vector.shape_cast %196 : vector<1x4x112xf32> to vector<4x112xf32>
    %198 = arith.subf %197, %178 : vector<4x112xf32>
    %199 = arith.divf %198, %195 : vector<4x112xf32>
    %cst_88 = arith.constant -5.000000e-01 : f32
    %200 = vector.broadcast %cst_88 : f32 to vector<4x112xf32>
    %201 = arith.mulf %200, %199 : vector<4x112xf32>
    %202 = arith.mulf %201, %199 : vector<4x112xf32>
    %203 = math.log %195 : vector<4x112xf32>
    %204 = arith.subf %202, %203 : vector<4x112xf32>
    %cst_89 = arith.constant 0.918938517 : f32
    %205 = vector.broadcast %cst_89 : f32 to vector<4x112xf32>
    %206 = arith.subf %204, %205 : vector<4x112xf32>
    %c1_90 = arith.constant 1 : index
    %c0_91 = arith.constant 0 : index
    %c0_92 = arith.constant 0 : index
    %207 = vector.load %arg8[%c1_90, %c0_91, %c0_92] : memref<5x1x112xf32, #tpu.memory_space<vmem>>, vector<1x1x112xf32>
    %208 = vector.shape_cast %207 : vector<1x1x112xf32> to vector<1x112xf32>
    %209 = vector.broadcast %208 : vector<1x112xf32> to vector<4x112xf32>
    %210 = arith.mulf %206, %209 : vector<4x112xf32>
    %211 = vector.shape_cast %210 : vector<4x112xf32> to vector<1x4x112xf32>
    %cst_93 = arith.constant dense<0.000000e+00> : vector<1xf32>
    %212 = vector.multi_reduction <add>, %211, %cst_93 [1, 2] : vector<1x4x112xf32> to vector<1xf32>
    %213 = vector.shape_cast %212 : vector<1xf32> to vector<1x1x1xf32>
    %214 = vector.extract %213[0, 0, 0] : f32 from vector<1x1x1xf32>
    %215 = vector.broadcast %214 : f32 to vector<1x1xf32>
    %cst_94 = arith.constant 0.0714285746 : f32
    %216 = vector.broadcast %cst_94 : f32 to vector<1x1xf32>
    %217 = arith.mulf %216, %215 : vector<1x1xf32>
    %218 = arith.addf %166, %217 : vector<1x1xf32>
    %c2 = arith.constant 2 : index
    %c0_95 = arith.constant 0 : index
    %c0_96 = arith.constant 0 : index
    %219 = vector.load %arg6[%c2, %c0_95, %c0_96] : memref<5x4x24xf32, #tpu.memory_space<vmem>>, vector<1x4x24xf32>
    %220 = vector.shape_cast %219 : vector<1x4x24xf32> to vector<4x24xf32>
    %cst_97 = arith.constant dense<0.000000e+00> : vector<4x56xf32>
    %221 = tpu.matmul %220, %113, %cst_97 {dimension_numbers = #tpu.dot_dimension_numbers<[1], [0], [0], [1], [0, 0, 1, 1], [], []>} : vector<4x24xf32>, vector<24x56xf32>, vector<4x56xf32> -> vector<4x56xf32>
    %222 = arith.truncf %221 : vector<4x56xf32> to vector<4x56xbf16>
    %c2_98 = arith.constant 2 : index
    %c0_99 = arith.constant 0 : index
    %c0_100 = arith.constant 0 : index
    %223 = vector.load %arg17[%c2_98, %c0_99, %c0_100] : memref<5x56x224xbf16, #tpu.memory_space<vmem>>, vector<1x56x224xbf16>
    %224 = vector.shape_cast %223 : vector<1x56x224xbf16> to vector<56x224xbf16>
    %cst_101 = arith.constant dense<0.000000e+00> : vector<4x224xf32>
    %225 = tpu.matmul %222, %224, %cst_101 {dimension_numbers = #tpu.dot_dimension_numbers<[1], [0], [0], [1], [0, 0, 1, 1], [], []>} : vector<4x56xbf16>, vector<56x224xbf16>, vector<4x224xf32> -> vector<4x224xf32>
    %c2_102 = arith.constant 2 : index
    %c0_103 = arith.constant 0 : index
    %c0_104 = arith.constant 0 : index
    %226 = vector.load %arg18[%c2_102, %c0_103, %c0_104] : memref<5x1x224xf32, #tpu.memory_space<vmem>>, vector<1x1x224xf32>
    %227 = vector.shape_cast %226 : vector<1x1x224xf32> to vector<1x224xf32>
    %228 = vector.broadcast %227 : vector<1x224xf32> to vector<4x224xf32>
    %229 = arith.addf %225, %228 : vector<4x224xf32>
    %230 = vector.extract_strided_slice %229 {offsets = [0, 0], sizes = [4, 112], strides = [1, 1]} : vector<4x224xf32> to vector<4x112xf32>
    %231 = vector.extract_strided_slice %229 {offsets = [0, 112], sizes = [4, 112], strides = [1, 1]} : vector<4x224xf32> to vector<4x112xf32>
    %cst_105 = arith.constant 0.000000e+00 : f32
    %232 = vector.broadcast %cst_105 : f32 to vector<4x112xf32>
    %233 = arith.maximumf %231, %232 : vector<4x112xf32>
    %234 = vector.broadcast %cst_105 : f32 to vector<4x112xf32>
    %235 = arith.subf %231, %234 : vector<4x112xf32>
    %236 = arith.cmpf one, %235, %235 : vector<4x112xf32>
    %237 = vector.broadcast %cst_105 : f32 to vector<4x112xf32>
    %238 = arith.addf %231, %237 : vector<4x112xf32>
    %239 = math.absf %235 : vector<4x112xf32>
    %cst_106 = arith.constant 0.000000e+00 : f32
    %240 = vector.broadcast %cst_106 : f32 to vector<4x112xf32>
    %241 = arith.subf %240, %239 : vector<4x112xf32>
    %242 = math.exp %241 : vector<4x112xf32>
    %243 = math.log1p %242 : vector<4x112xf32>
    %244 = arith.addf %233, %243 : vector<4x112xf32>
    %245 = arith.select %236, %238, %244 : vector<4x112xi1>, vector<4x112xf32>
    %cst_107 = arith.constant 9.99999997E-7 : f32
    %246 = vector.broadcast %cst_107 : f32 to vector<4x112xf32>
    %247 = arith.addf %245, %246 : vector<4x112xf32>
    %c2_108 = arith.constant 2 : index
    %c0_109 = arith.constant 0 : index
    %c0_110 = arith.constant 0 : index
    %248 = vector.load %arg7[%c2_108, %c0_109, %c0_110] : memref<5x4x112xf32, #tpu.memory_space<vmem>>, vector<1x4x112xf32>
    %249 = vector.shape_cast %248 : vector<1x4x112xf32> to vector<4x112xf32>
    %250 = arith.subf %249, %230 : vector<4x112xf32>
    %251 = arith.divf %250, %247 : vector<4x112xf32>
    %cst_111 = arith.constant -5.000000e-01 : f32
    %252 = vector.broadcast %cst_111 : f32 to vector<4x112xf32>
    %253 = arith.mulf %252, %251 : vector<4x112xf32>
    %254 = arith.mulf %253, %251 : vector<4x112xf32>
    %255 = math.log %247 : vector<4x112xf32>
    %256 = arith.subf %254, %255 : vector<4x112xf32>
    %cst_112 = arith.constant 0.918938517 : f32
    %257 = vector.broadcast %cst_112 : f32 to vector<4x112xf32>
    %258 = arith.subf %256, %257 : vector<4x112xf32>
    %c2_113 = arith.constant 2 : index
    %c0_114 = arith.constant 0 : index
    %c0_115 = arith.constant 0 : index
    %259 = vector.load %arg8[%c2_113, %c0_114, %c0_115] : memref<5x1x112xf32, #tpu.memory_space<vmem>>, vector<1x1x112xf32>
    %260 = vector.shape_cast %259 : vector<1x1x112xf32> to vector<1x112xf32>
    %261 = vector.broadcast %260 : vector<1x112xf32> to vector<4x112xf32>
    %262 = arith.mulf %258, %261 : vector<4x112xf32>
    %263 = vector.shape_cast %262 : vector<4x112xf32> to vector<1x4x112xf32>
    %cst_116 = arith.constant dense<0.000000e+00> : vector<1xf32>
    %264 = vector.multi_reduction <add>, %263, %cst_116 [1, 2] : vector<1x4x112xf32> to vector<1xf32>
    %265 = vector.shape_cast %264 : vector<1xf32> to vector<1x1x1xf32>
    %266 = vector.extract %265[0, 0, 0] : f32 from vector<1x1x1xf32>
    %267 = vector.broadcast %266 : f32 to vector<1x1xf32>
    %cst_117 = arith.constant 0.0909090936 : f32
    %268 = vector.broadcast %cst_117 : f32 to vector<1x1xf32>
    %269 = arith.mulf %268, %267 : vector<1x1xf32>
    %270 = arith.addf %218, %269 : vector<1x1xf32>
    %c3 = arith.constant 3 : index
    %c0_118 = arith.constant 0 : index
    %c0_119 = arith.constant 0 : index
    %271 = vector.load %arg6[%c3, %c0_118, %c0_119] : memref<5x4x24xf32, #tpu.memory_space<vmem>>, vector<1x4x24xf32>
    %272 = vector.shape_cast %271 : vector<1x4x24xf32> to vector<4x24xf32>
    %cst_120 = arith.constant dense<0.000000e+00> : vector<4x56xf32>
    %273 = tpu.matmul %272, %113, %cst_120 {dimension_numbers = #tpu.dot_dimension_numbers<[1], [0], [0], [1], [0, 0, 1, 1], [], []>} : vector<4x24xf32>, vector<24x56xf32>, vector<4x56xf32> -> vector<4x56xf32>
    %274 = arith.truncf %273 : vector<4x56xf32> to vector<4x56xbf16>
    %c3_121 = arith.constant 3 : index
    %c0_122 = arith.constant 0 : index
    %c0_123 = arith.constant 0 : index
    %275 = vector.load %arg17[%c3_121, %c0_122, %c0_123] : memref<5x56x224xbf16, #tpu.memory_space<vmem>>, vector<1x56x224xbf16>
    %276 = vector.shape_cast %275 : vector<1x56x224xbf16> to vector<56x224xbf16>
    %cst_124 = arith.constant dense<0.000000e+00> : vector<4x224xf32>
    %277 = tpu.matmul %274, %276, %cst_124 {dimension_numbers = #tpu.dot_dimension_numbers<[1], [0], [0], [1], [0, 0, 1, 1], [], []>} : vector<4x56xbf16>, vector<56x224xbf16>, vector<4x224xf32> -> vector<4x224xf32>
    %c3_125 = arith.constant 3 : index
    %c0_126 = arith.constant 0 : index
    %c0_127 = arith.constant 0 : index
    %278 = vector.load %arg18[%c3_125, %c0_126, %c0_127] : memref<5x1x224xf32, #tpu.memory_space<vmem>>, vector<1x1x224xf32>
    %279 = vector.shape_cast %278 : vector<1x1x224xf32> to vector<1x224xf32>
    %280 = vector.broadcast %279 : vector<1x224xf32> to vector<4x224xf32>
    %281 = arith.addf %277, %280 : vector<4x224xf32>
    %282 = vector.extract_strided_slice %281 {offsets = [0, 0], sizes = [4, 112], strides = [1, 1]} : vector<4x224xf32> to vector<4x112xf32>
    %283 = vector.extract_strided_slice %281 {offsets = [0, 112], sizes = [4, 112], strides = [1, 1]} : vector<4x224xf32> to vector<4x112xf32>
    %cst_128 = arith.constant 0.000000e+00 : f32
    %284 = vector.broadcast %cst_128 : f32 to vector<4x112xf32>
    %285 = arith.maximumf %283, %284 : vector<4x112xf32>
    %286 = vector.broadcast %cst_128 : f32 to vector<4x112xf32>
    %287 = arith.subf %283, %286 : vector<4x112xf32>
    %288 = arith.cmpf one, %287, %287 : vector<4x112xf32>
    %289 = vector.broadcast %cst_128 : f32 to vector<4x112xf32>
    %290 = arith.addf %283, %289 : vector<4x112xf32>
    %291 = math.absf %287 : vector<4x112xf32>
    %cst_129 = arith.constant 0.000000e+00 : f32
    %292 = vector.broadcast %cst_129 : f32 to vector<4x112xf32>
    %293 = arith.subf %292, %291 : vector<4x112xf32>
    %294 = math.exp %293 : vector<4x112xf32>
    %295 = math.log1p %294 : vector<4x112xf32>
    %296 = arith.addf %285, %295 : vector<4x112xf32>
    %297 = arith.select %288, %290, %296 : vector<4x112xi1>, vector<4x112xf32>
    %cst_130 = arith.constant 9.99999997E-7 : f32
    %298 = vector.broadcast %cst_130 : f32 to vector<4x112xf32>
    %299 = arith.addf %297, %298 : vector<4x112xf32>
    %c3_131 = arith.constant 3 : index
    %c0_132 = arith.constant 0 : index
    %c0_133 = arith.constant 0 : index
    %300 = vector.load %arg7[%c3_131, %c0_132, %c0_133] : memref<5x4x112xf32, #tpu.memory_space<vmem>>, vector<1x4x112xf32>
    %301 = vector.shape_cast %300 : vector<1x4x112xf32> to vector<4x112xf32>
    %302 = arith.subf %301, %282 : vector<4x112xf32>
    %303 = arith.divf %302, %299 : vector<4x112xf32>
    %cst_134 = arith.constant -5.000000e-01 : f32
    %304 = vector.broadcast %cst_134 : f32 to vector<4x112xf32>
    %305 = arith.mulf %304, %303 : vector<4x112xf32>
    %306 = arith.mulf %305, %303 : vector<4x112xf32>
    %307 = math.log %299 : vector<4x112xf32>
    %308 = arith.subf %306, %307 : vector<4x112xf32>
    %cst_135 = arith.constant 0.918938517 : f32
    %309 = vector.broadcast %cst_135 : f32 to vector<4x112xf32>
    %310 = arith.subf %308, %309 : vector<4x112xf32>
    %c3_136 = arith.constant 3 : index
    %c0_137 = arith.constant 0 : index
    %c0_138 = arith.constant 0 : index
    %311 = vector.load %arg8[%c3_136, %c0_137, %c0_138] : memref<5x1x112xf32, #tpu.memory_space<vmem>>, vector<1x1x112xf32>
    %312 = vector.shape_cast %311 : vector<1x1x112xf32> to vector<1x112xf32>
    %313 = vector.broadcast %312 : vector<1x112xf32> to vector<4x112xf32>
    %314 = arith.mulf %310, %313 : vector<4x112xf32>
    %315 = vector.shape_cast %314 : vector<4x112xf32> to vector<1x4x112xf32>
    %cst_139 = arith.constant dense<0.000000e+00> : vector<1xf32>
    %316 = vector.multi_reduction <add>, %315, %cst_139 [1, 2] : vector<1x4x112xf32> to vector<1xf32>
    %317 = vector.shape_cast %316 : vector<1xf32> to vector<1x1x1xf32>
    %318 = vector.extract %317[0, 0, 0] : f32 from vector<1x1x1xf32>
    %319 = vector.broadcast %318 : f32 to vector<1x1xf32>
    %cst_140 = arith.constant 0.0833333358 : f32
    %320 = vector.broadcast %cst_140 : f32 to vector<1x1xf32>
    %321 = arith.mulf %320, %319 : vector<1x1xf32>
    %322 = arith.addf %270, %321 : vector<1x1xf32>
    %c4 = arith.constant 4 : index
    %c0_141 = arith.constant 0 : index
    %c0_142 = arith.constant 0 : index
    %323 = vector.load %arg6[%c4, %c0_141, %c0_142] : memref<5x4x24xf32, #tpu.memory_space<vmem>>, vector<1x4x24xf32>
    %324 = vector.shape_cast %323 : vector<1x4x24xf32> to vector<4x24xf32>
    %cst_143 = arith.constant dense<0.000000e+00> : vector<4x56xf32>
    %325 = tpu.matmul %324, %113, %cst_143 {dimension_numbers = #tpu.dot_dimension_numbers<[1], [0], [0], [1], [0, 0, 1, 1], [], []>} : vector<4x24xf32>, vector<24x56xf32>, vector<4x56xf32> -> vector<4x56xf32>
    %326 = arith.truncf %325 : vector<4x56xf32> to vector<4x56xbf16>
    %c4_144 = arith.constant 4 : index
    %c0_145 = arith.constant 0 : index
    %c0_146 = arith.constant 0 : index
    %327 = vector.load %arg17[%c4_144, %c0_145, %c0_146] : memref<5x56x224xbf16, #tpu.memory_space<vmem>>, vector<1x56x224xbf16>
    %328 = vector.shape_cast %327 : vector<1x56x224xbf16> to vector<56x224xbf16>
    %cst_147 = arith.constant dense<0.000000e+00> : vector<4x224xf32>
    %329 = tpu.matmul %326, %328, %cst_147 {dimension_numbers = #tpu.dot_dimension_numbers<[1], [0], [0], [1], [0, 0, 1, 1], [], []>} : vector<4x56xbf16>, vector<56x224xbf16>, vector<4x224xf32> -> vector<4x224xf32>
    %c4_148 = arith.constant 4 : index
    %c0_149 = arith.constant 0 : index
    %c0_150 = arith.constant 0 : index
    %330 = vector.load %arg18[%c4_148, %c0_149, %c0_150] : memref<5x1x224xf32, #tpu.memory_space<vmem>>, vector<1x1x224xf32>
    %331 = vector.shape_cast %330 : vector<1x1x224xf32> to vector<1x224xf32>
    %332 = vector.broadcast %331 : vector<1x224xf32> to vector<4x224xf32>
    %333 = arith.addf %329, %332 : vector<4x224xf32>
    %334 = vector.extract_strided_slice %333 {offsets = [0, 0], sizes = [4, 112], strides = [1, 1]} : vector<4x224xf32> to vector<4x112xf32>
    %335 = vector.extract_strided_slice %333 {offsets = [0, 112], sizes = [4, 112], strides = [1, 1]} : vector<4x224xf32> to vector<4x112xf32>
    %cst_151 = arith.constant 0.000000e+00 : f32
    %336 = vector.broadcast %cst_151 : f32 to vector<4x112xf32>
    %337 = arith.maximumf %335, %336 : vector<4x112xf32>
    %338 = vector.broadcast %cst_151 : f32 to vector<4x112xf32>
    %339 = arith.subf %335, %338 : vector<4x112xf32>
    %340 = arith.cmpf one, %339, %339 : vector<4x112xf32>
    %341 = vector.broadcast %cst_151 : f32 to vector<4x112xf32>
    %342 = arith.addf %335, %341 : vector<4x112xf32>
    %343 = math.absf %339 : vector<4x112xf32>
    %cst_152 = arith.constant 0.000000e+00 : f32
    %344 = vector.broadcast %cst_152 : f32 to vector<4x112xf32>
    %345 = arith.subf %344, %343 : vector<4x112xf32>
    %346 = math.exp %345 : vector<4x112xf32>
    %347 = math.log1p %346 : vector<4x112xf32>
    %348 = arith.addf %337, %347 : vector<4x112xf32>
    %349 = arith.select %340, %342, %348 : vector<4x112xi1>, vector<4x112xf32>
    %cst_153 = arith.constant 9.99999997E-7 : f32
    %350 = vector.broadcast %cst_153 : f32 to vector<4x112xf32>
    %351 = arith.addf %349, %350 : vector<4x112xf32>
    %c4_154 = arith.constant 4 : index
    %c0_155 = arith.constant 0 : index
    %c0_156 = arith.constant 0 : index
    %352 = vector.load %arg7[%c4_154, %c0_155, %c0_156] : memref<5x4x112xf32, #tpu.memory_space<vmem>>, vector<1x4x112xf32>
    %353 = vector.shape_cast %352 : vector<1x4x112xf32> to vector<4x112xf32>
    %354 = arith.subf %353, %334 : vector<4x112xf32>
    %355 = arith.divf %354, %351 : vector<4x112xf32>
    %cst_157 = arith.constant -5.000000e-01 : f32
    %356 = vector.broadcast %cst_157 : f32 to vector<4x112xf32>
    %357 = arith.mulf %356, %355 : vector<4x112xf32>
    %358 = arith.mulf %357, %355 : vector<4x112xf32>
    %359 = math.log %351 : vector<4x112xf32>
    %360 = arith.subf %358, %359 : vector<4x112xf32>
    %cst_158 = arith.constant 0.918938517 : f32
    %361 = vector.broadcast %cst_158 : f32 to vector<4x112xf32>
    %362 = arith.subf %360, %361 : vector<4x112xf32>
    %c4_159 = arith.constant 4 : index
    %c0_160 = arith.constant 0 : index
    %c0_161 = arith.constant 0 : index
    %363 = vector.load %arg8[%c4_159, %c0_160, %c0_161] : memref<5x1x112xf32, #tpu.memory_space<vmem>>, vector<1x1x112xf32>
    %364 = vector.shape_cast %363 : vector<1x1x112xf32> to vector<1x112xf32>
    %365 = vector.broadcast %364 : vector<1x112xf32> to vector<4x112xf32>
    %366 = arith.mulf %362, %365 : vector<4x112xf32>
    %367 = vector.shape_cast %366 : vector<4x112xf32> to vector<1x4x112xf32>
    %cst_162 = arith.constant dense<0.000000e+00> : vector<1xf32>
    %368 = vector.multi_reduction <add>, %367, %cst_162 [1, 2] : vector<1x4x112xf32> to vector<1xf32>
    %369 = vector.shape_cast %368 : vector<1xf32> to vector<1x1x1xf32>
    %370 = vector.extract %369[0, 0, 0] : f32 from vector<1x1x1xf32>
    %371 = vector.broadcast %370 : f32 to vector<1x1xf32>
    %cst_163 = arith.constant 0.0833333358 : f32
    %372 = vector.broadcast %cst_163 : f32 to vector<1x1xf32>
    %373 = arith.mulf %372, %371 : vector<1x1xf32>
    %374 = arith.addf %322, %373 : vector<1x1xf32>
    %cst_164 = arith.constant 5.000000e-02 : f32
    %375 = vector.broadcast %cst_164 : f32 to vector<1x1xf32>
    %376 = arith.mulf %374, %375 : vector<1x1xf32>
    %c0_165 = arith.constant 0 : index
    %c0_166 = arith.constant 0 : index
    %377 = vector.load %arg20[%c0_165, %c0_166] : memref<1x1xf32, #tpu.memory_space<vmem>>, vector<1x1xf32>
    tpu.vector_store %arg20[%c0_165, %c0_166], %376 {strides = array<i32>} : memref<1x1xf32, #tpu.memory_space<vmem>>, vector<1x1xf32>,
    return
  }
}

</mosaic_0001>

<bundles_post_ra>
// kernel: tile.9
= control target key start
LH: loop header
LB: loop body
LE: loop exit
PB: predicated region body
PF: predicated region fallthrough
CT: control target
= control target key end

     0   :  { %vm3_vm0 = vcmask 261120   ;;  %s60_s0 = inlined_call_operand.vmem [shape: f32[2,10,32], index: 0, kind: input, shape index: {}]   ;;  %s61_s1 = inlined_call_operand.vmem [shape: f32[20,32], index: 1, kind: output, shape index: {}]  }
   0x1   :  { %v2_v0 = vld [vmem:[%s60_s0] sm:$0xff]   ;;  %v20_v1 = vld [vmem:[%s60_s0 + $0x8] sm:$0x3]   ;;  %v22_v2 = vld [vmem:[%s60_s0 + $0x10] sm:$0xff]  }
   0x2   :  { %4 = vst.msk [vmem:[%s61_s1] sm:$0xff] %vm3_vm0, %v2_v0   ;;  %21 = vst.msk [vmem:[%s61_s1 + $0x8] sm:$0x3] %vm3_vm0, %v20_v1   ;;  %v24_v3 = vld [vmem:[%s60_s0 + $0x18] sm:$0x3]  }
   0x3   :  { %23 = vst.msk [vmem:[%s61_s1 + $0xa] sm:$0xff] %vm3_vm0, %v22_v2   ;;  %25 = vst.msk [vmem:[%s61_s1 + $0x12] sm:$0x3] %vm3_vm0, %v24_v3  }

// kernel: _lambda_.3
= control target key start
LH: loop header
LB: loop body
LE: loop exit
PB: predicated region body
PF: predicated region fallthrough
CT: control target
= control target key end

     0   :  { %v283_v0 = vmov 0   ;;  %vm144_vm0 = vcmask 670720   ;;  %vm151_vm1 = vcmask 1040384   ;;  %vm206_vm2 = vcmask 130048   ;;  %s401_s1 = inlined_call_operand.vmem [shape: bf16[210,16], index: 1, kind: input, shape index: {}]   ;;  %s402_s0 = inlined_call_operand.vmem [shape: bf16[20,210], index: 0, kind: input, shape index: {}]   ;;  %s403_s2 = inlined_call_operand.vmem [shape: f32[20,16], index: 2, kind: input, shape index: {}]   ;;  %s404_s3 = inlined_call_operand.vmem [shape: f32[20,16], index: 3, kind: output, shape index: {}]  }
   0x1   :  { %155 = vmatprep.subr.bf16.mxu0 %v283_v0  ;;  %235 = vmatprep.subr.bf16.mxu1 %v283_v0  ;;  %v264_v1 = vld [vmem:[%s401_s1 + $0x38] sm:$0xff]   ;;  %v265_v2 = vld [vmem:[%s401_s1 + $0x30] sm:$0xff]   ;;  %v266_v3 = vld [vmem:[%s401_s1 + $0x28] sm:$0xff]   ;;  %vm209_vm3 = vcmask 125952  }
   0x2   :  { %156 = vmatpush1.bf16.msra.mxu0 %v264_v1  ;;  %249 = vmatpush1.bf16.msra.mxu1 %v264_v1  ;;  %v267_v4 = vld [vmem:[%s401_s1 + $0x20] sm:$0xff]   ;;  %v268_v5 = vld [vmem:[%s401_s1 + $0x18] sm:$0xff]   ;;  %v17_v7 = vld [vmem:[%s402_s0 + $0x10] sm:$0x33] }
   0x3   :  { %157 = vmatprep.subr.bf16.mxu0 %v283_v0  ;;  %236 = vmatprep.subr.bf16.mxu1 %v283_v0  ;;  %v280_v6 = vld [vmem:[%s402_s0 + $0x4] ss:$8 sps:$4 sm:$0xff]   ;;  %v218_v8 = vcombine.high %v17_v7, %v17_v7  ;;  %v269_v9 = vld [vmem:[%s401_s1 + $0x10] sm:$0xff]   ;;  %v272_v12 = vld [vmem:[%s401_s1 + $0x68] ss:$0 sps:$4 sm:$0x11]   ;;  %v217_v20 = vcombine.low %v17_v7, %v17_v7 }
   0x4   :  { %233 = vmatprep.mubr.msk.bf16.mxu0 %vm144_vm0, %v280_v6  ;;  %v270_v10 = vld [vmem:[%s401_s1 + $0x8] sm:$0xff]   ;;  %v271_v11 = vld [vmem:[%s401_s1] sm:$0xff]   ;;  %v153_v13 = vsel %vm151_vm1, %v272_v12, 0  ;;  %v274_v15 = vld [vmem:[%s401_s1 + $0x58] sm:$0xff]  }
   0x5   :  { %234 = vmatprep.mubr.msk.bf16.mxu1 %vm144_vm0, %v218_v8  ;;  %v273_v14 = vld [vmem:[%s401_s1 + $0x60] sm:$0xff]   ;;  %v275_v16 = vld [vmem:[%s401_s1 + $0x50] sm:$0xff]   ;;  %v276_v17 = vld [vmem:[%s401_s1 + $0x48] sm:$0xff]  }
   0x6   :  { %158 = vmatpush1.bf16.msra.mxu0 %v265_v2  ;;  %250 = vmatpush1.bf16.msra.mxu1 %v265_v2  ;;  %v277_v18 = vld [vmem:[%s401_s1 + $0x40] sm:$0xff]   ;;  %v47_v22 = vld [vmem:[%s403_s2 + $0x10] sm:$0xf]  ;;  %v46_v29 = vld [vmem:[%s403_s2 + $0x8] sm:$0xff] }
   0x7   :  { %159 = vmatprep.subr.bf16.mxu0 %v283_v0  ;;  %237 = vmatprep.subr.bf16.mxu1 %v283_v0  ;;  %v278_v19 = vld [vmem:[%s402_s0] ss:$8 sps:$4 sm:$0xff]  }
   0x8   :  { %v45_v21 = vld [vmem:[%s403_s2] sm:$0xff] }
   0xa   :  { %160 = vmatpush1.bf16.msra.mxu0 %v266_v3  ;;  %251 = vmatpush1.bf16.msra.mxu1 %v266_v3 }
   0xb   :  { %161 = vmatprep.subr.bf16.mxu0 %v283_v0  ;;  %238 = vmatprep.subr.bf16.mxu1 %v283_v0 }
   0xe   :  { %162 = vmatpush1.bf16.msra.mxu0 %v267_v4  ;;  %252 = vmatpush1.bf16.msra.mxu1 %v267_v4 }
   0xf   :  { %163 = vmatprep.subr.bf16.mxu0 %v283_v0  ;;  %239 = vmatprep.subr.bf16.mxu1 %v283_v0 }
  0x12   :  { %164 = vmatpush1.bf16.msra.mxu0 %v268_v5  ;;  %253 = vmatpush1.bf16.msra.mxu1 %v268_v5 }
  0x13   :  { %165 = vmatprep.subr.bf16.mxu0 %v283_v0  ;;  %240 = vmatprep.subr.bf16.mxu1 %v283_v0 }
  0x16   :  { %166 = vmatpush1.bf16.msra.mxu0 %v269_v9  ;;  %254 = vmatpush1.bf16.msra.mxu1 %v269_v9 }
  0x17   :  { %167 = vmatprep.subr.bf16.mxu0 %v283_v0  ;;  %241 = vmatprep.subr.bf16.mxu1 %v283_v0 }
  0x1a   :  { %168 = vmatpush1.bf16.msra.mxu0 %v270_v10  ;;  %255 = vmatpush1.bf16.msra.mxu1 %v270_v10 }
  0x1b   :  { %169 = vmatprep.subr.bf16.mxu0 %v283_v0  ;;  %242 = vmatprep.subr.bf16.mxu1 %v283_v0 }
  0x1e   :  { %170 = vmatpush1.bf16.msra.mxu0 %v271_v11  ;;  %256 = vmatpush1.bf16.msra.mxu1 %v271_v11 }
  0x1f   :  { %175 = vmatprep.subr.bf16.mxu0 %v283_v0  ;;  %243 = vmatprep.subr.bf16.mxu1 %v283_v0 }
  0x22   :  { %176 = vmatpush2.bf16.msra.mxu0 %v153_v13  ;;  %257 = vmatpush2.bf16.msra.mxu1 %v153_v13 }
  0x23   :  { %177 = vmatprep.subr.bf16.mxu0 %v283_v0  ;;  %244 = vmatprep.subr.bf16.mxu1 %v283_v0 }
  0x26   :  { %178 = vmatpush2.bf16.msra.mxu0 %v273_v14  ;;  %258 = vmatpush2.bf16.msra.mxu1 %v273_v14 }
  0x27   :  { %179 = vmatprep.subr.bf16.mxu0 %v283_v0  ;;  %245 = vmatprep.subr.bf16.mxu1 %v283_v0 }
  0x2a   :  { %180 = vmatpush2.bf16.msra.mxu0 %v274_v15  ;;  %259 = vmatpush2.bf16.msra.mxu1 %v274_v15 }
  0x2b   :  { %181 = vmatprep.subr.bf16.mxu0 %v283_v0  ;;  %246 = vmatprep.subr.bf16.mxu1 %v283_v0 }
  0x2e   :  { %182 = vmatpush2.bf16.msra.mxu0 %v275_v16  ;;  %260 = vmatpush2.bf16.msra.mxu1 %v275_v16 }
  0x2f   :  { %183 = vmatprep.subr.bf16.mxu0 %v283_v0  ;;  %247 = vmatprep.subr.bf16.mxu1 %v283_v0 }
  0x32   :  { %184 = vmatpush2.bf16.msra.mxu0 %v276_v17  ;;  %261 = vmatpush2.bf16.msra.mxu1 %v276_v17 }
  0x33   :  { %185 = vmatprep.subr.bf16.mxu0 %v283_v0  ;;  %248 = vmatprep.subr.bf16.mxu1 %v283_v0 }
  0x36   :  { %186 = vmatpush2.bf16.msra.mxu0 %v277_v18  ;;  %262 = vmatpush2.bf16.msra.mxu1 %v277_v18 }
  0x39   :  { %188 = vmatmul.mubr.bf16.vlgmr.msra.gmra.mxu0 %v278_v19  ;;  %196 = vmatmul.mubr.bf16.vlgmr.msra.gmra.mxu1 %v217_v20 }
  0xf9   :  { %v189_v23 = vpop.f32.mrf.mxu0  ;;  %v197_v24 = vpop.f32.mrf.mxu1 }
  0xfa   :  { %v190_v25 = vadd.f32 %v189_v23, %v45_v21  ;;  %v198_v26 = vadd.f32 %v197_v24, %v47_v22 }
  0xfb   :  { %v191_v27 = vpop.f32.mrf.mxu0  ;;  %v199_v28 = vpop.f32.mrf.mxu1 }
  0xfc   :  { %v203_v30 = vmax.f32 %v190_v25, 0.0  ;;  %v205_v31 = vmax.f32 %v198_v26, 0.0 }
  0xfd   :  { %v192_v32 = vpop.f32.mrf.mxu0  ;;  %v200_v33 = vpop.f32.mrf.mxu1 }
  0xfe   :  { %207 = vst.msk [vmem:[%s404_s3] sm:$0xff] %vm206_vm2, %v203_v30  ;;  %v193_v34 = vadd.f32 %v192_v32, %v46_v29 }
  0xff   :  { %210 = vst.msk [vmem:[%s404_s3 + $0x10] sm:$0xf] %vm209_vm3, %v205_v31  ;;  %v194_v35 = vpop.f32.mrf.mxu0  ;;  %v201_v36 = vpop.f32.mrf.mxu1 }
 0x100   :  { %v204_v37 = vmax.f32 %v193_v34, 0.0 }
 0x102   :  { %208 = vst.msk [vmem:[%s404_s3 + $0x8] sm:$0xff] %vm206_vm2, %v204_v37 }

// kernel: _lambda_.4
= control target key start
LH: loop header
LB: loop body
LE: loop exit
PB: predicated region body
PF: predicated region fallthrough
CT: control target
= control target key end

     0   :  { %s1688_s18 = smov 0   ;;  %s1993_s0 = inlined_call_operand.vmem [shape: f32[24,64], index: 0, kind: input, shape index: {}]   ;;  %s1994_s1 = inlined_call_operand.vmem [shape: f32[4,24,24], index: 1, kind: input, shape index: {}]   ;;  %s1995_s2 = inlined_call_operand.vmem [shape: bf16[4,3,64,64], index: 2, kind: input, shape index: {}]   ;;  %s1996_s3 = inlined_call_operand.vmem [shape: bf16[4,128,256], index: 3, kind: input, shape index: {}]   ;;  %s1997_s4 = inlined_call_operand.vmem [shape: f32[4,1,256], index: 4, kind: input, shape index: {}]   ;;  %s1998_s5 = inlined_call_operand.vmem [shape: f32[4,24,64], index: 5, kind: output, shape index: {}]  }
   0x1 LB: > { %s1368_s19 = sadd.s32 4294967295, %s1654_s18   ;;  %p1372_p0 = scmp.ge.s32.totalorder %s1654_s18, 1  ;;  %s1654_s18 = sphi %s1688_s18, %s15_s18  }
   0x2   : > { %p216_p1 = scmp.lt.s32.totalorder %s1654_s18, 5 }
   0x4   : > { %p217_p2 = pnand %p1372_p0, %p216_p1 }
   0x5   : > { %p258_p3 = scmp.lt.s32.totalorder (!%p217_p2), %s1368_s19, 3  ;;  %s1656_s13 = smov (!%p217_p2), 64  }
   0x6   : > { %220 = sbr.rel (%p217_p2) target bundleno = 2980 (0xba4), region = 40 }
   0xb   : > { %v283_v0 = vld [vmem:[%s1993_s0] sm:$0xff]  ;;  %v1702_v1 = vld [vmem:[%s1993_s0 + $0x8] sm:$0xff]  ;;  %vm361_vm0 = vcmask 523264   ;;  %s2000_s19 = smov (!%p258_p3, %s1368_s19), 3  ;;  %v1721_v7 = vld [vmem:[%s1993_s0 + $0x10] sm:$0xff]  ;;  %vm289_vm1 = vcmask 195584   ;;  %v496_v63 = vlaneseq }
   0xc   : > { %v327_v2 = vpack.c.bf16 %v1702_v1, %v283_v0  ;;  %s1541_s24 = smul.u32 96, %s2000_s19  ;;  %v328_v8 = vpack.c.bf16 %v1721_v7, %v1721_v7  ;;  %s1446_s9 = sshll.u32 %s2000_s19, 7  ;;  %vm424_vm2 = vcmask 1043456   ;;  %v1657_v40 = vmov 0  }
   0xd   : > { %s1540_s30 = smul.u32 24, %s2000_s19  ;;  %s1742_s12 = scalar_lea.vmem %s1996_s3, %s1446_s9  ;;  %618 = vmatprep.mubr.bf16.mxu1 %v1657_v40 }
   0xe   : > { %1485 = vmatprep.mubr.msk.bf16.mxu0 %vm361_vm0, %v327_v2  ;;  %s1712_s27 = scalar_lea.vmem %s1995_s2, %s1541_s24  ;;  %v1746_v16 = vld [vmem:[%s1742_s12 + $0x74] ss:$8 sps:$4 sm:$0xff]   ;;  %v1749_v17 = vld [vmem:[%s1742_s12 + $0x70] ss:$8 sps:$4 sm:$0xff]   ;;  %v1753_v18 = vld [vmem:[%s1742_s12 + $0x64] ss:$8 sps:$4 sm:$0xff]  }
   0xf   : > { %v1552_v3 = vld [vmem:[%s1712_s27 + $0x18] sm:$0xff]   ;;  %v1553_v4 = vld [vmem:[%s1712_s27 + $0x10] sm:$0xff]   ;;  %v1554_v5 = vld [vmem:[%s1712_s27 + $0x8] sm:$0xff]   ;;  %s262_s8 = scalar_lea.vmem %s1994_s1, %s1540_s30  ;;  %586 = vmatprep.subr.bf16.mxu1 %v1746_v16  ;;  %s1377_s14 = sshll.u32 %s2000_s19, 1 }
  0x10   : > { %1477 = vmatprep.subr.bf16.mxu0 %v1552_v3  ;;  %v1555_v6 = vld [vmem:[%s1712_s27] sm:$0xff]   ;;  %v287_v10 = vld [vmem:[%s262_s8 + $0x8] sm:$0xff]  ;;  %v288_v12 = vld [vmem:[%s262_s8 + $0x10] sm:$0xff]  ;;  %587 = vmatpush1.bf16.msra.mxu1 %v1749_v17  ;;  %s276_s17 = scalar_lea.vmem %s1997_s4, %s1377_s14  ;;  %s281_s22 = scalar_lea.vmem %s1998_s5, %s1540_s30 }
  0x11   : > { %1478 = vmatpush3.bf16.msra.mxu0 %v1552_v3  ;;  %v286_v9 = vld [vmem:[%s262_s8] sm:$0xff]  ;;  %v296_v13 = vsel %vm289_vm1, %v288_v12, 0.0  ;;  %v293_v15 = vsel %vm289_vm1, %v287_v10, 0.0  ;;  %588 = vmatprep.subr.bf16.mxu1 %v1753_v18  ;;  %v1761_v20 = vld [vmem:[%s1742_s12 + $0x54] ss:$8 sps:$4 sm:$0xff]   ;;  %v1790_v33 = vpack.c.bf16 %v288_v12, %v288_v12 }
  0x12   : > { %1479 = vmatprep.subr.bf16.mxu0 %v1553_v4  ;;  %v1732_v11 = vpack.c.bf16 %v287_v10, %v286_v9  ;;  %v290_v14 = vsel %vm289_vm1, %v286_v9, 0.0  ;;  %297 = vadd.xlane.f32.xlu1 %v296_v13  ;;  %v1758_v19 = vld [vmem:[%s1742_s12 + $0x60] ss:$8 sps:$4 sm:$0xff]   ;;  %v1765_v21 = vld [vmem:[%s1742_s12 + $0x50] ss:$8 sps:$4 sm:$0xff]  }
  0x13   : > { %291 = vadd.xlane.f32.xlu0 %v290_v14  ;;  %v1769_v22 = vld [vmem:[%s1742_s12 + $0x44] ss:$8 sps:$4 sm:$0xff]   ;;  %v1774_v23 = vld [vmem:[%s1742_s12 + $0x40] ss:$8 sps:$4 sm:$0xff]   ;;  %v1778_v24 = vld [vmem:[%s1742_s12 + $0x34] ss:$8 sps:$4 sm:$0xff]  }
  0x14   : > { %589 = vmatpush1.bf16.msra.mxu1 %v1758_v19  ;;  %v1782_v25 = vld [vmem:[%s1742_s12 + $0x30] ss:$8 sps:$4 sm:$0xff]   ;;  %v1795_v34 = vld [vmem:[%s1742_s12 + $0x24] ss:$8 sps:$4 sm:$0xff]   ;;  %v1798_v35 = vld [vmem:[%s1742_s12 + $0x20] ss:$8 sps:$4 sm:$0xff]  }
  0x15   : > { %1480 = vmatpush3.bf16.msra.mxu0 %v1553_v4  ;;  %590 = vmatprep.subr.bf16.mxu1 %v1761_v20  ;;  %v1803_v36 = vld [vmem:[%s1742_s12 + $0x14] ss:$8 sps:$4 sm:$0xff]   ;;  %v1806_v37 = vld [vmem:[%s1742_s12 + $0x10] ss:$8 sps:$4 sm:$0xff]   ;;  %v1811_v38 = vld [vmem:[%s1742_s12 + $0x4] ss:$8 sps:$4 sm:$0xff]  }
  0x16   : > { %1481 = vmatprep.subr.bf16.mxu0 %v1554_v5  ;;  %v1814_v39 = vld [vmem:[%s1742_s12] ss:$8 sps:$4 sm:$0xff]  }
  0x17   : > { %294 = vadd.xlane.f32.xlu0 %v293_v15  ;;  %v326_v3 = vld [vmem:[%s276_s17] sm:$0x3] }
  0x18   : > { %591 = vmatpush1.bf16.msra.mxu1 %v1765_v21 }
  0x19   : > { %1482 = vmatpush3.bf16.msra.mxu0 %v1554_v5  ;;  %592 = vmatprep.subr.bf16.mxu1 %v1769_v22 }
  0x1a   : > { %1483 = vmatprep.subr.bf16.mxu0 %v1555_v6 }
  0x1c   : > { %593 = vmatpush1.bf16.msra.mxu1 %v1774_v23 }
  0x1d   : > { %1484 = vmatpush3.bf16.msra.mxu0 %v1555_v6  ;;  %594 = vmatprep.subr.bf16.mxu1 %v1778_v24 }
  0x20   : > { %1486 = vmatmul.mubr.msk.bf16.vlgmr.msra.gmra.mxu0 %vm361_vm0, %v328_v8  ;;  %595 = vmatpush1.bf16.msra.mxu1 %v1782_v25 }
  0x21   : > { %1493 = vmatprep.mubr.msk.bf16.mxu0 %vm289_vm1, %v1732_v11  ;;  %596 = vmatprep.subr.bf16.mxu1 %v1795_v34 }
  0x23   : > { %483 = vrot.lane.b32.xlu1 %v327_v2, %s1656_s13 }
  0x24   : > { %597 = vmatpush1.bf16.msra.mxu1 %v1798_v35 }
  0x25   : > { %598 = vmatprep.subr.bf16.mxu1 %v1803_v36 }
  0x28   : > { %599 = vmatpush1.bf16.msra.mxu1 %v1806_v37 }
  0x29   : > { %600 = vmatprep.subr.bf16.mxu1 %v1811_v38 }
  0x2c   : > { %601 = vmatpush1.bf16.msra.mxu1 %v1814_v39 }
  0x2d   : > { %485 = vrot.lane.b32.xlu0 %v328_v8, %s1656_s13 }
  0x31   : > { %697 = vrot.lane.b32.xlu0 %v283_v0, %s1656_s13  ;;  %v497_v0 = vshrl.u32 %v496_v63, 7 }
  0x33   : > { %v502_v2 = vsub.s32 1, %v497_v0 }
  0x35   : > { %v1835_v4 = vrot.slane %v326_v3, %v502_v2  ;;  %v1580_v2 = vld [vmem:[%s1712_s27 + $0x38] sm:$0xff]  }
  0x9b   : > { %v298_v45 = vpop.xlane.xlu1 %297 }
  0x9c   : > { %v292_v41 = vpop.xlane.xlu0 %291  ;;  %v301_v46 = vmax.f32 %v298_v45, 1.0 }
  0x9d   : > { %v299_v43 = vmax.f32 %v292_v41, 1.0 }
  0x9f   : > { %1588 = vrcp.f32 %v299_v43  ;;  %v484_v56 = vpop.permute.xlu1 %483 }
  0xa0   : > { %v295_v42 = vpop.xlane.xlu0 %294 }
  0xa1   : > { %v300_v44 = vmax.f32 %v295_v42, 1.0 }
  0xa3   : > { %1590 = vrcp.f32 %v300_v44 }
  0xa4   : > { %1592 = vrcp.f32 %v301_v46  ;;  %v486_v61 = vpop.permute.xlu0 %485 }
  0xac   : > { %v1819_v49 = vpop.eup %1588 }
  0xb0   : > { %v1821_v50 = vpop.eup %1590 }
  0xb1   : > { %v1825_v55 = vpop.eup %1592 }
  0xe0   : > { %v1487_v26 = vpop.f32.mrf.mxu0 }
  0xe1   : > { %v417_v27 = vpack.c.bf16 %v1487_v26, %v1487_v26 }
  0xe2   : > { %v402_v28 = vpop.f32.mrf.mxu0 }
  0xe3   : > { %v426_v29 = vsel %vm424_vm2, %v417_v27, 0  ;;  %1537 = vmatprep.subr.msk.bf16.mxu0 %vm424_vm2, %v417_v27 }
  0xe4   : > { %v1488_v30 = vpop.f32.mrf.mxu0  ;;  %1490 = vmatpush3.bf16.msra.mxu0 %v426_v29 }
  0xe6   : > { %v405_v31 = vpop.f32.mrf.mxu0 }
  0xe7   : > { %v416_v32 = vpack.c.bf16 %v405_v31, %v402_v28  ;;  %v498_v28 = vsub.s32 0, %v497_v0 }
  0xe9   : > { %1491 = vmatprep.subr.bf16.mxu0 %v416_v32  ;;  %v1845_v29 = vrot.slane %v326_v3, %v498_v28  ;;  %v1581_v3 = vld [vmem:[%s1712_s27 + $0x30] sm:$0xff]  }
  0xea   : > { %1492 = vmatpush3.bf16.msra.mxu0 %v416_v32 }
  0xeb   : > { %1497 = vmatprep.subr.bf16.mxu0 %v1580_v2 }
  0xed   : > { %1494 = vmatmul.mubr.msk.bf16.vlgmr.msra.gmra.mxu0 %vm289_vm1, %v1790_v33 }
  0xee   : > { %1498 = vmatpush3.bf16.msra.mxu0 %v1580_v2 }
  0xef   : > { %1499 = vmatprep.subr.bf16.mxu0 %v1581_v3 }
  0xf2   : > { %1500 = vmatpush3.bf16.msra.mxu0 %v1581_v3 }
 0x1ad   : > { %v1495_v47 = vpop.f32.mrf.mxu0 }
 0x1ae   : > { %v478_v58 = vmul.f32 %v1825_v55, %v1495_v47 }
 0x1af   : > { %v462_v48 = vpop.f32.mrf.mxu0 }
 0x1b0   : > { %v476_v53 = vmul.f32 %v1819_v49, %v462_v48  ;;  %v480_v60 = vpack.c.bf16 %v478_v58, %v478_v58 }
 0x1b1   : > { %v1496_v51 = vpop.f32.mrf.mxu0 }
 0x1b2   : > { %v493_v62 = vsel %vm361_vm0, %v480_v60, %v486_v61 }
 0x1b3   : > { %v465_v52 = vpop.f32.mrf.mxu0 }
 0x1b4   : > { %v477_v54 = vmul.f32 %v1821_v50, %v465_v52 }
 0x1b6   : > { %v479_v57 = vpack.c.bf16 %v477_v54, %v476_v53 }
 0x1b8   : > { %v489_v59 = vsel %vm361_vm0, %v479_v57, %v484_v56 }
 0x1b9   : > { %619 = vmatmul.mubr.bf16.vlgmr.msra.gmra.mxu1 %v489_v59 }
 0x1ba   : > { %628 = vmatprep.mubr.bf16.mxu1 %v1657_v40 }
 0x1c1   : > { %629 = vmatmul.mubr.bf16.gmra.mxu1 %v493_v62 }
 0x279   : > { %v620_v5 = vpop.f32.mrf.mxu1 }
 0x27a   : > { %v621_v30 = vadd.f32 %v620_v5, %v1845_v29 }
 0x27b   : > { %v622_v6 = vpop.f32.mrf.mxu1 }
 0x27c   : > { %v623_v8 = vadd.f32 %v622_v6, %v1835_v4  ;;  %v1403_v31 = vmul.f32 -1.442695, %v621_v30  ;;  %v1582_v6 = vld [vmem:[%s1712_s27 + $0x28] sm:$0xff]  }
 0x27d   : > { %v624_v9 = vpop.f32.mrf.mxu1  ;;  %1501 = vmatprep.subr.bf16.mxu0 %v1582_v6 }
 0x27e   : > { %658 = vrot.lane.b32.xlu1 %v623_v8, %s1656_s13  ;;  %v625_v32 = vadd.f32 %v624_v9, %v1845_v29  ;;  %1594 = vpow2.f32 %v1403_v31  ;;  %1502 = vmatpush3.bf16.msra.mxu0 %v1582_v6  ;;  %v698_v9 = vpop.permute.xlu0 %697 }
 0x27f   : > { %v626_v10 = vpop.f32.mrf.mxu1 }
 0x280   : > { %v627_v12 = vadd.f32 %v626_v10, %v1835_v4  ;;  %v1404_v41 = vmul.f32 -1.442695, %v625_v32  ;;  %v1583_v10 = vld [vmem:[%s1712_s27 + $0x20] sm:$0xff]  }
 0x281   : > { %v630_v13 = vpop.f32.mrf.mxu1  ;;  %1503 = vmatprep.subr.bf16.mxu0 %v1583_v10 }
 0x282   : > { %660 = vrot.lane.b32.xlu1 %v627_v12, %s1656_s13  ;;  %v631_v42 = vadd.f32 %v630_v13, %v1845_v29  ;;  %1596 = vpow2.f32 %v1404_v41  ;;  %1504 = vmatpush3.bf16.msra.mxu0 %v1583_v10 }
 0x283   : > { %v632_v14 = vpop.f32.mrf.mxu1 }
 0x284   : > { %v633_v15 = vadd.f32 %v632_v14, %v1835_v4  ;;  %v1405_v43 = vmul.f32 -1.442695, %v631_v42 }
 0x285   : > { %v634_v26 = vpop.f32.mrf.mxu1 }
 0x286   : > { %662 = vrot.lane.b32.xlu1 %v633_v15, %s1656_s13  ;;  %1598 = vpow2.f32 %v1405_v43 }
 0x287   : > { %v635_v27 = vpop.f32.mrf.mxu1 }
 0x28a   : > { %699 = vrot.lane.b32.xlu1 %v1702_v1, %s1656_s13 }
 0x28b   : > { %v1595_v44 = vpop.eup %1594 }
 0x28c   : > { %v646_v45 = vadd.f32 1.0, %v1595_v44 }
 0x28e   : > { %1600 = vrcp.f32 %v646_v45 }
 0x28f   : > { %v1597_v46 = vpop.eup %1596 }
 0x290   : > { %v647_v1 = vadd.f32 1.0, %v1597_v46 }
 0x292   : > { %1602 = vrcp.f32 %v647_v1 }
 0x293   : > { %v1599_v47 = vpop.eup %1598 }
 0x294   : > { %v648_v48 = vadd.f32 1.0, %v1599_v47 }
 0x296   : > { %1604 = vrcp.f32 %v648_v48 }
 0x29b   : > { %v1601_v51 = vpop.eup %1600 }
 0x29c   : > { %v676_v14 = vsub.f32 1.0, %v1601_v51  ;;  %v706_v28 = vmul.f32 %v1601_v51, %v698_v9 }
 0x29f   : > { %v1603_v56 = vpop.eup %1602 }
 0x2a0   : > { %v677_v26 = vsub.f32 1.0, %v1603_v56 }
 0x2a3   : > { %v1605_v60 = vpop.eup %1604 }
 0x2a4   : > { %v678_v41 = vsub.f32 1.0, %v1605_v60 }
 0x2f0   : > { %v659_v52 = vpop.permute.xlu1 %658 }
 0x2f1   : > { %v667_v53 = vmul.f32 %v1601_v51, %v659_v52 }
 0x2f3   : > { %v670_v54 = vadd.f32 %v667_v53, %v623_v8 }
 0x2f4   : > { %v661_v57 = vpop.permute.xlu1 %660 }
 0x2f5   : > { %1606 = vtanh.f32 %v670_v54  ;;  %v668_v58 = vmul.f32 %v1603_v56, %v661_v57 }
 0x2f7   : > { %v671_v59 = vadd.f32 %v668_v58, %v627_v12 }
 0x2f8   : > { %v663_v61 = vpop.permute.xlu1 %662 }
 0x2f9   : > { %1608 = vtanh.f32 %v671_v59  ;;  %v669_v62 = vmul.f32 %v1605_v60, %v663_v61 }
 0x2fb   : > { %v672_v63 = vadd.f32 %v669_v62, %v633_v15 }
 0x2fc   : > { %v700_v12 = vpop.permute.xlu1 %699 }
 0x2fd   : > { %1610 = vtanh.f32 %v672_v63  ;;  %v707_v30 = vmul.f32 %v1603_v56, %v700_v12 }
 0x302   : > { %v1607_v0 = vpop.eup %1606 }
 0x303   : > { %682 = vrot.lane.b32.xlu0 %v1607_v0, %s1656_s13 }
 0x306   : > { %v1609_v5 = vpop.eup %1608 }
 0x307   : > { %684 = vrot.lane.b32.xlu1 %v1609_v5, %s1656_s13 }
 0x30a   : > { %v1611_v8 = vpop.eup %1610 }
 0x30b   : > { %701 = vrot.lane.b32.xlu1 %v1721_v7, %s1656_s13  ;;  %686 = vrot.lane.b32.xlu0 %v1611_v8, %s1656_s13 }
 0x375   : > { %v683_v13 = vpop.permute.xlu0 %682 }
 0x376   : > { %v691_v15 = vmul.f32 %v683_v13, %v676_v14 }
 0x378   : > { %v1859_v32 = vadd.f32 %v706_v28, %v691_v15 }
 0x379   : > { %v685_v27 = vpop.permute.xlu1 %684 }
 0x37a   : > { %v692_v31 = vmul.f32 %v685_v27, %v677_v26 }
 0x37c   : > { %v1861_v7 = vadd.f32 %v707_v30, %v692_v31 }
 0x37d   : > { %v702_v42 = vpop.permute.xlu1 %701  ;;  %v687_v43 = vpop.permute.xlu0 %686 }
 0x37e   : > { %v708_v44 = vmul.f32 %v1605_v60, %v702_v42  ;;  %v693_v45 = vmul.f32 %v687_v43, %v678_v41  ;;  %v712_v46 = vpack.c.bf16 %v1861_v7, %v1859_v32 }
 0x380   : > { %v1865_v1 = vadd.f32 %v708_v44, %v693_v45  ;;  %725 = vrot.lane.b32.xlu0 %v712_v46, %s1656_s13 }
 0x382   : > { %v713_v47 = vpack.c.bf16 %v1865_v1, %v1865_v1 }
 0x384   : > { %727 = vrot.lane.b32.xlu1 %v713_v47, %s1656_s13 }
 0x3f2   : > { %v726_v48 = vpop.permute.xlu0 %725 }
 0x3f3   : > { %1505 = vmatprep.mubr.msk.bf16.mxu0 %vm361_vm0, %v726_v48 }
 0x3f6   : > { %v728_v51 = vpop.permute.xlu1 %727 }
 0x3f7   : > { %1506 = vmatmul.mubr.msk.bf16.vlgmr.msra.gmra.mxu0 %vm361_vm0, %v728_v51 }
 0x3f8   : > { %1513 = vmatprep.mubr.msk.bf16.mxu0 %vm289_vm1, %v1732_v11 }
 0x4b7   : > { %v1507_v52 = vpop.f32.mrf.mxu0 }
 0x4b8   : > { %v808_v53 = vpack.c.bf16 %v1507_v52, %v1507_v52 }
 0x4b9   : > { %v793_v54 = vpop.f32.mrf.mxu0 }
 0x4ba   : > { %v810_v56 = vsel %vm424_vm2, %v808_v53, 0  ;;  %1538 = vmatprep.subr.msk.bf16.mxu0 %vm424_vm2, %v808_v53 }
 0x4bb   : > { %v1508_v57 = vpop.f32.mrf.mxu0  ;;  %1510 = vmatpush3.bf16.msra.mxu0 %v810_v56 }
 0x4bd   : > { %v796_v58 = vpop.f32.mrf.mxu0 }
 0x4be   : > { %v807_v59 = vpack.c.bf16 %v796_v58, %v793_v54 }
 0x4c0   : > { %1511 = vmatprep.subr.bf16.mxu0 %v807_v59 }
 0x4c1   : > { %1512 = vmatpush3.bf16.msra.mxu0 %v807_v59 }
 0x4c2   : > { %873 = vmatprep.subr.bf16.mxu0 %v1746_v16 }
 0x4c4   : > { %1514 = vmatmul.mubr.msk.bf16.vlgmr.msra.gmra.mxu0 %vm289_vm1, %v1790_v33 }
 0x4c5   : > { %874 = vmatpush1.bf16.msra.mxu0 %v1749_v17  ;;  %905 = vmatprep.mubr.bf16.mxu0 %v1657_v40 }
 0x4c6   : > { %875 = vmatprep.subr.bf16.mxu0 %v1753_v18 }
 0x4c9   : > { %876 = vmatpush1.bf16.msra.mxu0 %v1758_v19 }
 0x4ca   : > { %877 = vmatprep.subr.bf16.mxu0 %v1761_v20 }
 0x4cd   : > { %878 = vmatpush1.bf16.msra.mxu0 %v1765_v21 }
 0x4ce   : > { %879 = vmatprep.subr.bf16.mxu0 %v1769_v22 }
 0x4d1   : > { %880 = vmatpush1.bf16.msra.mxu0 %v1774_v23 }
 0x4d2   : > { %881 = vmatprep.subr.bf16.mxu0 %v1778_v24 }
 0x4d5   : > { %882 = vmatpush1.bf16.msra.mxu0 %v1782_v25 }
 0x4d6   : > { %883 = vmatprep.subr.bf16.mxu0 %v1795_v34 }
 0x4d9   : > { %884 = vmatpush1.bf16.msra.mxu0 %v1798_v35 }
 0x4da   : > { %885 = vmatprep.subr.bf16.mxu0 %v1803_v36 }
 0x4dd   : > { %886 = vmatpush1.bf16.msra.mxu0 %v1806_v37 }
 0x4de   : > { %887 = vmatprep.subr.bf16.mxu0 %v1811_v38 }
 0x4e1   : > { %888 = vmatpush1.bf16.msra.mxu0 %v1814_v39 }
 0x584   : > { %v1515_v60 = vpop.f32.mrf.mxu0 }
 0x585   : > { %v862_v5 = vmul.f32 %v1825_v55, %v1515_v60 }
 0x586   : > { %v846_v61 = vpop.f32.mrf.mxu0 }
 0x587   : > { %v860_v0 = vmul.f32 %v1819_v49, %v846_v61  ;;  %v864_v8 = vpack.c.bf16 %v862_v5, %v862_v5 }
 0x588   : > { %v1516_v62 = vpop.f32.mrf.mxu0 }
 0x589   : > { %v871_v9 = vsel %vm361_vm0, %v864_v8, %v713_v47 }
 0x58a   : > { %v849_v63 = vpop.f32.mrf.mxu0 }
 0x58b   : > { %v861_v2 = vmul.f32 %v1821_v50, %v849_v63 }
 0x58d   : > { %v863_v3 = vpack.c.bf16 %v861_v2, %v860_v0 }
 0x58f   : > { %v867_v6 = vsel %vm361_vm0, %v863_v3, %v712_v46 }
 0x590   : > { %906 = vmatmul.mubr.bf16.vlgmr.msra.gmra.mxu0 %v867_v6 }
 0x591   : > { %915 = vmatprep.mubr.bf16.mxu0 %v1657_v40 }
 0x598   : > { %916 = vmatmul.mubr.bf16.gmra.mxu0 %v871_v9  ;;  %v1584_v9 = vld [vmem:[%s1712_s27 + $0x58] sm:$0xff]  }
 0x599   : > { %1517 = vmatprep.subr.bf16.mxu1 %v1584_v9 }
 0x59a   : > { %1518 = vmatpush3.bf16.msra.mxu1 %v1584_v9 }
 0x650   : > { %v907_v10 = vpop.f32.mrf.mxu0 }
 0x651   : > { %v908_v42 = vadd.f32 %v907_v10, %v1845_v29  ;;  %v1585_v10 = vld [vmem:[%s1712_s27 + $0x50] sm:$0xff]  }
 0x652   : > { %v909_v12 = vpop.f32.mrf.mxu0  ;;  %1519 = vmatprep.subr.bf16.mxu1 %v1585_v10 }
 0x653   : > { %v910_v13 = vadd.f32 %v909_v12, %v1835_v4  ;;  %v1422_v43 = vmul.f32 -1.442695, %v908_v42  ;;  %1520 = vmatpush3.bf16.msra.mxu1 %v1585_v10 }
 0x654   : > { %v911_v14 = vpop.f32.mrf.mxu0 }
 0x655   : > { %945 = vrot.lane.b32.xlu0 %v910_v13, %s1656_s13  ;;  %v912_v44 = vadd.f32 %v911_v14, %v1845_v29  ;;  %1612 = vpow2.f32 %v1422_v43 }
 0x656   : > { %v913_v15 = vpop.f32.mrf.mxu0 }
 0x657   : > { %v914_v26 = vadd.f32 %v913_v15, %v1835_v4  ;;  %v1423_v45 = vmul.f32 -1.442695, %v912_v44  ;;  %v1587_v15 = vld [vmem:[%s1712_s27 + $0x40] sm:$0xff]  }
 0x658   : > { %v917_v27 = vpop.f32.mrf.mxu0 }
 0x659   : > { %947 = vrot.lane.b32.xlu1 %v914_v26, %s1656_s13  ;;  %v918_v46 = vadd.f32 %v917_v27, %v1845_v29  ;;  %1614 = vpow2.f32 %v1423_v45 }
 0x65a   : > { %v919_v28 = vpop.f32.mrf.mxu0 }
 0x65b   : > { %v920_v30 = vadd.f32 %v919_v28, %v1835_v4  ;;  %v1424_v47 = vmul.f32 -1.442695, %v918_v46 }
 0x65c   : > { %v921_v31 = vpop.f32.mrf.mxu0 }
 0x65d   : > { %949 = vrot.lane.b32.xlu0 %v920_v30, %s1656_s13  ;;  %1616 = vpow2.f32 %v1424_v47 }
 0x65e   : > { %v922_v41 = vpop.f32.mrf.mxu0 }
 0x662   : > { %v1613_v48 = vpop.eup %1612 }
 0x663   : > { %v933_v51 = vadd.f32 1.0, %v1613_v48 }
 0x665   : > { %1618 = vrcp.f32 %v933_v51 }
 0x666   : > { %v1615_v52 = vpop.eup %1614 }
 0x667   : > { %v934_v53 = vadd.f32 1.0, %v1615_v52 }
 0x669   : > { %1620 = vrcp.f32 %v934_v53 }
 0x66a   : > { %v1617_v54 = vpop.eup %1616 }
 0x66b   : > { %v935_v56 = vadd.f32 1.0, %v1617_v54 }
 0x66d   : > { %1622 = vrcp.f32 %v935_v56 }
 0x672   : > { %v1619_v57 = vpop.eup %1618 }
 0x673   : > { %v963_v27 = vsub.f32 1.0, %v1619_v57  ;;  %v981_v41 = vmul.f32 %v1619_v57, %v1859_v32 }
 0x676   : > { %v1621_v61 = vpop.eup %1620 }
 0x677   : > { %v982_v42 = vmul.f32 %v1621_v61, %v1861_v7 }
 0x67a   : > { %v1623_v2 = vpop.eup %1622 }
 0x67b   : > { %v965_v46 = vsub.f32 1.0, %v1623_v2  ;;  %v983_v48 = vmul.f32 %v1623_v2, %v1865_v1 }
 0x6c7   : > { %v946_v58 = vpop.permute.xlu0 %945 }
 0x6c8   : > { %v954_v59 = vmul.f32 %v1619_v57, %v946_v58 }
 0x6ca   : > { %v957_v60 = vadd.f32 %v954_v59, %v910_v13  ;;  %v1586_v13 = vld [vmem:[%s1712_s27 + $0x48] sm:$0xff]  }
 0x6cb   : > { %v948_v62 = vpop.permute.xlu1 %947  ;;  %1521 = vmatprep.subr.bf16.mxu1 %v1586_v13 }
 0x6cc   : > { %1624 = vtanh.f32 %v957_v60  ;;  %v955_v63 = vmul.f32 %v1621_v61, %v948_v62  ;;  %1522 = vmatpush3.bf16.msra.mxu1 %v1586_v13 }
 0x6cd   : > { %1523 = vmatprep.subr.bf16.mxu1 %v1587_v15 }
 0x6ce   : > { %v958_v0 = vadd.f32 %v955_v63, %v914_v26 }
 0x6cf   : > { %v950_v3 = vpop.permute.xlu0 %949 }
 0x6d0   : > { %1626 = vtanh.f32 %v958_v0  ;;  %v956_v5 = vmul.f32 %v1623_v2, %v950_v3  ;;  %1524 = vmatpush3.bf16.msra.mxu1 %v1587_v15 }
 0x6d2   : > { %v959_v6 = vadd.f32 %v956_v5, %v920_v30  ;;  %v964_v30 = vsub.f32 1.0, %v1621_v61 }
 0x6d4   : > { %1628 = vtanh.f32 %v959_v6 }
 0x6d9   : > { %v1625_v8 = vpop.eup %1624 }
 0x6da   : > { %969 = vrot.lane.b32.xlu1 %v1625_v8, %s1656_s13 }
 0x6dd   : > { %v1627_v12 = vpop.eup %1626 }
 0x6de   : > { %971 = vrot.lane.b32.xlu0 %v1627_v12, %s1656_s13 }
 0x6e1   : > { %v1629_v14 = vpop.eup %1628 }
 0x6e2   : > { %973 = vrot.lane.b32.xlu1 %v1629_v14, %s1656_s13 }
 0x74c   : > { %v970_v26 = vpop.permute.xlu1 %969 }
 0x74d   : > { %v978_v28 = vmul.f32 %v970_v26, %v963_v27 }
 0x74f   : > { %v1920_v44 = vadd.f32 %v981_v41, %v978_v28 }
 0x750   : > { %v972_v31 = vpop.permute.xlu0 %971 }
 0x751   : > { %v979_v43 = vmul.f32 %v972_v31, %v964_v30 }
 0x753   : > { %v1922_v45 = vadd.f32 %v982_v42, %v979_v43 }
 0x754   : > { %v974_v47 = vpop.permute.xlu1 %973 }
 0x755   : > { %v980_v51 = vmul.f32 %v974_v47, %v965_v46  ;;  %v987_v52 = vpack.c.bf16 %v1922_v45, %v1920_v44 }
 0x757   : > { %v1927_v53 = vadd.f32 %v983_v48, %v980_v51  ;;  %1000 = vrot.lane.b32.xlu0 %v987_v52, %s1656_s13 }
 0x759   : > { %v988_v32 = vpack.c.bf16 %v1927_v53, %v1927_v53 }
 0x75b   : > { %1002 = vrot.lane.b32.xlu1 %v988_v32, %s1656_s13 }
 0x7c9   : > { %v1001_v7 = vpop.permute.xlu0 %1000 }
 0x7ca   : > { %1525 = vmatprep.mubr.msk.bf16.mxu1 %vm361_vm0, %v1001_v7 }
 0x7cd   : > { %v1003_v54 = vpop.permute.xlu1 %1002 }
 0x7ce   : > { %1526 = vmatmul.mubr.msk.bf16.vlgmr.msra.gmra.mxu1 %vm361_vm0, %v1003_v54 }
 0x7cf   : > { %1533 = vmatprep.mubr.msk.bf16.mxu1 %vm289_vm1, %v1732_v11 }
 0x88e   : > { %v1527_v1 = vpop.f32.mrf.mxu1 }
 0x88f   : > { %v1083_v56 = vpack.c.bf16 %v1527_v1, %v1527_v1 }
 0x890   : > { %v1068_v57 = vpop.f32.mrf.mxu1 }
 0x891   : > { %v1085_v58 = vsel %vm424_vm2, %v1083_v56, 0  ;;  %1539 = vmatprep.subr.msk.bf16.mxu1 %vm424_vm2, %v1083_v56 }
 0x892   : > { %v1528_v59 = vpop.f32.mrf.mxu1  ;;  %1530 = vmatpush3.bf16.msra.mxu1 %v1085_v58 }
 0x894   : > { %v1071_v60 = vpop.f32.mrf.mxu1 }
 0x895   : > { %v1082_v61 = vpack.c.bf16 %v1071_v60, %v1068_v57 }
 0x897   : > { %1531 = vmatprep.subr.bf16.mxu1 %v1082_v61 }
 0x898   : > { %1532 = vmatpush3.bf16.msra.mxu1 %v1082_v61 }
 0x899   : > { %1148 = vmatprep.subr.bf16.mxu1 %v1746_v16 }
 0x89b   : > { %1534 = vmatmul.mubr.msk.bf16.vlgmr.msra.gmra.mxu1 %vm289_vm1, %v1790_v33 }
 0x89c   : > { %1149 = vmatpush1.bf16.msra.mxu1 %v1749_v17  ;;  %1180 = vmatprep.mubr.bf16.mxu1 %v1657_v40 }
 0x89d   : > { %1150 = vmatprep.subr.bf16.mxu1 %v1753_v18 }
 0x8a0   : > { %1151 = vmatpush1.bf16.msra.mxu1 %v1758_v19 }
 0x8a1   : > { %1152 = vmatprep.subr.bf16.mxu1 %v1761_v20 }
 0x8a4   : > { %1153 = vmatpush1.bf16.msra.mxu1 %v1765_v21 }
 0x8a5   : > { %1154 = vmatprep.subr.bf16.mxu1 %v1769_v22 }
 0x8a8   : > { %1155 = vmatpush1.bf16.msra.mxu1 %v1774_v23 }
 0x8a9   : > { %1156 = vmatprep.subr.bf16.mxu1 %v1778_v24 }
 0x8ac   : > { %1157 = vmatpush1.bf16.msra.mxu1 %v1782_v25 }
 0x8ad   : > { %1158 = vmatprep.subr.bf16.mxu1 %v1795_v34 }
 0x8b0   : > { %1159 = vmatpush1.bf16.msra.mxu1 %v1798_v35 }
 0x8b1   : > { %1160 = vmatprep.subr.bf16.mxu1 %v1803_v36 }
 0x8b4   : > { %1161 = vmatpush1.bf16.msra.mxu1 %v1806_v37 }
 0x8b5   : > { %1162 = vmatprep.subr.bf16.mxu1 %v1811_v38 }
 0x8b8   : > { %1163 = vmatpush1.bf16.msra.mxu1 %v1814_v39 }
 0x95b   : > { %v1535_v11 = vpop.f32.mrf.mxu1 }
 0x95c   : > { %v1137_v22 = vmul.f32 %v1825_v55, %v1535_v11 }
 0x95d   : > { %v1121_v16 = vpop.f32.mrf.mxu1 }
 0x95e   : > { %v1135_v19 = vmul.f32 %v1819_v49, %v1121_v16  ;;  %v1139_v24 = vpack.c.bf16 %v1137_v22, %v1137_v22 }
 0x95f   : > { %v1536_v17 = vpop.f32.mrf.mxu1 }
 0x960   : > { %v1146_v25 = vsel %vm361_vm0, %v1139_v24, %v988_v32 }
 0x961   : > { %v1124_v18 = vpop.f32.mrf.mxu1 }
 0x962   : > { %v1136_v20 = vmul.f32 %v1821_v50, %v1124_v18 }
 0x964   : > { %v1138_v21 = vpack.c.bf16 %v1136_v20, %v1135_v19 }
 0x966   : > { %v1142_v23 = vsel %vm361_vm0, %v1138_v21, %v987_v52 }
 0x967   : > { %1181 = vmatmul.mubr.bf16.vlgmr.msra.gmra.mxu1 %v1142_v23 }
 0x968   : > { %1190 = vmatprep.mubr.bf16.mxu1 %v1657_v40 }
 0x96f   : > { %1191 = vmatmul.mubr.bf16.gmra.mxu1 %v1146_v25 }
 0xa27   : > { %v1182_v33 = vpop.f32.mrf.mxu1 }
 0xa28   : > { %v1183_v62 = vadd.f32 %v1182_v33, %v1845_v29 }
 0xa29   : > { %v1184_v34 = vpop.f32.mrf.mxu1 }
 0xa2a   : > { %v1185_v35 = vadd.f32 %v1184_v34, %v1835_v4  ;;  %v1441_v63 = vmul.f32 -1.442695, %v1183_v62 }
 0xa2b   : > { %v1186_v36 = vpop.f32.mrf.mxu1 }
 0xa2c   : > { %1220 = vrot.lane.b32.xlu0 %v1185_v35, %s1656_s13  ;;  %v1187_v0 = vadd.f32 %v1186_v36, %v1845_v29  ;;  %1630 = vpow2.f32 %v1441_v63 }
 0xa2d   : > { %v1188_v37 = vpop.f32.mrf.mxu1 }
 0xa2e   : > { %v1189_v38 = vadd.f32 %v1188_v37, %v1835_v4  ;;  %v1442_v2 = vmul.f32 -1.442695, %v1187_v0 }
 0xa2f   : > { %v1192_v39 = vpop.f32.mrf.mxu1 }
 0xa30   : > { %1222 = vrot.lane.b32.xlu1 %v1189_v38, %s1656_s13  ;;  %v1193_v3 = vadd.f32 %v1192_v39, %v1845_v29  ;;  %1632 = vpow2.f32 %v1442_v2 }
 0xa31   : > { %v1194_v49 = vpop.f32.mrf.mxu1 }
 0xa32   : > { %v1195_v40 = vadd.f32 %v1194_v49, %v1835_v4  ;;  %v1443_v5 = vmul.f32 -1.442695, %v1193_v3 }
 0xa33   : > { %v1196_v50 = vpop.f32.mrf.mxu1 }
 0xa34   : > { %1224 = vrot.lane.b32.xlu0 %v1195_v40, %s1656_s13  ;;  %1634 = vpow2.f32 %v1443_v5 }
 0xa35   : > { %v1197_v55 = vpop.f32.mrf.mxu1 }
 0xa39   : > { %v1631_v6 = vpop.eup %1630 }
 0xa3a   : > { %v1208_v8 = vadd.f32 1.0, %v1631_v6 }
 0xa3c   : > { %1636 = vrcp.f32 %v1208_v8 }
 0xa3d   : > { %v1633_v9 = vpop.eup %1632 }
 0xa3e   : > { %v1209_v4 = vadd.f32 1.0, %v1633_v9 }
 0xa40   : > { %1638 = vrcp.f32 %v1209_v4 }
 0xa41   : > { %v1635_v10 = vpop.eup %1634 }
 0xa42   : > { %v1210_v12 = vadd.f32 1.0, %v1635_v10 }
 0xa44   : > { %1640 = vrcp.f32 %v1210_v12 }
 0xa49   : > { %v1637_v13 = vpop.eup %1636 }
 0xa4a   : > { %v1238_v51 = vsub.f32 1.0, %v1637_v13  ;;  %v1256_v32 = vmul.f32 %v1637_v13, %v1920_v44 }
 0xa4d   : > { %v1639_v27 = vpop.eup %1638 }
 0xa4e   : > { %v1239_v1 = vsub.f32 1.0, %v1639_v27  ;;  %v1257_v57 = vmul.f32 %v1639_v27, %v1922_v45 }
 0xa51   : > { %v1641_v31 = vpop.eup %1640 }
 0xa52   : > { %v1240_v60 = vsub.f32 1.0, %v1641_v31  ;;  %v1258_v11 = vmul.f32 %v1641_v31, %v1927_v53 }
 0xa9e   : > { %v1221_v14 = vpop.permute.xlu0 %1220 }
 0xa9f   : > { %v1229_v15 = vmul.f32 %v1637_v13, %v1221_v14 }
 0xaa1   : > { %v1232_v26 = vadd.f32 %v1229_v15, %v1185_v35 }
 0xaa2   : > { %v1223_v28 = vpop.permute.xlu1 %1222 }
 0xaa3   : > { %1642 = vtanh.f32 %v1232_v26  ;;  %v1230_v29 = vmul.f32 %v1639_v27, %v1223_v28 }
 0xaa5   : > { %v1233_v30 = vadd.f32 %v1230_v29, %v1189_v38 }
 0xaa6   : > { %v1225_v41 = vpop.permute.xlu0 %1224 }
 0xaa7   : > { %1644 = vtanh.f32 %v1233_v30  ;;  %v1231_v42 = vmul.f32 %v1641_v31, %v1225_v41 }
 0xaa9   : > { %v1234_v43 = vadd.f32 %v1231_v42, %v1195_v40 }
 0xaab   : > { %1646 = vtanh.f32 %v1234_v43 }
 0xab0   : > { %v1643_v46 = vpop.eup %1642 }
 0xab1   : > { %1244 = vrot.lane.b32.xlu1 %v1643_v46, %s1656_s13 }
 0xab4   : > { %v1645_v47 = vpop.eup %1644 }
 0xab5   : > { %1246 = vrot.lane.b32.xlu0 %v1645_v47, %s1656_s13 }
 0xab8   : > { %v1647_v48 = vpop.eup %1646 }
 0xab9   : > { %1248 = vrot.lane.b32.xlu1 %v1647_v48, %s1656_s13 }
 0xb23   : > { %v1245_v52 = vpop.permute.xlu1 %1244 }
 0xb24   : > { %v1253_v7 = vmul.f32 %v1245_v52, %v1238_v51 }
 0xb26   : > { %v1259_v54 = vadd.f32 %v1256_v32, %v1253_v7 }
 0xb27   : > { %v1247_v56 = vpop.permute.xlu0 %1246 }
 0xb28   : > { %v1254_v58 = vmul.f32 %v1247_v56, %v1239_v1  ;;  %1265 = vrot.lane.b32.xlu0 %v1259_v54, %s1656_s13 }
 0xb2a   : > { %v1260_v59 = vadd.f32 %v1257_v57, %v1254_v58 }
 0xb2b   : > { %v1249_v61 = vpop.permute.xlu1 %1248 }
 0xb2c   : > { %v1255_v16 = vmul.f32 %v1249_v61, %v1240_v60  ;;  %1267 = vrot.lane.b32.xlu1 %v1260_v59, %s1656_s13 }
 0xb2e   : > { %v1261_v17 = vadd.f32 %v1258_v11, %v1255_v16 }
 0xb30   : > { %1269 = vrot.lane.b32.xlu0 %v1261_v17, %s1656_s13 }
 0xb9a   : > { %v1266_v44 = vpop.permute.xlu0 %1265 }
 0xb9b   : > { %1274 = vst.msk [vmem:[%s281_s22] sm:$0xff] %vm361_vm0, %v1266_v44 }
 0xb9e   : > { %v1268_v45 = vpop.permute.xlu1 %1267 }
 0xb9f   : > { %1275 = vst.msk [vmem:[%s281_s22 + $0x8] sm:$0xff] %vm361_vm0, %v1268_v45 }
 0xba2   : > { %v1270_v18 = vpop.permute.xlu0 %1269 }
 0xba3   : > { %1276 = vst.msk [vmem:[%s281_s22 + $0x10] sm:$0xff] %vm361_vm0, %v1270_v18 }
 0xba4 PF: > { %s15_s18 = sadd.s32 1, %s1654_s18  }
 0xba5   : > { %p12_p4 = scmp.ge.s32.totalorder %s15_s18, 6  }
 0xba7   :  { %14 = sbr.rel (!%p12_p4) target bundleno = 1 (0x1), region = 81 }

// kernel: _lambda_.5
= control target key start
LH: loop header
LB: loop body
LE: loop exit
PB: predicated region body
PF: predicated region fallthrough
CT: control target
= control target key end

     0   :  { %s3687_s0 = inlined_call_operand.vmem [shape: f32[4,24,64], index: 0, kind: input, shape index: {}]   ;;  %s3688_s1 = inlined_call_operand.vmem [shape: f32[2,24], index: 1, kind: input, shape index: {}]   ;;  %s3689_s2 = inlined_call_operand.vmem [shape: f32[24,32], index: 2, kind: input, shape index: {}]   ;;  %s3690_s3 = inlined_call_operand.vmem [shape: f32[24,32], index: 3, kind: input, shape index: {}]   ;;  %s3691_s4 = inlined_call_operand.vmem [shape: f32[24,2], index: 4, kind: input, shape index: {}]   ;;  %s3692_s5 = inlined_call_operand.vmem [shape: f32[24,1], index: 5, kind: input, shape index: {}]   ;;  %s3693_s6 = inlined_call_operand.vmem [shape: f32[5,4,24], index: 6, kind: input, shape index: {}]   ;;  %s3694_s7 = inlined_call_operand.vmem [shape: f32[5,4,112], index: 7, kind: input, shape index: {}]   ;;  %s3695_s8 = inlined_call_operand.vmem [shape: f32[5,1,112], index: 8, kind: input, shape index: {}]   ;;  %s3696_s9 = inlined_call_operand.vmem [shape: f32[1,64], index: 9, kind: input, shape index: {}]   ;;  %s3697_s10 = inlined_call_operand.<no memory space> [shape: f32[1,1], index: 10, kind: input, shape index: {}]   ;;  %s3698_s11 = inlined_call_operand.vmem [shape: bf16[64,64], index: 11, kind: input, shape index: {}]   ;;  %s3699_s12 = inlined_call_operand.vmem [shape: f32[1,64], index: 12, kind: input, shape index: {}]   ;;  %s3700_s13 = inlined_call_operand.vmem [shape: bf16[64,64], index: 13, kind: input, shape index: {}]   ;;  %s3701_s14 = inlined_call_operand.vmem [shape: f32[1,64], index: 14, kind: input, shape index: {}]   ;;  %s3702_s15 = inlined_call_operand.vmem [shape: bf16[24,64], index: 15, kind: input, shape index: {}]   ;;  %s3703_s16 = inlined_call_operand.vmem [shape: f32[1,64], index: 16, kind: input, shape index: {}]   ;;  %s3704_s17 = inlined_call_operand.vmem [shape: bf16[5,56,224], index: 17, kind: input, shape index: {}]   ;;  %s3705_s18 = inlined_call_operand.vmem [shape: f32[5,1,224], index: 18, kind: input, shape index: {}]   ;;  %s3706_s19 = inlined_call_operand.hbm [shape: f32[1,1], index: 19, kind: output, shape index: {0}]   ;;  %s3707_s20 = inlined_call_operand.hbm [shape: f32[1,1], index: 20, kind: output, shape index: {1}]  }
   0x1   :  { %3712 = sst [smem:[#allocation9_spill]] %s3687_s0  ;;  %v26_v0 = vstv %s3697_s10 }
   0x2   :  { %3713 = sst [smem:[#allocation10_spill]] %s3688_s1  ;;  %27 = vst [vmem:[#allocation2] sm:$0x1] %v26_v0 }
   0x3   :  { %3714 = sst [smem:[#allocation11_spill]] %s3689_s2 }
   0x4   :  { %3715 = sst [smem:[#allocation12_spill]] %s3690_s3 }
   0x5   :  { %3716 = sst [smem:[#allocation13_spill]] %s3691_s4 }
   0x6   :  { %28 = vsyncpa [#allocation4], 0  ;;  %s3717_s2 = sld [smem:[#allocation9_spill]]  ;;  %v2324_v2 = vld [vmem:[%s3696_s9] ss:$0 sm:$0xff]  ;;  %vm100_vm0 = vcmask 523264  }
   0xc   :  { %v2979_v1 = vld [vmem:[%s3717_s2 + $0x18] sm:$0xff]  ;;  %v2987_v3 = vld [vmem:[%s3717_s2] sm:$0xff]  ;;  %v2999_v7 = vld [vmem:[%s3717_s2 + $0x8] sm:$0xff] }
   0xd   :  { %v91_v4 = vmul.f32 %v2324_v2, %v2979_v1  ;;  %v88_v5 = vmul.f32 %v2324_v2, %v2987_v3  ;;  %v2994_v6 = vld [vmem:[%s3717_s2 + $0x20] sm:$0xff]  ;;  %v3004_v8 = vld [vmem:[%s3717_s2 + $0x38] sm:$0xff]  ;;  %v89_v10 = vmul.f32 %v2324_v2, %v2999_v7  ;;  %v3011_v11 = vld [vmem:[%s3717_s2 + $0x30] sm:$0xff] }
   0xe   :  { %v92_v9 = vmul.f32 %v2324_v2, %v2994_v6  ;;  %v95_v14 = vmul.f32 %v2324_v2, %v3004_v8  ;;  %v94_v15 = vmul.f32 %v2324_v2, %v3011_v11  ;;  %v3020_v16 = vld [vmem:[%s3717_s2 + $0x50] sm:$0xff]  ;;  %v3025_v17 = vld [vmem:[%s3717_s2 + $0x48] sm:$0xff]  ;;  %v3046_v26 = vld [vmem:[%s3717_s2 + $0x58] sm:$0xff] }
   0xf   :  { %v110_v12 = vsel %vm100_vm0, %v91_v4, 0.0  ;;  %v101_v13 = vsel %vm100_vm0, %v88_v5, 0.0  ;;  %v104_v19 = vsel %vm100_vm0, %v89_v10, 0.0  ;;  %v3034_v22 = vld [vmem:[%s3717_s2 + $0x28] sm:$0xff]  ;;  %v3039_v23 = vld [vmem:[%s3717_s2 + $0x10] sm:$0xff]  ;;  %v98_v24 = vmul.f32 %v2324_v2, %v3020_v16  ;;  %v3051_v27 = vld [vmem:[%s3717_s2 + $0x40] sm:$0xff] }
  0x10   :  { %111 = vadd.xlane.f32.xlu1 %v110_v12  ;;  %102 = vadd.xlane.f32.xlu0 %v101_v13  ;;  %v113_v18 = vsel %vm100_vm0, %v92_v9, 0.0  ;;  %v122_v20 = vsel %vm100_vm0, %v95_v14, 0.0  ;;  %v119_v21 = vsel %vm100_vm0, %v94_v15, 0.0  ;;  %v97_v25 = vmul.f32 %v2324_v2, %v3025_v17 }
  0x11   :  { %v131_v28 = vsel %vm100_vm0, %v98_v24, 0.0  ;;  %v93_v30 = vmul.f32 %v2324_v2, %v3034_v22  ;;  %v90_v31 = vmul.f32 %v2324_v2, %v3039_v23  ;;  %v99_v34 = vmul.f32 %v2324_v2, %v3046_v26 }
  0x12   :  { %v128_v29 = vsel %vm100_vm0, %v97_v25, 0.0  ;;  %v96_v35 = vmul.f32 %v2324_v2, %v3051_v27 }
  0x13   :  { %v116_v32 = vsel %vm100_vm0, %v93_v30, 0.0  ;;  %v107_v33 = vsel %vm100_vm0, %v90_v31, 0.0  ;;  %v134_v36 = vsel %vm100_vm0, %v99_v34, 0.0 }
  0x14   :  { %114 = vadd.xlane.f32.xlu1 %v113_v18  ;;  %105 = vadd.xlane.f32.xlu0 %v104_v19  ;;  %v125_v37 = vsel %vm100_vm0, %v96_v35, 0.0 }
  0x18   :  { %123 = vadd.xlane.f32.xlu1 %v122_v20  ;;  %120 = vadd.xlane.f32.xlu0 %v119_v21 }
  0x1c   :  { %132 = vadd.xlane.f32.xlu1 %v131_v28  ;;  %129 = vadd.xlane.f32.xlu0 %v128_v29 }
  0x20   :  { %117 = vadd.xlane.f32.xlu1 %v116_v32  ;;  %108 = vadd.xlane.f32.xlu0 %v107_v33 }
  0x21   :  { %29 = vsyncpa [#allocation6], 0  ;;  %v2859_v38 = vmov 0   ;;  %v2325_v43 = vld [vmem:[#allocation2] ss:$0 sm:$0xff]  ;;  %vm156_vm1 = vcmask 7168  }
  0x22   :  { %2609 = vset.pattern.permute.xlu1 %v2859_v38  ;;  %2608 = vset.pattern.permute.xlu0 %v2859_v38  ;;  %s3718_s3 = sld [smem:[#allocation10_spill]]  ;;  %s2861_s26 = smov 64   ;;  %vm618_vm2 = vcmask 1043456   ;;  %vm2862_vm3 = vmmov 0   ;;  %vm614_vm4 = vcmask 195584   ;;  %vm685_vm7 = vcmask 261120  }
  0x23   :  { %s3719_s23 = sld [smem:[#allocation12_spill]]  ;;  %vm701_vm8 = vcmask 1041408   ;;  %vm691_vm9 = vcmask 15360  }
  0x24   :  { %135 = vadd.xlane.f32.xlu1 %v134_v36  ;;  %126 = vadd.xlane.f32.xlu0 %v125_v37  ;;  %s3720_s4 = sld [smem:[#allocation13_spill]] }
  0x25   :  { %s3721_s22 = sld [smem:[#allocation11_spill]] }
  0x99   :  { %v112_v39 = vpop.xlane.xlu1 %111  ;;  %v103_v40 = vpop.xlane.xlu0 %102 }
  0x9a   :  { %v147_v49 = vadd.f32 %v2325_v43, %v112_v39  ;;  %v144_v50 = vadd.f32 %v2325_v43, %v103_v40 }
  0x9c   :  { %v158_v59 = vsel %vm156_vm1, %v147_v49, -inf  ;;  %v157_v60 = vsel %vm156_vm1, %v144_v50, -inf }
  0x9d   :  { %v115_v41 = vpop.xlane.xlu1 %114  ;;  %v106_v42 = vpop.xlane.xlu0 %105 }
  0x9e   :  { %v145_v44 = vadd.f32 %v2325_v43, %v106_v42  ;;  %v148_v51 = vadd.f32 %v2325_v43, %v115_v41 }
  0xa0   :  { %v164_v52 = vsel %vm156_vm1, %v145_v44, -inf  ;;  %v165_v61 = vsel %vm156_vm1, %v148_v51, -inf }
  0xa1   :  { %v124_v45 = vpop.xlane.xlu1 %123  ;;  %v121_v46 = vpop.xlane.xlu0 %120 }
  0xa2   :  { %v151_v47 = vadd.f32 %v2325_v43, %v124_v45  ;;  %v150_v48 = vadd.f32 %v2325_v43, %v121_v46 }
  0xa4   :  { %v166_v55 = vsel %vm156_vm1, %v151_v47, -inf  ;;  %v159_v56 = vsel %vm156_vm1, %v150_v48, -inf }
  0xa5   :  { %v133_v53 = vpop.xlane.xlu1 %132  ;;  %v130_v54 = vpop.xlane.xlu0 %129  ;;  %v167_v0 = vmax.f32 %v164_v52, %v166_v55  ;;  %v160_v2 = vmax.f32 %v157_v60, %v159_v56 }
  0xa6   :  { %v154_v57 = vadd.f32 %v2325_v43, %v133_v53  ;;  %v153_v58 = vadd.f32 %v2325_v43, %v130_v54 }
  0xa8   :  { %v168_v62 = vsel %vm156_vm1, %v154_v57, -inf  ;;  %v161_v63 = vsel %vm156_vm1, %v153_v58, -inf }
  0xa9   :  { %v169_v4 = vmax.f32 %v165_v61, %v168_v62  ;;  %v162_v5 = vmax.f32 %v158_v59, %v161_v63  ;;  %v118_v9 = vpop.xlane.xlu1 %117  ;;  %v109_v10 = vpop.xlane.xlu0 %108 }
  0xaa   :  { %v149_v12 = vadd.f32 %v2325_v43, %v118_v9  ;;  %v146_v15 = vadd.f32 %v2325_v43, %v109_v10 }
  0xab   :  { %v170_v13 = vmax.f32 %v167_v0, %v169_v4  ;;  %v163_v14 = vmax.f32 %v160_v2, %v162_v5 }
  0xac   :  { %v172_v31 = vsel %vm156_vm1, %v149_v12, -inf  ;;  %v171_v39 = vsel %vm156_vm1, %v146_v15, -inf }
  0xad   :  { %v179_v18 = vsub.f32 %v145_v44, %v170_v13  ;;  %v182_v19 = vsub.f32 %v148_v51, %v170_v13  ;;  %v185_v20 = vsub.f32 %v151_v47, %v170_v13  ;;  %v188_v21 = vsub.f32 %v154_v57, %v170_v13  ;;  %v136_v24 = vpop.xlane.xlu1 %135  ;;  %v127_v25 = vpop.xlane.xlu0 %126 }
  0xae   :  { %v178_v28 = vsub.f32 %v144_v50, %v163_v14  ;;  %v181_v29 = vsub.f32 %v147_v49, %v163_v14  ;;  %v184_v30 = vsub.f32 %v150_v48, %v163_v14  ;;  %v155_v35 = vadd.f32 %v2325_v43, %v136_v24 }
  0xaf   :  { %v192_v32 = vmul.f32 1.442695, %v179_v18  ;;  %v198_v33 = vmul.f32 1.442695, %v182_v19  ;;  %v204_v34 = vmul.f32 1.442695, %v185_v20  ;;  %v187_v37 = vsub.f32 %v153_v58, %v163_v14 }
  0xb0   :  { %v210_v36 = vmul.f32 1.442695, %v188_v21  ;;  %v152_v40 = vadd.f32 %v2325_v43, %v127_v25  ;;  %v190_v41 = vmul.f32 1.442695, %v178_v28  ;;  %v175_v42 = vsel %vm156_vm1, %v155_v35, -inf }
  0xb1   :  { %2675 = vpow2.f32 %v192_v32  ;;  %v196_v44 = vmul.f32 1.442695, %v181_v29  ;;  %v176_v45 = vmax.f32 %v172_v31, %v175_v42  ;;  %v202_v47 = vmul.f32 1.442695, %v184_v30 }
  0xb2   :  { %2677 = vpow2.f32 %v198_v33  ;;  %v173_v46 = vsel %vm156_vm1, %v152_v40, -inf  ;;  %v208_v49 = vmul.f32 1.442695, %v187_v37 }
  0xb3   :  { %2679 = vpow2.f32 %v204_v34  ;;  %v174_v48 = vmax.f32 %v171_v39, %v173_v46 }
  0xb4   :  { %2681 = vpow2.f32 %v210_v36 }
  0xb5   :  { %2683 = vpow2.f32 %v190_v41  ;;  %v177_v50 = vmax.f32 %v174_v48, %v176_v45 }
  0xb6   :  { %2685 = vpow2.f32 %v196_v44 }
  0xb7   :  { %2687 = vpow2.f32 %v202_v47  ;;  %v180_v51 = vsub.f32 %v146_v15, %v177_v50  ;;  %v183_v43 = vsub.f32 %v149_v12, %v177_v50  ;;  %v186_v52 = vsub.f32 %v152_v40, %v177_v50 }
  0xb8   :  { %2689 = vpow2.f32 %v208_v49  ;;  %v189_v53 = vsub.f32 %v155_v35, %v177_v50 }
  0xb9   :  { %v194_v54 = vmul.f32 1.442695, %v180_v51  ;;  %v200_v55 = vmul.f32 1.442695, %v183_v43  ;;  %v206_v56 = vmul.f32 1.442695, %v186_v52 }
  0xba   :  { %v212_v57 = vmul.f32 1.442695, %v189_v53  ;;  %v2610_v53 = vld [vmem:[%s3698_s11 + $0x18] sm:$0xff]  }
  0xbb   :  { %2691 = vpow2.f32 %v194_v54  ;;  %2499 = vmatprep.subr.bf16.mxu0 %v2610_v53 }
  0xbc   :  { %2693 = vpow2.f32 %v200_v55  ;;  %2500 = vmatpush3.bf16.msra.mxu0 %v2610_v53  ;;  %v2611_v55 = vld [vmem:[%s3698_s11 + $0x10] sm:$0xff]  }
  0xbd   :  { %2695 = vpow2.f32 %v206_v56  ;;  %2501 = vmatprep.subr.bf16.mxu0 %v2611_v55  ;;  %v901_v53 = vld [vmem:[%s3719_s23 + $0x10] sm:$0xff] }
  0xbe   :  { %v2676_v58 = vpop.eup %2675  ;;  %2697 = vpow2.f32 %v212_v57  ;;  %v2612_v57 = vld [vmem:[%s3698_s11 + $0x8] sm:$0xff]  }
  0xbf   :  { %v2678_v59 = vpop.eup %2677  ;;  %v221_v60 = vsel %vm156_vm1, %v2676_v58, 0.0 }
  0xc0   :  { %v2680_v61 = vpop.eup %2679  ;;  %v222_v62 = vsel %vm156_vm1, %v2678_v59, 0.0  ;;  %2502 = vmatpush3.bf16.msra.mxu0 %v2611_v55  ;;  %v899_v55 = vld [vmem:[%s3719_s23] sm:$0xff] }
  0xc1   :  { %v2682_v63 = vpop.eup %2681  ;;  %v223_v0 = vadd.f32 %v222_v62, %v221_v60  ;;  %v224_v4 = vsel %vm156_vm1, %v2680_v61, 0.0  ;;  %2503 = vmatprep.subr.bf16.mxu0 %v2612_v57  ;;  %v3105_v60 = vld [vmem:[%s3718_s3] sm:$0x3]  ;;  %s2863_s3 = smov 32  }
  0xc2   :  { %v2684_v2 = vpop.eup %2683  ;;  %v226_v13 = vsel %vm156_vm1, %v2682_v63, 0.0 }
  0xc3   :  { %v2686_v5 = vpop.eup %2685  ;;  %v225_v9 = vadd.f32 %v224_v4, %v223_v0  ;;  %v214_v10 = vsel %vm156_vm1, %v2684_v2, 0.0 }
  0xc4   :  { %v2688_v12 = vpop.eup %2687  ;;  %v215_v14 = vsel %vm156_vm1, %v2686_v5, 0.0  ;;  %2504 = vmatpush3.bf16.msra.mxu0 %v2612_v57  ;;  %v2326_v57 = vld [vmem:[%s3699_s12] ss:$0 sm:$0xff] }
  0xc5   :  { %v2690_v15 = vpop.eup %2689  ;;  %v227_v18 = vadd.f32 %v226_v13, %v225_v9  ;;  %v216_v19 = vadd.f32 %v215_v14, %v214_v10  ;;  %v217_v20 = vsel %vm156_vm1, %v2688_v12, 0.0 }
  0xc6   :  { %v219_v25 = vsel %vm156_vm1, %v2690_v15, 0.0 }
  0xc7   :  { %2699 = vrcp.f32 %v227_v18  ;;  %v218_v21 = vadd.f32 %v217_v20, %v216_v19 }
  0xc8   :  { %v2692_v24 = vpop.eup %2691 }
  0xc9   :  { %v2694_v28 = vpop.eup %2693  ;;  %v220_v29 = vadd.f32 %v219_v25, %v218_v21  ;;  %v228_v30 = vsel %vm156_vm1, %v2692_v24, 0.0 }
  0xca   :  { %v2696_v31 = vpop.eup %2695  ;;  %v229_v32 = vsel %vm156_vm1, %v2694_v28, 0.0 }
  0xcb   :  { %v2698_v33 = vpop.eup %2697  ;;  %2701 = vrcp.f32 %v220_v29  ;;  %v230_v34 = vadd.f32 %v229_v32, %v228_v30  ;;  %v231_v35 = vsel %vm156_vm1, %v2696_v31, 0.0 }
  0xcc   :  { %v233_v37 = vsel %vm156_vm1, %v2698_v33, 0.0 }
  0xcd   :  { %v232_v36 = vadd.f32 %v231_v35, %v230_v34 }
  0xcf   :  { %v234_v39 = vadd.f32 %v233_v37, %v232_v36 }
  0xd1   :  { %2703 = vrcp.f32 %v234_v39 }
  0xd4   :  { %v2700_v40 = vpop.eup %2699 }
  0xd5   :  { %v238_v41 = vmul.f32 %v2700_v40, %v2676_v58  ;;  %v242_v47 = vmul.f32 %v2700_v40, %v2678_v59  ;;  %v245_v52 = vmul.f32 %v2700_v40, %v2680_v61  ;;  %v248_v56 = vmul.f32 %v2700_v40, %v2682_v63  ;;  %v2613_v58 = vld [vmem:[%s3698_s11] sm:$0xff]  }
  0xd6   :  { %2505 = vmatprep.subr.bf16.mxu0 %v2613_v58  ;;  %v2860_v59 = vmov 0.0  }
  0xd7   :  { %257 = vperm.xlu1 %2609, %v238_v41   ;;  %2506 = vmatpush3.bf16.msra.mxu0 %v2613_v58 }
  0xd8   :  { %v2702_v42 = vpop.eup %2701  ;;  %2523 = vmatprep.subr.bf16.mxu0 %v2860_v59 }
  0xd9   :  { %v236_v44 = vmul.f32 %v2702_v42, %v2684_v2  ;;  %v241_v45 = vmul.f32 %v2702_v42, %v2686_v5  ;;  %v247_v46 = vmul.f32 %v2702_v42, %v2690_v15  ;;  %v244_v43 = vmul.f32 %v2702_v42, %v2688_v12 }
  0xdb   :  { %252 = vperm.xlu0 %2608, %v236_v44   ;;  %267 = vperm.xlu1 %2609, %v241_v45  }
  0xde   :  { %v2704_v48 = vpop.eup %2703 }
  0xdf   :  { %297 = vperm.xlu0 %2608, %v247_v46   ;;  %272 = vperm.xlu1 %2609, %v242_v47   ;;  %v249_v49 = vmul.f32 %v2704_v48, %v2698_v33  ;;  %v240_v50 = vmul.f32 %v2704_v48, %v2692_v24  ;;  %v243_v51 = vmul.f32 %v2704_v48, %v2694_v28 }
  0xe0   :  { %v246_v54 = vmul.f32 %v2704_v48, %v2696_v31 }
  0xe3   :  { %307 = vperm.xlu0 %2608, %v249_v49   ;;  %262 = vperm.xlu1 %2609, %v240_v50   ;;  %v594_v49 = vpack.c.bf16 %v3105_v60, %v3105_v60  ;;  %v2616_v50 = vld [vmem:[%s3700_s13 + $0x18] sm:$0xff]  }
  0xe4   :  { %2511 = vmatprep.subr.bf16.mxu1 %v2616_v50 }
  0xe5   :  { %2512 = vmatpush3.bf16.msra.mxu1 %v2616_v50 }
  0xe7   :  { %277 = vperm.xlu1 %2609, %v243_v51   ;;  %v2617_v51 = vld [vmem:[%s3700_s13 + $0x10] sm:$0xff]   ;;  %909 = vrot.lane.b32.xlu0 %v901_v53, %s2863_s3 }
  0xe8   :  { %2513 = vmatprep.subr.bf16.mxu1 %v2617_v51 }
  0xe9   :  { %2514 = vmatpush3.bf16.msra.mxu1 %v2617_v51 }
  0xeb   :  { %282 = vperm.xlu1 %2609, %v244_v43   ;;  %v2618_v43 = vld [vmem:[%s3700_s13 + $0x8] sm:$0xff]   ;;  %905 = vrot.lane.b32.xlu0 %v899_v55, %s2863_s3 }
  0xec   :  { %2515 = vmatprep.subr.bf16.mxu1 %v2618_v43 }
  0xed   :  { %2516 = vmatpush3.bf16.msra.mxu1 %v2618_v43 }
  0xef   :  { %287 = vperm.xlu1 %2609, %v245_v52   ;;  %v2619_v52 = vld [vmem:[%s3700_s13] sm:$0xff]  }
  0xf0   :  { %2517 = vmatprep.subr.bf16.mxu1 %v2619_v52 }
  0xf1   :  { %2518 = vmatpush3.bf16.msra.mxu1 %v2619_v52 }
  0xf2   :  { %2531 = vmatprep.subr.mxu1 %v2860_v59 }
  0xf3   :  { %292 = vperm.xlu1 %2609, %v246_v54   ;;  %v900_v54 = vld [vmem:[%s3719_s23 + $0x8] sm:$0xff] }
  0xf7   :  { %302 = vperm.xlu1 %2609, %v248_v56  }
  0xfb   :  { %682 = vrot.lane.b32.xlu1 %v3105_v60, %s2861_s26 }
  0xff   :  { %907 = vrot.lane.b32.xlu1 %v900_v54, %s2863_s3 }
 0x152   :  { %v258_v61 = vpop.permute.xlu1 %257 }
 0x153   :  { %v311_v20 = vmul.f32 %v258_v61, %v2999_v7 }
 0x155   :  { %v329_v31 = vsel %vm100_vm0, %v311_v20, 0.0 }
 0x156   :  { %v268_v62 = vpop.permute.xlu1 %267  ;;  %v253_v2 = vpop.permute.xlu0 %252 }
 0x157   :  { %v313_v10 = vmul.f32 %v268_v62, %v2979_v1  ;;  %v310_v13 = vmul.f32 %v253_v2, %v2987_v3 }
 0x159   :  { %v323_v21 = vsel %vm100_vm0, %v313_v10, 0.0 }
 0x15a   :  { %v273_v63 = vpop.permute.xlu1 %272  ;;  %v298_v9 = vpop.permute.xlu0 %297 }
 0x15b   :  { %v314_v15 = vmul.f32 %v273_v63, %v2994_v6  ;;  %v319_v32 = vmul.f32 %v298_v9, %v3025_v17  ;;  %v2614_v17 = vld [vmem:[%s3702_s15 + $0x8] ss:$0 sps:$4 sm:$0xff]  }
 0x15c   :  { %v620_v48 = vsel %vm618_vm2, %v2614_v17, 0 }
 0x15d   :  { %v330_v3 = vsel %vm100_vm0, %v314_v15, 0.0 }
 0x15e   :  { %v263_v0 = vpop.permute.xlu1 %262  ;;  %v308_v24 = vpop.permute.xlu0 %307  ;;  %v331_v34 = vadd.f32 %v330_v3, %v329_v31 }
 0x15f   :  { %v312_v18 = vmul.f32 %v263_v0, %v3039_v23  ;;  %v321_v7 = vmul.f32 %v308_v24, %v3046_v26  ;;  %v327_v26 = vsel %vm100_vm0, %v319_v32, 0.0  ;;  %v2340_v0 = vld [vmem:[%s3703_s16] ss:$0 sm:$0xff] }
 0x161   :  { %v336_v6 = vsel %vm100_vm0, %v312_v18, 0.0 }
 0x162   :  { %v278_v4 = vpop.permute.xlu1 %277 }
 0x163   :  { %v315_v12 = vmul.f32 %v278_v4, %v3034_v22  ;;  %v322_v22 = vsel %vm100_vm0, %v310_v13, 0.0 }
 0x164   :  { %v324_v29 = vadd.f32 %v323_v21, %v322_v22 }
 0x165   :  { %v337_v25 = vsel %vm100_vm0, %v315_v12, 0.0 }
 0x166   :  { %v283_v5 = vpop.permute.xlu1 %282  ;;  %v338_v30 = vadd.f32 %v337_v25, %v336_v6 }
 0x167   :  { %v316_v19 = vmul.f32 %v283_v5, %v3011_v11 }
 0x169   :  { %v325_v23 = vsel %vm100_vm0, %v316_v19, 0.0 }
 0x16a   :  { %v288_v14 = vpop.permute.xlu1 %287  ;;  %v326_v35 = vadd.f32 %v325_v23, %v324_v29 }
 0x16b   :  { %v317_v1 = vmul.f32 %v288_v14, %v3004_v8 }
 0x16c   :  { %v328_v44 = vadd.f32 %v327_v26, %v326_v35 }
 0x16d   :  { %v332_v8 = vsel %vm100_vm0, %v317_v1, 0.0 }
 0x16e   :  { %v293_v28 = vpop.permute.xlu1 %292  ;;  %v333_v40 = vadd.f32 %v332_v8, %v331_v34  ;;  %v688_v34 = vld [vmem:[%s3720_s4] sm:$0xff] }
 0x16f   :  { %v318_v11 = vmul.f32 %v293_v28, %v3051_v27  ;;  %v341_v27 = vsel %vm100_vm0, %v321_v7, 0.0 }
 0x171   :  { %v339_v33 = vsel %vm100_vm0, %v318_v11, 0.0 }
 0x172   :  { %v340_v36 = vadd.f32 %v339_v33, %v338_v30  ;;  %v303_v37 = vpop.permute.xlu1 %302 }
 0x173   :  { %v320_v39 = vmul.f32 %v303_v37, %v3020_v16  ;;  %v2615_v16 = vld [vmem:[%s3702_s15] sm:$0xff]   ;;  %v690_v37 = vld [vmem:[%s3720_s4 + $0x10] sm:$0xff] }
 0x174   :  { %v342_v41 = vadd.f32 %v341_v27, %v340_v36  ;;  %v689_v36 = vld [vmem:[%s3720_s4 + $0x8] sm:$0xff] }
 0x175   :  { %v334_v42 = vsel %vm100_vm0, %v320_v39, 0.0  ;;  %v2333_v39 = vld [vmem:[%s3701_s14] ss:$0 sm:$0xff]  ;;  %s2864_s14 = smov 96  }
 0x176   :  { %v335_v45 = vadd.f32 %v334_v42, %v333_v40  ;;  %v344_v47 = vpack.c.bf16 %v342_v41, %v342_v41  ;;  %v683_v32 = vpop.permute.xlu1 %682 }
 0x178   :  { %v343_v46 = vpack.c.bf16 %v335_v45, %v328_v44 }
 0x17a   :  { %2507 = vmatprep.mubr.msk.bf16.mxu0 %vm100_vm0, %v343_v46 }
 0x17b   :  { %2508 = vmatmul.mubr.msk.bf16.vlgmr.msra.gmra.mxu0 %vm100_vm0, %v344_v47 }
 0x17c   :  { %2524 = vmatpush3.bf16.msra.mxu0 %v620_v48  ;;  %2527 = vmatprep.mubr.msk.bf16.mxu0 %vm2862_vm3, %v2860_v59 }
 0x17d   :  { %2525 = vmatprep.subr.bf16.mxu0 %v2860_v59 }
 0x180   :  { %2526 = vmatpush3.bf16.msra.mxu0 %v2615_v16 }
 0x181   :  { %2542 = vmatprep.subr.mxu0 %v2860_v59 }
 0x183   :  { %2528 = vmatmul.mubr.msk.bf16.vlgmr.msra.gmra.mxu0 %vm614_vm4, %v594_v49 }
 0x184   :  { %2548 = vmatprep.mubr.msk.f32.mxu0 %vm2862_vm3, %v2860_v59 }
 0x23b   :  { %v2509_v56 = vpop.f32.mrf.mxu0 }
 0x23c   :  { %v433_v60 = vadd.f32 %v2509_v56, %v2326_v57 }
 0x23d   :  { %v424_v58 = vpop.f32.mrf.mxu0 }
 0x23e   :  { %v425_v61 = vadd.f32 %v2326_v57, %v424_v58  ;;  %2705 = vtanh.f32 %v433_v60 }
 0x23f   :  { %v2510_v62 = vpop.f32.mrf.mxu0 }
 0x240   :  { %2707 = vtanh.f32 %v425_v61 }
 0x241   :  { %v427_v63 = vpop.f32.mrf.mxu0 }
 0x242   :  { %v428_v2 = vadd.f32 %v2326_v57, %v427_v63 }
 0x243   :  { %v656_v4 = vpop.f32.mrf.mxu0 }
 0x244   :  { %2709 = vtanh.f32 %v428_v2  ;;  %v657_v5 = vadd.f32 %v2340_v0, %v656_v4 }
 0x245   :  { %v2529_v9 = vpop.f32.mrf.mxu0 }
 0x246   :  { %v665_v10 = vand.u32 2147483647, %v657_v5  ;;  %v662_v29 = vmax.f32 %v657_v5, 0.0  ;;  %vm663_vm6 = vcmp.ne.f32.partialorder %v657_v5, %v657_v5 }
 0x247   :  { %v659_v12 = vpop.f32.mrf.mxu0 }
 0x248   :  { %v666_v13 = vsub.f32 0.0, %v665_v10 }
 0x249   :  { %v2530_v14 = vpop.f32.mrf.mxu0 }
 0x24a   :  { %v667_v15 = vmul.f32 1.442695, %v666_v13 }
 0x24b   :  { %v2706_v18 = vpop.eup %2705 }
 0x24c   :  { %2711 = vpow2.f32 %v667_v15  ;;  %v442_v24 = vpack.c.bf16 %v2706_v18, %v2706_v18 }
 0x24d   :  { %v2708_v19 = vpop.eup %2707 }
 0x251   :  { %v2710_v20 = vpop.eup %2709 }
 0x252   :  { %v441_v21 = vpack.c.bf16 %v2710_v20, %v2708_v19 }
 0x254   :  { %2519 = vmatprep.mubr.msk.bf16.mxu1 %vm100_vm0, %v441_v21 }
 0x255   :  { %2520 = vmatmul.mubr.msk.bf16.vlgmr.msra.gmra.mxu1 %vm100_vm0, %v442_v24 }
 0x256   :  { %2533 = vmatprep.mubr.msk.f32.mxu1 %vm2862_vm3, %v2860_v59 }
 0x259   :  { %v2712_v25 = vpop.eup %2711 }
 0x25a   :  { %v669_v1 = vadd.f32 1.0, %v2712_v25  ;;  %v672_v22 = vmul.f32 -0.5, %v2712_v25  ;;  %v675_v3 = vand.u32 2147483647, %v2712_v25 }
 0x25c   :  { %2713 = vlog2.f32 %v669_v1  ;;  %v673_v28 = vadd.f32 1.0, %v672_v22  ;;  %vm676_vm5 = vcmp.lt.f32.partialorder %v675_v3, 0.0004427343 }
 0x25e   :  { %v674_v6 = vmul.f32 %v2712_v25, %v673_v28 }
 0x269   :  { %v2714_v23 = vpop.eup %2713 }
 0x26a   :  { %v671_v11 = vmul.f32 0.6931472, %v2714_v23 }
 0x26c   :  { %v677_v7 = vsel %vm676_vm5, %v674_v6, %v671_v11 }
 0x26d   :  { %v678_v30 = vadd.f32 %v677_v7, %v662_v29 }
 0x26f   :  { %v679_v31 = vsel %vm663_vm6, %v657_v5, %v678_v30 }
 0x270   :  { %v680_v8 = vadd.f32 1e-07, %v679_v31 }
 0x272   :  { %v686_v33 = vsel %vm685_vm7, %v657_v5, %v680_v8  ;;  %v910_v8 = vpop.permute.xlu0 %909 }
 0x273   :  { %v687_v35 = vsel %vm100_vm0, %v686_v33, %v683_v32  ;;  %vm1070_vm0 = vcmask 457728  }
 0x274   :  { %2532 = vmatpush3.msk.msra.mxu1 %vm701_vm8, %v687_v35 }
 0x275   :  { %2534 = vmatmul.mubr.msk.f32.vlgmr.msra.gmra.mxu1 %vm691_vm9, %v688_v34 }
 0x276   :  { %2536 = vmatprep.mubr.msk.f32.mxu1 %vm2862_vm3, %v2860_v59 }
 0x279   :  { %2537 = vmatmul.mubr.msk.f32.gmra.mxu1 %vm691_vm9, %v689_v36 }
 0x27a   :  { %2539 = vmatprep.mubr.msk.f32.mxu1 %vm2862_vm3, %v2860_v59 }
 0x27d   :  { %2540 = vmatmul.mubr.msk.f32.gmra.mxu1 %vm691_vm9, %v690_v37 }
 0x27e   :  { %1112 = vmatprep.mubr.bf16.mxu1 %v2859_v38 }
 0x315   :  { %v2521_v27 = vpop.f32.mrf.mxu1 }
 0x316   :  { %v3204_v40 = vadd.f32 %v2521_v27, %v2333_v39 }
 0x317   :  { %v522_v26 = vpop.f32.mrf.mxu1 }
 0x318   :  { %v547_v41 = vand.u32 2147483647, %v3204_v40  ;;  %v3207_v42 = vadd.f32 %v2333_v39, %v522_v26  ;;  %v538_v19 = vmax.f32 %v3204_v40, 0.0  ;;  %vm541_vm12 = vcmp.ne.f32.partialorder %v3204_v40, %v3204_v40 }
 0x319   :  { %v2522_v17 = vpop.f32.mrf.mxu1 }
 0x31a   :  { %v550_v44 = vsub.f32 0.0, %v547_v41  ;;  %v545_v45 = vand.u32 2147483647, %v3207_v42  ;;  %v536_v22 = vmax.f32 %v3207_v42, 0.0  ;;  %vm539_vm13 = vcmp.ne.f32.partialorder %v3207_v42, %v3207_v42  ;;  %v908_v41 = vpop.permute.xlu1 %907 }
 0x31b   :  { %v525_v46 = vpop.f32.mrf.mxu1 }
 0x31c   :  { %v555_v47 = vmul.f32 1.442695, %v550_v44  ;;  %v548_v48 = vsub.f32 0.0, %v545_v45  ;;  %v3210_v16 = vadd.f32 %v2333_v39, %v525_v46 }
 0x31e   :  { %2715 = vpow2.f32 %v555_v47  ;;  %v551_v49 = vmul.f32 1.442695, %v548_v48  ;;  %v546_v50 = vand.u32 2147483647, %v3210_v16  ;;  %v537_v34 = vmax.f32 %v3210_v16, 0.0  ;;  %v906_v48 = vpop.permute.xlu0 %905 }
 0x31f   :  { %vm540_vm15 = vcmp.ne.f32.partialorder %v3210_v16, %v3210_v16 }
 0x320   :  { %2717 = vpow2.f32 %v551_v49  ;;  %v549_v51 = vsub.f32 0.0, %v546_v50 }
 0x322   :  { %v553_v43 = vmul.f32 1.442695, %v549_v51  ;;  %v934_v51 = vld [vmem:[%s3721_s22 + $0x10] sm:$0xff] }
 0x324   :  { %2719 = vpow2.f32 %v553_v43 }
 0x32b   :  { %v2716_v52 = vpop.eup %2715 }
 0x32c   :  { %v575_v53 = vadd.f32 1.0, %v2716_v52  ;;  %v578_v58 = vmul.f32 -0.5, %v2716_v52  ;;  %v581_v2 = vand.u32 2147483647, %v2716_v52 }
 0x32d   :  { %v2718_v54 = vpop.eup %2717 }
 0x32e   :  { %2721 = vlog2.f32 %v575_v53  ;;  %v557_v55 = vadd.f32 1.0, %v2718_v54  ;;  %v560_v61 = vmul.f32 -0.5, %v2718_v54  ;;  %v579_v63 = vadd.f32 1.0, %v578_v58 }
 0x32f   :  { %v563_v12 = vand.u32 2147483647, %v2718_v54  ;;  %vm582_vm10 = vcmp.lt.f32.partialorder %v581_v2, 0.0004427343 }
 0x330   :  { %2723 = vlog2.f32 %v557_v55  ;;  %v561_v4 = vadd.f32 1.0, %v560_v61  ;;  %v580_v14 = vmul.f32 %v2716_v52, %v579_v63  ;;  %v932_v63 = vld [vmem:[%s3721_s22] sm:$0xff] }
 0x331   :  { %v2720_v56 = vpop.eup %2719  ;;  %vm564_vm11 = vcmp.lt.f32.partialorder %v563_v12, 0.0004427343  ;;  %v941_v12 = vld [vmem:[%s3693_s6] sm:$0xf] }
 0x332   :  { %v566_v57 = vadd.f32 1.0, %v2720_v56  ;;  %v569_v5 = vmul.f32 -0.5, %v2720_v56  ;;  %v562_v20 = vmul.f32 %v2718_v54, %v561_v4  ;;  %v572_v28 = vand.u32 2147483647, %v2720_v56 }
 0x334   :  { %2725 = vlog2.f32 %v566_v57  ;;  %v570_v25 = vadd.f32 1.0, %v569_v5  ;;  %vm573_vm14 = vcmp.lt.f32.partialorder %v572_v28, 0.0004427343 }
 0x335   :  { %v3213_v60 = vpop.f32.mrf.mxu1 }
 0x336   :  { %2727 = vrcp.f32 %v3213_v60  ;;  %v571_v31 = vmul.f32 %v2720_v56, %v570_v25  ;;  %v933_v56 = vld [vmem:[%s3721_s22 + $0x8] sm:$0xff]  ;;  %v794_v25 = vsub.f32 %v3207_v42, %v3213_v60 }
 0x337   :  { %v2535_v62 = vpop.f32.mrf.mxu1 }
 0x339   :  { %v3216_v0 = vpop.f32.mrf.mxu1 }
 0x33a   :  { %2729 = vrcp.f32 %v3216_v0 }
 0x33b   :  { %v2722_v9 = vpop.eup %2721  ;;  %v2538_v10 = vpop.f32.mrf.mxu1 }
 0x33c   :  { %v577_v13 = vmul.f32 0.6931472, %v2722_v9 }
 0x33d   :  { %v2724_v15 = vpop.eup %2723  ;;  %v3219_v18 = vpop.f32.mrf.mxu1 }
 0x33e   :  { %2731 = vrcp.f32 %v3219_v18  ;;  %v583_v21 = vsel %vm582_vm10, %v580_v14, %v577_v13  ;;  %v559_v24 = vmul.f32 0.6931472, %v2724_v15  ;;  %v2364_v14 = vld [vmem:[%s3693_s6 + $0x4] sm:$0xf]  ;;  %v795_v15 = vsub.f32 %v3210_v16, %v3216_v0 }
 0x33f   :  { %v586_v1 = vadd.f32 %v583_v21, %v538_v19  ;;  %v2541_v3 = vpop.f32.mrf.mxu1 }
 0x340   :  { %v565_v6 = vsel %vm564_vm11, %v562_v20, %v559_v24 }
 0x341   :  { %v2726_v23 = vpop.eup %2725  ;;  %v589_v11 = vsel %vm541_vm12, %v3204_v40, %v586_v1  ;;  %v584_v29 = vadd.f32 %v565_v6, %v536_v22  ;;  %v850_v6 = vld [vmem:[%s3692_s5 + $0x10] sm:$0xff] }
 0x342   :  { %v592_v7 = vadd.f32 1e-07, %v589_v11  ;;  %v568_v30 = vmul.f32 0.6931472, %v2726_v23  ;;  %v2624_v11 = vld [vmem:[%s3704_s17 + $0x24] ss:$8 sps:$4 sm:$0xff]  }
 0x343   :  { %v2728_v32 = vpop.eup %2727  ;;  %v587_v33 = vsel %vm539_vm13, %v3207_v42, %v584_v29  ;;  %v2372_v29 = vld [vmem:[%s3704_s17 + $0x68] sm:$0xff] }
 0x344   :  { %v916_v35 = vmul.f32 %v910_v8, %v592_v7  ;;  %v590_v36 = vadd.f32 1e-07, %v587_v33  ;;  %v574_v37 = vsel %vm573_vm14, %v571_v31, %v568_v30  ;;  %v2380_v30 = vcombine.low %v2372_v29, %v2372_v29  ;;  %v2622_v8 = vld [vmem:[%s3704_s17 + $0x20] ss:$8 sps:$4 sm:$0xff]  }
 0x345   :  { %v585_v39 = vadd.f32 %v574_v37, %v537_v34  ;;  %v2629_v34 = vld [vmem:[%s3704_s17 + $0x14] ss:$8 sps:$4 sm:$0xff]   ;;  %v2635_v37 = vld [vmem:[%s3704_s17 + $0x4] ss:$8 sps:$4 sm:$0xff]  }
 0x346   :  { %924 = vrot.lane.b32.xlu1 %v916_v35, %s2864_s14  ;;  %v3234_v27 = vmul.f32 %v2728_v32, %v590_v36  ;;  %v914_v50 = vmul.f32 %v906_v48, %v590_v36  ;;  %v2632_v32 = vld [vmem:[%s3704_s17 + $0x5c] ss:$8 sps:$4 sm:$0xff]   ;;  %v1346_v33 = vsel %vm618_vm2, %v2380_v30, 0  ;;  %v2630_v35 = vld [vmem:[%s3704_s17 + $0x58] ss:$8 sps:$4 sm:$0xff]  }
 0x347   :  { %v2730_v26 = vpop.eup %2729  ;;  %v588_v17 = vsel %vm540_vm15, %v3210_v16, %v585_v39  ;;  %v2627_v36 = vld [vmem:[%s3704_s17 + $0x10] ss:$8 sps:$4 sm:$0xff]   ;;  %v2633_v39 = vld [vmem:[%s3704_s17] ss:$8 sps:$4 sm:$0xff]  }
 0x348   :  { %v591_v44 = vadd.f32 1e-07, %v588_v17  ;;  %v2639_v17 = vld [vmem:[%s3704_s17 + $0x38] ss:$8 sps:$4 sm:$0xff]  }
 0x34a   :  { %v915_v45 = vmul.f32 %v908_v41, %v591_v44  ;;  %804 = vrot.lane.b32.xlu1 %v3219_v18, %s2864_s14  ;;  %v3239_v46 = vmul.f32 %v2730_v26, %v591_v44  ;;  %v2636_v26 = vld [vmem:[%s3704_s17 + $0x48] ss:$8 sps:$4 sm:$0xff]   ;;  %v2638_v41 = vld [vmem:[%s3704_s17 + $0x4c] ss:$8 sps:$4 sm:$0xff]   ;;  %v2641_v44 = vld [vmem:[%s3704_s17 + $0x3c] ss:$8 sps:$4 sm:$0xff]  }
 0x34b   :  { %v2732_v47 = vpop.eup %2731 }
 0x34c   :  { %922 = vrot.lane.b32.xlu0 %v915_v45, %s2864_s14  ;;  %v3242_v49 = vmul.f32 %v2732_v47, %v592_v7  ;;  %v2381_v7 = vcombine.high %v2372_v29, %v2372_v29 }
 0x34e   :  { %802 = vrot.lane.b32.xlu1 %v3216_v0, %s2864_s14  ;;  %v796_v0 = vsub.f32 %v3204_v40, %v3219_v18 }
 0x350   :  { %920 = vrot.lane.b32.xlu0 %v914_v50, %s2864_s14  ;;  %v2396_v50 = vld [vmem:[%s3704_s17 + $0xa0] sm:$0xff] }
 0x354   :  { %800 = vrot.lane.b32.xlu0 %v3213_v60, %s2864_s14  ;;  %v1022_v60 = vld [vmem:[%s3704_s17 + $0x30] sm:$0xff] }
 0x355   :  { %v2359_v18 = vcombine.high %v1022_v60, %v1022_v60  ;;  %v2358_v23 = vcombine.low %v1022_v60, %v1022_v60 }
 0x357   :  { %2360 = vmatprep.subr.msk.bf16.mxu1 %vm618_vm2, %v2359_v18  ;;  %v1075_v31 = vsel %vm618_vm2, %v2358_v23, 0 }
 0x358   :  { %1089 = vmatpush1.bf16.msra.mxu1 %v1075_v31 }
 0x359   :  { %1090 = vmatprep.subr.bf16.mxu1 %v2624_v11 }
 0x35c   :  { %1091 = vmatpush1.bf16.msra.mxu1 %v2622_v8 }
 0x35d   :  { %1092 = vmatprep.subr.bf16.mxu1 %v2629_v34 }
 0x360   :  { %1093 = vmatpush1.bf16.msra.mxu1 %v2627_v36 }
 0x361   :  { %1094 = vmatprep.subr.bf16.mxu1 %v2635_v37 }
 0x364   :  { %1095 = vmatpush1.bf16.msra.mxu1 %v2633_v39 }
 0x365   :  { %2560 = vmatprep.subr.mxu1 %v2860_v59 }
 0x3b8   :  { %v925_v43 = vpop.permute.xlu1 %924 }
 0x3b9   :  { %v931_v52 = vadd.f32 %v925_v43, %v3204_v40  ;;  %v849_v40 = vld [vmem:[%s3692_s5 + $0x8] sm:$0xff]  ;;  %v2404_v43 = vcombine.low %v2396_v50, %v2396_v50 }
 0x3bb   :  { %v937_v53 = vmul.f32 %v934_v51, %v931_v52  ;;  %v2405_v51 = vcombine.high %v2396_v50, %v2396_v50 }
 0x3bc   :  { %v805_v54 = vpop.permute.xlu1 %804 }
 0x3bd   :  { %v3254_v55 = vsel %vm685_vm7, %v937_v53, %v805_v54 }
 0x3be   :  { %2543 = vmatpush3.msra.mxu0 %v3254_v55  ;;  %v923_v57 = vpop.permute.xlu0 %922 }
 0x3bf   :  { %v930_v58 = vadd.f32 %v923_v57, %v3210_v16  ;;  %2544 = vmatprep.subr.mxu0 %v2860_v59  ;;  %v848_v16 = vld [vmem:[%s3692_s5] sm:$0xff]  ;;  %v1617_v57 = vsel %vm618_vm2, %v2404_v43, 0 }
 0x3c0   :  { %v803_v61 = vpop.permute.xlu1 %802 }
 0x3c1   :  { %v936_v62 = vmul.f32 %v933_v56, %v930_v58  ;;  %2733 = vrcp.f32 %v803_v61  ;;  %v2388_v56 = vld [vmem:[%s3693_s6 + $0x8] sm:$0xf]  ;;  %v2412_v58 = vld [vmem:[%s3693_s6 + $0xc] sm:$0xf] }
 0x3c2   :  { %v921_v2 = vpop.permute.xlu0 %920  ;;  %2735 = vrcp.f32 %v805_v54 }
 0x3c3   :  { %v3266_v4 = vsel %vm685_vm7, %v936_v62, %v803_v61  ;;  %v929_v5 = vadd.f32 %v921_v2, %v3207_v42  ;;  %v2420_v61 = vld [vmem:[%s3704_s17 + $0xd8] sm:$0xff] }
 0x3c4   :  { %2545 = vmatpush3.msra.mxu0 %v3266_v4  ;;  %v2429_v62 = vcombine.high %v2420_v61, %v2420_v61  ;;  %v2647_v2 = vld [vmem:[%s3704_s17 + $0x94] ss:$8 sps:$4 sm:$0xff]  }
 0x3c5   :  { %v935_v9 = vmul.f32 %v932_v63, %v929_v5  ;;  %2546 = vmatprep.subr.mxu0 %v2860_v59  ;;  %v2428_v63 = vcombine.low %v2420_v61, %v2420_v61  ;;  %v2645_v5 = vld [vmem:[%s3704_s17 + $0x90] ss:$8 sps:$4 sm:$0xff]  }
 0x3c6   :  { %v801_v10 = vpop.permute.xlu0 %800  ;;  %v2436_v61 = vld [vmem:[%s3693_s6 + $0x10] sm:$0xf]  ;;  %s2865_s6 = smov 16  }
 0x3c7   :  { %2737 = vrcp.f32 %v801_v10  ;;  %v3275_v13 = vsel %vm685_vm7, %v935_v9, %v801_v10  ;;  %v1888_v9 = vsel %vm618_vm2, %v2428_v63, 0  ;;  %v2651_v10 = vld [vmem:[%s3704_s17 + $0xcc] ss:$8 sps:$4 sm:$0xff]  }
 0x3c8   :  { %2547 = vmatpush3.msra.mxu0 %v3275_v13 }
 0x3c9   :  { %2549 = vmatmul.mubr.msk.f32.vlgmr.msra.gmra.mxu0 %vm614_vm4, %v941_v12  ;;  %2551 = vmatprep.subr.mxu0 %v2860_v59  ;;  %v2649_v12 = vld [vmem:[%s3704_s17 + $0xc8] ss:$8 sps:$4 sm:$0xff]  }
 0x3ca   :  { %2552 = vmatpush3.msra.mxu0 %v3254_v55  ;;  %2557 = vmatprep.mubr.msk.f32.mxu0 %vm2862_vm3, %v2860_v59 }
 0x3cb   :  { %2553 = vmatprep.subr.mxu0 %v2860_v59 }
 0x3cc   :  { %2554 = vmatpush3.msra.mxu0 %v3266_v4 }
 0x3cd   :  { %2555 = vmatprep.subr.mxu0 %v2860_v59 }
 0x3ce   :  { %v2734_v19 = vpop.eup %2733  ;;  %2556 = vmatpush3.msra.mxu0 %v3275_v13 }
 0x3cf   :  { %2558 = vmatmul.mubr.msk.f32.vlgmr.msra.gmra.mxu0 %vm614_vm4, %v2364_v14  ;;  %v812_v20 = vmul.f32 %v2734_v19, %v795_v15  ;;  %v2736_v24 = vpop.eup %2735  ;;  %2382 = vmatprep.subr.msk.bf16.mxu0 %vm618_vm2, %v2381_v7  ;;  %v2654_v14 = vld [vmem:[%s3704_s17 + $0x84] ss:$8 sps:$4 sm:$0xff]   ;;  %v2652_v15 = vld [vmem:[%s3704_s17 + $0x80] ss:$8 sps:$4 sm:$0xff]  }
 0x3d0   :  { %1383 = vmatprep.mubr.bf16.mxu0 %v2859_v38  ;;  %v814_v3 = vmul.f32 %v2736_v24, %v796_v0  ;;  %1360 = vmatpush1.bf16.msra.mxu0 %v1346_v33  ;;  %v2657_v19 = vld [vmem:[%s3704_s17 + $0xbc] ss:$8 sps:$4 sm:$0xff]   ;;  %v2658_v24 = vld [vmem:[%s3704_s17 + $0x70] ss:$8 sps:$4 sm:$0xff]  }
 0x3d1   :  { %v816_v21 = vmul.f32 %v812_v20, %v812_v20  ;;  %1361 = vmatprep.subr.bf16.mxu0 %v2632_v32  ;;  %v2655_v20 = vld [vmem:[%s3704_s17 + $0xb8] ss:$8 sps:$4 sm:$0xff]  }
 0x3d2   :  { %v817_v42 = vmul.f32 %v814_v3, %v814_v3 }
 0x3d3   :  { %823 = vrot.lane.b32.xlu0 %v816_v21, %s2863_s3  ;;  %v2660_v21 = vld [vmem:[%s3704_s17 + $0x74] ss:$8 sps:$4 sm:$0xff]  }
 0x3d4   :  { %v2738_v1 = vpop.eup %2737  ;;  %1362 = vmatpush1.bf16.msra.mxu0 %v2630_v35 }
 0x3d5   :  { %v810_v22 = vmul.f32 %v2738_v1, %v794_v25  ;;  %1363 = vmatprep.subr.bf16.mxu0 %v2638_v41  ;;  %v2663_v25 = vld [vmem:[%s3704_s17 + $0xac] ss:$8 sps:$4 sm:$0xff]   ;;  %v2661_v1 = vld [vmem:[%s3704_s17 + $0xa8] ss:$8 sps:$4 sm:$0xff]  }
 0x3d7   :  { %853 = vperm.xlu0 %2608, %v848_v16   ;;  %v815_v28 = vmul.f32 %v810_v22, %v810_v22  ;;  %v1025_v16 = vlaneseq }
 0x3d8   :  { %1364 = vmatpush1.bf16.msra.mxu0 %v2636_v26 }
 0x3d9   :  { %821 = vrot.lane.b32.xlu1 %v815_v28, %s2863_s3  ;;  %1365 = vmatprep.subr.bf16.mxu0 %v2641_v44  ;;  %v1026_v0 = vshrl.u32 %v1025_v16, 7  ;;  %v1023_v28 = vld [vmem:[%s3705_s18] sm:$0x3] }
 0x3db   :  { %863 = vperm.xlu0 %2608, %v850_v6   ;;  %v3431_v22 = vsub.s32 0, %v1026_v0  ;;  %v3436_v3 = vsub.s32 1, %v1026_v0 }
 0x3dc   :  { %1366 = vmatpush1.bf16.msra.mxu0 %v2639_v17 }
 0x3dd   :  { %825 = vrot.lane.b32.xlu1 %v817_v42, %s2863_s3  ;;  %2569 = vmatprep.subr.mxu0 %v2860_v59  ;;  %v1028_v6 = vrot.slane %v1023_v28, %v3431_v22  ;;  %v1032_v42 = vrot.slane %v1023_v28, %v3436_v3 }
 0x3e1   :  { %858 = vperm.xlu1 %2609, %v849_v40   ;;  %v2373_v40 = vld [vmem:[%s3705_s18 + $0x2] sm:$0x3] }
 0x3e2   :  { %v1300_v7 = vrot.slane %v2373_v40, %v3431_v22  ;;  %v1304_v8 = vrot.slane %v2373_v40, %v3436_v3 }
 0x489   :  { %v1011_v45 = vpop.f32.mrf.mxu0 }
 0x48a   :  { %v1015_v47 = vpack.c.bf16 %v1011_v45, %v1011_v45 }
 0x48b   :  { %v2550_v48 = vpop.f32.mrf.mxu0 }
 0x48c   :  { %2361 = vmatmul.mubr.msk.bf16.vlgmr.msra.gmra.mxu1 %vm1070_vm0, %v1015_v47 }
 0x48d   :  { %2561 = vmatpush3.msra.mxu1 %v3254_v55  ;;  %2566 = vmatprep.mubr.msk.f32.mxu1 %vm2862_vm3, %v2860_v59 }
 0x48e   :  { %2562 = vmatprep.subr.mxu1 %v2860_v59 }
 0x48f   :  { %2563 = vmatpush3.msra.mxu1 %v3266_v4  ;;  %v1281_v52 = vpop.f32.mrf.mxu0 }
 0x490   :  { %v1285_v53 = vpack.c.bf16 %v1281_v52, %v1281_v52  ;;  %2564 = vmatprep.subr.mxu1 %v2860_v59 }
 0x491   :  { %2565 = vmatpush3.msra.mxu1 %v3275_v13  ;;  %v2559_v54 = vpop.f32.mrf.mxu0 }
 0x492   :  { %2383 = vmatmul.mubr.msk.bf16.vlgmr.msra.gmra.mxu0 %vm1070_vm0, %v1285_v53  ;;  %2406 = vmatprep.subr.msk.bf16.mxu1 %vm618_vm2, %v2405_v51 }
 0x493   :  { %2570 = vmatpush3.msra.mxu0 %v3254_v55  ;;  %2575 = vmatprep.mubr.msk.f32.mxu0 %vm2862_vm3, %v2860_v59 }
 0x494   :  { %2571 = vmatprep.subr.mxu0 %v2860_v59  ;;  %2567 = vmatmul.mubr.msk.f32.vlgmr.msra.gmra.mxu1 %vm614_vm4, %v2388_v56 }
 0x495   :  { %2572 = vmatpush3.msra.mxu0 %v3266_v4  ;;  %1631 = vmatpush1.bf16.msra.mxu1 %v1617_v57 }
 0x496   :  { %2573 = vmatprep.subr.mxu0 %v2860_v59  ;;  %1654 = vmatprep.mubr.bf16.mxu1 %v2859_v38 }
 0x497   :  { %2574 = vmatpush3.msra.mxu0 %v3275_v13  ;;  %1632 = vmatprep.subr.bf16.mxu1 %v2647_v2 }
 0x498   :  { %2430 = vmatprep.subr.msk.bf16.mxu0 %vm618_vm2, %v2429_v62 }
 0x499   :  { %1633 = vmatpush1.bf16.msra.mxu1 %v2645_v5 }
 0x49a   :  { %2576 = vmatmul.mubr.msk.f32.vlgmr.msra.gmra.mxu0 %vm614_vm4, %v2412_v58  ;;  %1634 = vmatprep.subr.bf16.mxu1 %v2654_v14 }
 0x49b   :  { %1925 = vmatprep.mubr.bf16.mxu0 %v2859_v38  ;;  %1902 = vmatpush1.bf16.msra.mxu0 %v1888_v9 }
 0x49c   :  { %1903 = vmatprep.subr.bf16.mxu0 %v2651_v10 }
 0x49d   :  { %1635 = vmatpush1.bf16.msra.mxu1 %v2652_v15 }
 0x49e   :  { %1636 = vmatprep.subr.bf16.mxu1 %v2660_v21 }
 0x49f   :  { %1904 = vmatpush1.bf16.msra.mxu0 %v2649_v12 }
 0x4a0   :  { %1905 = vmatprep.subr.bf16.mxu0 %v2657_v19 }
 0x4a1   :  { %1637 = vmatpush1.bf16.msra.mxu1 %v2658_v24 }
 0x4a3   :  { %1906 = vmatpush1.bf16.msra.mxu0 %v2655_v20 }
 0x4a4   :  { %1907 = vmatprep.subr.bf16.mxu0 %v2663_v25 }
 0x4a7   :  { %1908 = vmatpush1.bf16.msra.mxu0 %v2661_v1 }
 0x4a8   :  { %2578 = vmatprep.subr.mxu0 %v2860_v59 }
 0x54c   :  { %v1114_v60 = vpop.f32.mrf.mxu1 }
 0x54d   :  { %v3443_v18 = vadd.f32 %v1114_v60, %v1028_v6 }
 0x54e   :  { %v1116_v23 = vpop.f32.mrf.mxu1 }
 0x54f   :  { %v1127_v11 = vand.u32 2147483647, %v3443_v18  ;;  %v3446_v29 = vadd.f32 %v1116_v23, %v1032_v42  ;;  %v1121_v0 = vmax.f32 %v3443_v18, 0.0 }
 0x550   :  { %v1118_v30 = vpop.f32.mrf.mxu1 }
 0x551   :  { %v1129_v31 = vsub.f32 0.0, %v1127_v11  ;;  %v1128_v32 = vand.u32 2147483647, %v3446_v29  ;;  %v1122_v16 = vmax.f32 %v3446_v29, 0.0  ;;  %vm1124_vm5 = vcmp.ne.f32.partialorder %v3446_v29, %v3446_v29 }
 0x552   :  { %v1119_v33 = vpop.f32.mrf.mxu1  ;;  %v1385_v34 = vpop.f32.mrf.mxu0 }
 0x553   :  { %v1131_v35 = vmul.f32 1.442695, %v1129_v31  ;;  %v1130_v36 = vsub.f32 0.0, %v1128_v32  ;;  %v3451_v37 = vadd.f32 %v1385_v34, %v1300_v7 }
 0x554   :  { %v1387_v39 = vpop.f32.mrf.mxu0  ;;  %v1552_v26 = vpop.f32.mrf.mxu1 }
 0x555   :  { %2739 = vpow2.f32 %v1131_v35  ;;  %v1133_v41 = vmul.f32 1.442695, %v1130_v36  ;;  %v1398_v17 = vand.u32 2147483647, %v3451_v37  ;;  %v3454_v44 = vadd.f32 %v1387_v39, %v1304_v8 }
 0x556   :  { %v1389_v45 = vpop.f32.mrf.mxu0  ;;  %v1556_v47 = vpack.c.bf16 %v1552_v26, %v1552_v26  ;;  %v2568_v48 = vpop.f32.mrf.mxu1  ;;  %v1392_v26 = vmax.f32 %v3451_v37, 0.0  ;;  %vm1394_vm9 = vcmp.ne.f32.partialorder %v3451_v37, %v3451_v37 }
 0x557   :  { %2741 = vpow2.f32 %v1133_v41  ;;  %v1400_v50 = vsub.f32 0.0, %v1398_v17  ;;  %v1399_v51 = vand.u32 2147483647, %v3454_v44  ;;  %v1393_v48 = vmax.f32 %v3454_v44, 0.0 }
 0x558   :  { %v1390_v43 = vpop.f32.mrf.mxu0  ;;  %2407 = vmatmul.mubr.msk.bf16.vlgmr.msra.gmra.mxu1 %vm1070_vm0, %v1556_v47  ;;  %vm1395_vm10 = vcmp.ne.f32.partialorder %v3454_v44, %v3454_v44 }
 0x559   :  { %v1402_v52 = vmul.f32 1.442695, %v1400_v50  ;;  %v1401_v53 = vsub.f32 0.0, %v1399_v51  ;;  %2196 = vmatprep.mubr.bf16.mxu1 %v2859_v38 }
 0x55a   :  { %v1823_v54 = vpop.f32.mrf.mxu0 }
 0x55b   :  { %2743 = vpow2.f32 %v1402_v52  ;;  %v1404_v56 = vmul.f32 1.442695, %v1401_v53  ;;  %v1827_v57 = vpack.c.bf16 %v1823_v54, %v1823_v54 }
 0x55c   :  { %v2577_v58 = vpop.f32.mrf.mxu0 }
 0x55d   :  { %2745 = vpow2.f32 %v1404_v56  ;;  %2431 = vmatmul.mubr.msk.bf16.vlgmr.msra.gmra.mxu0 %vm1070_vm0, %v1827_v57  ;;  %v2444_v56 = vld [vmem:[%s3704_s17 + $0x110] sm:$0xff] }
 0x55e   :  { %2579 = vmatpush3.msra.mxu0 %v3254_v55  ;;  %2584 = vmatprep.mubr.msk.f32.mxu0 %vm2862_vm3, %v2860_v59  ;;  %v2453_v58 = vcombine.high %v2444_v56, %v2444_v56 }
 0x55f   :  { %2580 = vmatprep.subr.mxu0 %v2860_v59 }
 0x560   :  { %2581 = vmatpush3.msra.mxu0 %v3266_v4  ;;  %2454 = vmatprep.subr.msk.bf16.mxu1 %vm618_vm2, %v2453_v58 }
 0x561   :  { %2582 = vmatprep.subr.mxu0 %v2860_v59 }
 0x562   :  { %v2740_v38 = vpop.eup %2739  ;;  %2583 = vmatpush3.msra.mxu0 %v3275_v13 }
 0x563   :  { %v1135_v62 = vadd.f32 1.0, %v2740_v38  ;;  %v1138_v4 = vmul.f32 -0.5, %v2740_v38  ;;  %v1141_v12 = vand.u32 2147483647, %v2740_v38 }
 0x564   :  { %v2742_v63 = vpop.eup %2741 }
 0x565   :  { %2585 = vmatmul.mubr.msk.f32.vlgmr.msra.gmra.mxu0 %vm614_vm4, %v2436_v61  ;;  %2747 = vlog2.f32 %v1135_v62  ;;  %v1144_v55 = vadd.f32 1.0, %v2742_v63  ;;  %v1147_v10 = vmul.f32 -0.5, %v2742_v63  ;;  %v1139_v13 = vadd.f32 1.0, %v1138_v4  ;;  %v2671_v4 = vld [vmem:[%s3704_s17 + $0xf4] ss:$8 sps:$4 sm:$0xff]  }
 0x566   :  { %v1150_v20 = vand.u32 2147483647, %v2742_v63  ;;  %vm1142_vm1 = vcmp.lt.f32.partialorder %v1141_v12, 0.0004427343  ;;  %vm1123_vm4 = vcmp.ne.f32.partialorder %v3443_v18, %v3443_v18  ;;  %v3520_v12 = vpop.permute.xlu0 %823 }
 0x567   :  { %2749 = vlog2.f32 %v1144_v55  ;;  %v1148_v14 = vadd.f32 1.0, %v1147_v10  ;;  %v1140_v25 = vmul.f32 %v2740_v38, %v1139_v13  ;;  %v2452_v55 = vcombine.low %v2444_v56, %v2444_v56  ;;  %v2672_v10 = vld [vmem:[%s3704_s17 + $0xe0] ss:$8 sps:$4 sm:$0xff]   ;;  %v2674_v13 = vld [vmem:[%s3704_s17 + $0xe4] ss:$8 sps:$4 sm:$0xff]  }
 0x568   :  { %v2744_v2 = vpop.eup %2743  ;;  %vm1151_vm3 = vcmp.lt.f32.partialorder %v1150_v20, 0.0004427343 }
 0x569   :  { %v1406_v5 = vadd.f32 1.0, %v2744_v2  ;;  %v1409_v15 = vmul.f32 -0.5, %v2744_v2  ;;  %v1149_v42 = vmul.f32 %v2742_v63, %v1148_v14  ;;  %v1412_v23 = vand.u32 2147483647, %v2744_v2  ;;  %v3522_v14 = vpop.permute.xlu1 %821 }
 0x56a   :  { %v2746_v9 = vpop.eup %2745 }
 0x56b   :  { %2751 = vlog2.f32 %v1406_v5  ;;  %v1415_v59 = vadd.f32 1.0, %v2746_v9  ;;  %v1418_v21 = vmul.f32 -0.5, %v2746_v9  ;;  %v1410_v60 = vadd.f32 1.0, %v1409_v15  ;;  %v2668_v5 = vld [vmem:[%s3704_s17 + $0x104] ss:$8 sps:$4 sm:$0xff]   ;;  %v3524_v15 = vpop.permute.xlu0 %853 }
 0x56c   :  { %v1421_v8 = vand.u32 2147483647, %v2746_v9  ;;  %vm1413_vm6 = vcmp.lt.f32.partialorder %v1412_v23, 0.0004427343 }
 0x56d   :  { %2753 = vlog2.f32 %v1415_v59  ;;  %v1419_v11 = vadd.f32 1.0, %v1418_v21  ;;  %v1411_v35 = vmul.f32 %v2744_v2, %v1410_v60  ;;  %v2159_v2 = vsel %vm618_vm2, %v2452_v55, 0  ;;  %v2669_v59 = vld [vmem:[%s3704_s17 + $0xf0] ss:$8 sps:$4 sm:$0xff]  }
 0x56e   :  { %vm1422_vm8 = vcmp.lt.f32.partialorder %v1421_v8, 0.0004427343  ;;  %2173 = vmatpush1.bf16.msra.mxu1 %v2159_v2  ;;  %vm1167_vm2 = vcmask 130048  }
 0x56f   :  { %v1420_v41 = vmul.f32 %v2746_v9, %v1419_v11  ;;  %v2666_v9 = vld [vmem:[%s3704_s17 + $0x100] ss:$8 sps:$4 sm:$0xff]   ;;  %2174 = vmatprep.subr.bf16.mxu1 %v2668_v5  ;;  %v3528_v20 = vpop.permute.xlu0 %863 }
 0x572   :  { %v2748_v19 = vpop.eup %2747  ;;  %2175 = vmatpush1.bf16.msra.mxu1 %v2666_v9 }
 0x573   :  { %v1137_v24 = vmul.f32 0.6931472, %v2748_v19  ;;  %2176 = vmatprep.subr.bf16.mxu1 %v2671_v4  ;;  %v3526_v19 = vpop.permute.xlu1 %825 }
 0x574   :  { %v2750_v1 = vpop.eup %2749 }
 0x575   :  { %v1143_v28 = vsel %vm1142_vm1, %v1140_v25, %v1137_v24  ;;  %v1146_v6 = vmul.f32 0.6931472, %v2750_v1 }
 0x576   :  { %v1153_v40 = vadd.f32 %v1143_v28, %v1121_v0  ;;  %2177 = vmatpush1.bf16.msra.mxu1 %v2669_v59  ;;  %v2384_v28 = vld [vmem:[%s3694_s7 + $0x4] sm:$0xf] }
 0x577   :  { %v1152_v7 = vsel %vm1151_vm3, %v1149_v42, %v1146_v6  ;;  %2178 = vmatprep.subr.bf16.mxu1 %v2674_v13  ;;  %v3530_v21 = vpop.permute.xlu1 %858  ;;  %v1432_v6 = vsub.f32 %v2384_v28, %v3451_v37 }
 0x578   :  { %v2752_v30 = vpop.eup %2751  ;;  %v1155_v31 = vsel %vm1123_vm4, %v3443_v18, %v1153_v40  ;;  %v1154_v32 = vadd.f32 %v1152_v7, %v1122_v16  ;;  %v2397_v40 = vld [vmem:[%s3705_s18 + $0x4] sm:$0x3]  ;;  %v2421_v7 = vld [vmem:[%s3705_s18 + $0x6] sm:$0x3] }
 0x579   :  { %v1157_v33 = vadd.f32 1e-06, %v1155_v31  ;;  %v1408_v34 = vmul.f32 0.6931472, %v2752_v30  ;;  %v1571_v23 = vrot.slane %v2397_v40, %v3431_v22  ;;  %v1575_v11 = vrot.slane %v2397_v40, %v3436_v3 }
 0x57a   :  { %v2754_v36 = vpop.eup %2753  ;;  %v1156_v39 = vsel %vm1124_vm5, %v3446_v29, %v1154_v32  ;;  %2179 = vmatpush1.bf16.msra.mxu1 %v2672_v10 }
 0x57b   :  { %2755 = vlog2.f32 %v1157_v33  ;;  %1163 = vrot.lane.b32.xlu1 %v1157_v33, %s2865_s6  ;;  %v1158_v17 = vadd.f32 1e-06, %v1156_v39  ;;  %v1414_v45 = vsel %vm1413_vm6, %v1411_v35, %v1408_v34  ;;  %v1417_v47 = vmul.f32 0.6931472, %v2754_v36 }
 0x57c   :  { %v1424_v50 = vadd.f32 %v1414_v45, %v1392_v26  ;;  %v1846_v34 = vrot.slane %v2421_v7, %v3436_v3 }
 0x57d   :  { %1165 = vrot.lane.b32.xlu0 %v1158_v17, %s2865_s6  ;;  %2757 = vlog2.f32 %v1158_v17  ;;  %v1423_v29 = vsel %vm1422_vm8, %v1420_v41, %v1417_v47 }
 0x57e   :  { %v1426_v51 = vsel %vm1394_vm9, %v3451_v37, %v1424_v50  ;;  %v1425_v43 = vadd.f32 %v1423_v29, %v1393_v48  ;;  %v1842_v37 = vrot.slane %v2421_v7, %v3431_v22  ;;  %vm1196_vm9 = vcmask 912384  }
 0x57f   :  { %v1428_v52 = vadd.f32 1e-06, %v1426_v51 }
 0x580   :  { %v1427_v53 = vsel %vm1395_vm10, %v3454_v44, %v1425_v43 }
 0x581   :  { %2759 = vlog2.f32 %v1428_v52  ;;  %1435 = vrot.lane.b32.xlu1 %v1428_v52, %s2865_s6  ;;  %v3490_v54 = vadd.f32 1e-06, %v1427_v53 }
 0x583   :  { %1437 = vrot.lane.b32.xlu0 %v3490_v54, %s2865_s6 }
 0x588   :  { %v2756_v57 = vpop.eup %2755 }
 0x589   :  { %v1175_v38 = vmul.f32 0.6931472, %v2756_v57 }
 0x58a   :  { %v2758_v61 = vpop.eup %2757 }
 0x58b   :  { %1180 = vrot.lane.b32.xlu1 %v1175_v38, %s2865_s6  ;;  %v1177_v44 = vmul.f32 0.6931472, %v2758_v61 }
 0x58d   :  { %1182 = vrot.lane.b32.xlu0 %v1177_v44, %s2865_s6 }
 0x58e   :  { %v2760_v62 = vpop.eup %2759 }
 0x58f   :  { %v1446_v63 = vmul.f32 0.6931472, %v2760_v62 }
 0x591   :  { %1451 = vrot.lane.b32.xlu1 %v1446_v63, %s2865_s6 }
 0x5ed   :  { %v3532_v24 = vpop.permute.xlu1 %1163 }
 0x5ef   :  { %v3534_v25 = vpop.permute.xlu0 %1165 }
 0x5f3   :  { %v1436_v1 = vpop.permute.xlu1 %1435 }
 0x5f5   :  { %v1438_v16 = vpop.permute.xlu0 %1437 }
 0x5f6   :  { %v1439_v0 = vsel %vm1167_vm2, %v1436_v1, %v1438_v16 }
 0x5f7   :  { %2761 = vrcp.f32 %v1439_v0 }
 0x604   :  { %v2762_v42 = vpop.eup %2761 }
 0x605   :  { %v3541_v60 = vmul.f32 %v2762_v42, %v1432_v6 }
 0x618   :  { %v1656_v30 = vpop.f32.mrf.mxu1 }
 0x619   :  { %v3551_v31 = vadd.f32 %v1656_v30, %v1571_v23 }
 0x61a   :  { %v1658_v32 = vpop.f32.mrf.mxu1 }
 0x61b   :  { %v1669_v8 = vand.u32 2147483647, %v3551_v31  ;;  %v3555_v33 = vadd.f32 %v1658_v32, %v1575_v11  ;;  %v1663_v11 = vmax.f32 %v3551_v31, 0.0  ;;  %vm1665_vm13 = vcmp.ne.f32.partialorder %v3551_v31, %v3551_v31 }
 0x61c   :  { %v1660_v35 = vpop.f32.mrf.mxu1 }
 0x61d   :  { %v1671_v36 = vsub.f32 0.0, %v1669_v8  ;;  %v1670_v39 = vand.u32 2147483647, %v3555_v33  ;;  %v1927_v26 = vpop.f32.mrf.mxu0  ;;  %v1664_v8 = vmax.f32 %v3555_v33, 0.0  ;;  %vm1666_vm14 = vcmp.ne.f32.partialorder %v3555_v33, %v3555_v33 }
 0x61e   :  { %v3559_v41 = vadd.f32 %v1927_v26, %v1842_v37  ;;  %v1661_v17 = vpop.f32.mrf.mxu1 }
 0x61f   :  { %v1673_v45 = vmul.f32 1.442695, %v1671_v36  ;;  %v1672_v47 = vsub.f32 0.0, %v1670_v39  ;;  %v1929_v48 = vpop.f32.mrf.mxu0 }
 0x620   :  { %v1940_v50 = vand.u32 2147483647, %v3559_v41  ;;  %v3562_v29 = vadd.f32 %v1929_v48, %v1846_v34  ;;  %vm1936_vm1 = vcmp.ne.f32.partialorder %v3559_v41, %v3559_v41 }
 0x621   :  { %2763 = vpow2.f32 %v1673_v45  ;;  %v1675_v51 = vmul.f32 1.442695, %v1672_v47  ;;  %v1931_v43 = vpop.f32.mrf.mxu0 }
 0x622   :  { %v1942_v52 = vsub.f32 0.0, %v1940_v50  ;;  %v1941_v53 = vand.u32 2147483647, %v3562_v29  ;;  %vm1937_vm3 = vcmp.ne.f32.partialorder %v3562_v29, %v3562_v29 }
 0x623   :  { %2765 = vpow2.f32 %v1675_v51  ;;  %v1932_v56 = vpop.f32.mrf.mxu0 }
 0x624   :  { %v1944_v57 = vmul.f32 1.442695, %v1942_v52  ;;  %v1943_v58 = vsub.f32 0.0, %v1941_v53 }
 0x625   :  { %v2094_v38 = vpop.f32.mrf.mxu0 }
 0x626   :  { %2767 = vpow2.f32 %v1944_v57  ;;  %v1946_v61 = vmul.f32 1.442695, %v1943_v58  ;;  %v2098_v44 = vpack.c.bf16 %v2094_v38, %v2094_v38  ;;  %v1934_v57 = vmax.f32 %v3559_v41, 0.0 }
 0x627   :  { %v2586_v62 = vpop.f32.mrf.mxu0 }
 0x628   :  { %2769 = vpow2.f32 %v1946_v61  ;;  %2455 = vmatmul.mubr.msk.bf16.vlgmr.msra.gmra.mxu1 %vm1070_vm0, %v2098_v44  ;;  %v1935_v62 = vmax.f32 %v3562_v29, 0.0 }
 0x62e   :  { %v2764_v63 = vpop.eup %2763 }
 0x62f   :  { %v1677_v55 = vadd.f32 1.0, %v2764_v63  ;;  %v1680_v10 = vmul.f32 -0.5, %v2764_v63  ;;  %v1683_v0 = vand.u32 2147483647, %v2764_v63 }
 0x630   :  { %v2766_v2 = vpop.eup %2765 }
 0x631   :  { %2771 = vlog2.f32 %v1677_v55  ;;  %v1686_v5 = vadd.f32 1.0, %v2766_v2  ;;  %v1689_v1 = vmul.f32 -0.5, %v2766_v2  ;;  %v1681_v16 = vadd.f32 1.0, %v1680_v10  ;;  %v2445_v10 = vld [vmem:[%s3705_s18 + $0x8] sm:$0x3] }
 0x632   :  { %v1692_v6 = vand.u32 2147483647, %v2766_v2  ;;  %vm1684_vm11 = vcmp.lt.f32.partialorder %v1683_v0, 0.0004427343 }
 0x633   :  { %v2768_v9 = vpop.eup %2767  ;;  %2773 = vlog2.f32 %v1686_v5  ;;  %v1690_v28 = vadd.f32 1.0, %v1689_v1  ;;  %v1682_v40 = vmul.f32 %v2764_v63, %v1681_v16  ;;  %v2117_v1 = vrot.slane %v2445_v10, %v3436_v3 }
 0x634   :  { %v1948_v4 = vadd.f32 1.0, %v2768_v9  ;;  %v1951_v42 = vmul.f32 -0.5, %v2768_v9  ;;  %vm1693_vm12 = vcmp.lt.f32.partialorder %v1692_v6, 0.0004427343  ;;  %v1954_v39 = vand.u32 2147483647, %v2768_v9 }
 0x635   :  { %v2770_v59 = vpop.eup %2769  ;;  %v1691_v32 = vmul.f32 %v2766_v2, %v1690_v28 }
 0x636   :  { %2775 = vlog2.f32 %v1948_v4  ;;  %v1957_v13 = vadd.f32 1.0, %v2770_v59  ;;  %v1960_v7 = vmul.f32 -0.5, %v2770_v59  ;;  %v1952_v34 = vadd.f32 1.0, %v1951_v42 }
 0x637   :  { %v1963_v48 = vand.u32 2147483647, %v2770_v59  ;;  %vm1955_vm15 = vcmp.lt.f32.partialorder %v1954_v39, 0.0004427343 }
 0x638   :  { %2777 = vlog2.f32 %v1957_v13  ;;  %v1961_v17 = vadd.f32 1.0, %v1960_v7  ;;  %v1953_v52 = vmul.f32 %v2768_v9, %v1952_v34  ;;  %v2113_v13 = vrot.slane %v2445_v10, %v3431_v22 }
 0x639   :  { %vm1964_vm0 = vcmp.lt.f32.partialorder %v1963_v48, 0.0004427343  ;;  %v791_v22 = vmul.f32 %v3234_v27, %v3234_v27 }
 0x63a   :  { %v1962_v44 = vmul.f32 %v2770_v59, %v1961_v17 }
 0x63b   :  { %v830_v17 = vadd.f32 %v3522_v14, %v791_v22 }
 0x63e   :  { %v2772_v23 = vpop.eup %2771 }
 0x63f   :  { %v1679_v30 = vmul.f32 0.6931472, %v2772_v23 }
 0x640   :  { %v2774_v37 = vpop.eup %2773 }
 0x641   :  { %v1685_v35 = vsel %vm1684_vm11, %v1682_v40, %v1679_v30  ;;  %v1688_v36 = vmul.f32 0.6931472, %v2774_v37 }
 0x642   :  { %v1695_v26 = vadd.f32 %v1685_v35, %v1663_v11  ;;  %v792_v35 = vmul.f32 %v3239_v46, %v3239_v46 }
 0x643   :  { %v2776_v45 = vpop.eup %2775  ;;  %v1694_v47 = vsel %vm1693_vm12, %v1691_v32, %v1688_v36  ;;  %v793_v36 = vmul.f32 %v3242_v49, %v3242_v49  ;;  %v2348_v49 = vadd.f32 -1.0, %v830_v17 }
 0x644   :  { %v1697_v50 = vsel %vm1665_vm13, %v3551_v31, %v1695_v26  ;;  %v1696_v51 = vadd.f32 %v1694_v47, %v1664_v8  ;;  %v1950_v43 = vmul.f32 0.6931472, %v2776_v45 }
 0x645   :  { %v2778_v53 = vpop.eup %2777  ;;  %v1699_v56 = vadd.f32 1e-06, %v1697_v50 }
 0x646   :  { %v1698_v58 = vsel %vm1666_vm14, %v3555_v33, %v1696_v51  ;;  %v1956_v38 = vsel %vm1955_vm15, %v1953_v52, %v1950_v43  ;;  %v1959_v61 = vmul.f32 0.6931472, %v2778_v53 }
 0x647   :  { %1706 = vrot.lane.b32.xlu1 %v1699_v56, %s2865_s6  ;;  %v1700_v63 = vadd.f32 1e-06, %v1698_v58  ;;  %v1966_v55 = vadd.f32 %v1956_v38, %v1934_v57 }
 0x648   :  { %v1965_v2 = vsel %vm1964_vm0, %v1962_v44, %v1959_v61  ;;  %v831_v44 = vadd.f32 %v3520_v12, %v792_v35 }
 0x649   :  { %1708 = vrot.lane.b32.xlu0 %v1700_v63, %s2865_s6  ;;  %v1968_v5 = vsel %vm1936_vm1, %v3559_v41, %v1966_v55  ;;  %v1967_v9 = vadd.f32 %v1965_v2, %v1935_v62  ;;  %v832_v2 = vadd.f32 %v3526_v19, %v793_v36 }
 0x64a   :  { %v1970_v33 = vadd.f32 1e-06, %v1968_v5 }
 0x64b   :  { %v1969_v4 = vsel %vm1937_vm3, %v3562_v29, %v1967_v9  ;;  %v2350_v12 = vadd.f32 -1.0, %v832_v2 }
 0x64c   :  { %1977 = vrot.lane.b32.xlu1 %v1970_v33, %s2865_s6  ;;  %v3585_v59 = vadd.f32 1e-06, %v1969_v4 }
 0x64e   :  { %1979 = vrot.lane.b32.xlu0 %v3585_v59, %s2865_s6 }
 0x6e8   :  { %v2198_v16 = vpop.f32.mrf.mxu1 }
 0x6e9   :  { %v3594_v0 = vadd.f32 %v2198_v16, %v2113_v13  ;;  %v2349_v16 = vadd.f32 -1.0, %v831_v44 }
 0x6ea   :  { %v2200_v28 = vpop.f32.mrf.mxu1 }
 0x6eb   :  { %v2211_v29 = vand.u32 2147483647, %v3594_v0  ;;  %v2201_v6 = vadd.f32 %v2200_v28, %v2117_v1  ;;  %v2205_v53 = vmax.f32 %v3594_v0, 0.0  ;;  %vm2207_vm6 = vcmp.ne.f32.partialorder %v3594_v0, %v3594_v0 }
 0x6ec   :  { %v2202_v42 = vpop.f32.mrf.mxu1 }
 0x6ed   :  { %v2213_v40 = vsub.f32 0.0, %v2211_v29  ;;  %v2212_v23 = vand.u32 2147483647, %v2201_v6  ;;  %v2206_v58 = vmax.f32 %v2201_v6, 0.0  ;;  %vm2208_vm8 = vcmp.ne.f32.partialorder %v2201_v6, %v2201_v6 }
 0x6ee   :  { %v2203_v11 = vpop.f32.mrf.mxu1 }
 0x6ef   :  { %v2215_v7 = vmul.f32 1.442695, %v2213_v40  ;;  %v2214_v30 = vsub.f32 0.0, %v2212_v23 }
 0x6f1   :  { %2779 = vpow2.f32 %v2215_v7  ;;  %v2217_v32 = vmul.f32 1.442695, %v2214_v30 }
 0x6f3   :  { %2781 = vpow2.f32 %v2217_v32 }
 0x6fe   :  { %v2780_v37 = vpop.eup %2779 }
 0x6ff   :  { %v2219_v3 = vadd.f32 1.0, %v2780_v37  ;;  %v2222_v39 = vmul.f32 -0.5, %v2780_v37  ;;  %v2225_v45 = vand.u32 2147483647, %v2780_v37 }
 0x700   :  { %v2782_v8 = vpop.eup %2781 }
 0x701   :  { %2783 = vlog2.f32 %v2219_v3  ;;  %v2228_v34 = vadd.f32 1.0, %v2782_v8  ;;  %v2231_v26 = vmul.f32 -0.5, %v2782_v8  ;;  %v2223_v27 = vadd.f32 1.0, %v2222_v39 }
 0x702   :  { %2785 = vlog2.f32 %v791_v22  ;;  %v2234_v50 = vand.u32 2147483647, %v2782_v8  ;;  %vm2226_vm4 = vcmp.lt.f32.partialorder %v2225_v45, 0.0004427343 }
 0x703   :  { %2787 = vlog2.f32 %v2228_v34  ;;  %v2232_v47 = vadd.f32 1.0, %v2231_v26  ;;  %v2224_v43 = vmul.f32 %v2780_v37, %v2223_v27 }
 0x704   :  { %2789 = vlog2.f32 %v792_v35  ;;  %vm2235_vm5 = vcmp.lt.f32.partialorder %v2234_v50, 0.0004427343 }
 0x705   :  { %2791 = vlog2.f32 %v1699_v56 }
 0x706   :  { %2793 = vlog2.f32 %v793_v36 }
 0x707   :  { %2795 = vlog2.f32 %v3490_v54  ;;  %v2233_v54 = vmul.f32 %v2782_v8, %v2232_v47  ;;  %v1168_v8 = vsel %vm1167_vm2, %v3532_v24, %v3534_v25  ;;  %v1183_v47 = vpop.permute.xlu0 %1182 }
 0x708   :  { %2797 = vlog2.f32 %v1700_v63 }
 0x709   :  { %2799 = vlog2.f32 %v1970_v33 }
 0x70a   :  { %2801 = vlog2.f32 %v3585_v59 }
 0x70e   :  { %v2784_v48 = vpop.eup %2783 }
 0x70f   :  { %v2786_v51 = vpop.eup %2785  ;;  %v2221_v46 = vmul.f32 0.6931472, %v2784_v48  ;;  %v1181_v48 = vpop.permute.xlu1 %1180 }
 0x710   :  { %v2788_v52 = vpop.eup %2787  ;;  %v837_v14 = vmul.f32 0.6931472, %v2786_v51  ;;  %v1184_v50 = vsel %vm1167_vm2, %v1181_v48, %v1183_v47 }
 0x711   :  { %v2227_v56 = vsel %vm2226_vm4, %v2224_v43, %v2221_v46  ;;  %v2230_v57 = vmul.f32 0.6931472, %v2788_v52  ;;  %v2790_v55 = vpop.eup %2789  ;;  %v2363_v43 = vld [vmem:[%s3695_s8] ss:$0 sm:$0xff] }
 0x712   :  { %v2237_v38 = vadd.f32 %v2227_v56, %v2205_v53  ;;  %v842_v5 = vsub.f32 %v2348_v49, %v837_v14  ;;  %v2792_v33 = vpop.eup %2791  ;;  %v839_v42 = vmul.f32 0.6931472, %v2790_v55  ;;  %v2408_v14 = vld [vmem:[%s3694_s7 + $0x8] sm:$0xf] }
 0x713   :  { %v2236_v61 = vsel %vm2235_vm5, %v2233_v54, %v2230_v57  ;;  %v2794_v10 = vpop.eup %2793  ;;  %v1717_v29 = vmul.f32 0.6931472, %v2792_v33  ;;  %v1452_v53 = vpop.permute.xlu1 %1451  ;;  %v1703_v44 = vsub.f32 %v2408_v14, %v3551_v31  ;;  %v2432_v33 = vld [vmem:[%s3694_s7 + $0xc] sm:$0xf] }
 0x714   :  { %v2239_v62 = vsel %vm2207_vm6, %v3594_v0, %v2237_v38  ;;  %v2238_v63 = vadd.f32 %v2236_v61, %v2206_v58  ;;  %v2796_v1 = vpop.eup %2795  ;;  %v845_v28 = vmul.f32 0.5, %v842_v5  ;;  %v841_v19 = vmul.f32 0.6931472, %v2794_v10 }
 0x715   :  { %v2241_v9 = vadd.f32 1e-06, %v2239_v62  ;;  %v2798_v40 = vpop.eup %2797  ;;  %v843_v11 = vsub.f32 %v2349_v16, %v839_v42  ;;  %v1443_v5 = vmul.f32 -0.5, %v3541_v60  ;;  %v1974_v31 = vsub.f32 %v2432_v33, %v3559_v41 }
 0x716   :  { %v2240_v4 = vsel %vm2208_vm8, %v2201_v6, %v2238_v63  ;;  %v1448_v6 = vmul.f32 0.6931472, %v2796_v1  ;;  %v866_v59 = vmul.f32 %v3524_v15, %v845_v28  ;;  %v844_v23 = vsub.f32 %v2350_v12, %v841_v19  ;;  %v2800_v7 = vpop.eup %2799 }
 0x717   :  { %2248 = vrot.lane.b32.xlu1 %v2241_v9, %s2865_s6  ;;  %v2242_v13 = vadd.f32 1e-06, %v2240_v4  ;;  %v1719_v30 = vmul.f32 0.6931472, %v2798_v40  ;;  %v846_v37 = vmul.f32 0.5, %v843_v11  ;;  %v2802_v15 = vpop.eup %2801  ;;  %v1707_v56 = vpop.permute.xlu1 %1706  ;;  %v1444_v16 = vmul.f32 %v1443_v5, %v3541_v60 }
 0x718   :  { %v847_v32 = vmul.f32 0.5, %v844_v23  ;;  %v1988_v22 = vmul.f32 0.6931472, %v2800_v7  ;;  %v1990_v36 = vmul.f32 0.6931472, %v2802_v15 }
 0x719   :  { %2803 = vlog2.f32 %v2242_v13  ;;  %2250 = vrot.lane.b32.xlu0 %v2242_v13, %s2865_s6  ;;  %v867_v3 = vmul.f32 %v3530_v21, %v846_v37 }
 0x71a   :  { %2805 = vlog2.f32 %v2241_v9  ;;  %v868_v34 = vmul.f32 %v3528_v20, %v847_v32  ;;  %v1159_v20 = vld [vmem:[%s3694_s7] sm:$0xf] }
 0x71b   :  { %1722 = vrot.lane.b32.xlu1 %v1717_v29, %s2865_s6  ;;  %2807 = vrcp.f32 %v1168_v8  ;;  %v1160_v25 = vsub.f32 %v1159_v20, %v3443_v18  ;;  %v1709_v18 = vpop.permute.xlu0 %1708  ;;  %v1978_v58 = vpop.permute.xlu1 %1977 }
 0x71c   :  { %v1710_v57 = vsel %vm1167_vm2, %v1707_v56, %v1709_v18 }
 0x71d   :  { %1453 = vrot.lane.b32.xlu0 %v1448_v6, %s2865_s6  ;;  %2809 = vrcp.f32 %v1710_v57 }
 0x71f   :  { %872 = vrot.lane.b32.xlu1 %v866_v59, %s2864_s14  ;;  %v1980_v54 = vpop.permute.xlu0 %1979  ;;  %v2456_v59 = vld [vmem:[%s3694_s7 + $0x10] sm:$0xf] }
 0x720   :  { %v1981_v38 = vsel %vm1167_vm2, %v1978_v58, %v1980_v54 }
 0x721   :  { %1724 = vrot.lane.b32.xlu0 %v1719_v30, %s2865_s6  ;;  %2811 = vrcp.f32 %v1981_v38 }
 0x723   :  { %1993 = vrot.lane.b32.xlu1 %v1988_v22, %s2865_s6  ;;  %v2245_v22 = vsub.f32 %v2456_v59, %v3594_v0  ;;  %v2411_v0 = vld [vmem:[%s3695_s8 + $0x2] ss:$0 sm:$0xff] }
 0x725   :  { %874 = vrot.lane.b32.xlu0 %v867_v3, %s2864_s14  ;;  %v2387_v3 = vld [vmem:[%s3695_s8 + $0x1] ss:$0 sm:$0xff] }
 0x726   :  { %v2804_v35 = vpop.eup %2803 }
 0x727   :  { %876 = vrot.lane.b32.xlu1 %v868_v34, %s2864_s14  ;;  %v2806_v39 = vpop.eup %2805  ;;  %v2261_v21 = vmul.f32 0.6931472, %v2804_v35 }
 0x728   :  { %v2259_v26 = vmul.f32 0.6931472, %v2806_v39  ;;  %v2808_v24 = vpop.eup %2807 }
 0x729   :  { %1995 = vrot.lane.b32.xlu0 %v1990_v36, %s2865_s6  ;;  %v1171_v27 = vmul.f32 %v2808_v24, %v1160_v25 }
 0x72a   :  { %v2810_v62 = vpop.eup %2809 }
 0x72b   :  { %2266 = vrot.lane.b32.xlu1 %v2261_v21, %s2865_s6  ;;  %v1172_v17 = vmul.f32 -0.5, %v1171_v27  ;;  %v1713_v9 = vmul.f32 %v2810_v62, %v1703_v44 }
 0x72d   :  { %2264 = vrot.lane.b32.xlu0 %v2259_v26, %s2865_s6  ;;  %v1173_v45 = vmul.f32 %v1172_v17, %v1171_v27  ;;  %v1714_v12 = vmul.f32 -0.5, %v1713_v9  ;;  %v2435_v27 = vld [vmem:[%s3695_s8 + $0x3] ss:$0 sm:$0xff] }
 0x72e   :  { %v2812_v10 = vpop.eup %2811 }
 0x72f   :  { %v1186_v51 = vsub.f32 %v1173_v45, %v1184_v50  ;;  %v1984_v29 = vmul.f32 %v2812_v10, %v1974_v31  ;;  %v1715_v40 = vmul.f32 %v1714_v12, %v1713_v9 }
 0x731   :  { %v2362_v46 = vadd.f32 -0.9189385, %v1186_v51  ;;  %v1985_v11 = vmul.f32 -0.5, %v1984_v29 }
 0x733   :  { %v1195_v52 = vmul.f32 %v2363_v43, %v2362_v46  ;;  %v1986_v34 = vmul.f32 %v1985_v11, %v1984_v29 }
 0x735   :  { %v1197_v49 = vsel %vm1196_vm9, %v1195_v52, 0.0 }
 0x74f   :  { %1198 = vadd.xlane.f32.xlu1 %v1197_v49  ;;  %v2459_v49 = vld [vmem:[%s3695_s8 + $0x4] ss:$0 sm:$0xff]  ;;  %s2866_s8 = smov [#allocation3]  }
 0x750   :  { %s2302_s23 = sshll.u32 %s2866_s8, 4  ;;  %s2303_s23 = int_to_ptr.vmem [resolvable:$true] %s2302_s23 }
 0x751   :  { %s2815_s26 = scalar_lea.vmem %s2303_s23, 16  ;;  %s2819_s13 = scalar_lea.vmem %s2303_s23, 32 }
 0x752   :  { %p2816_p0 = scmp.ne.s32.totalorder %s2303_s23, %s2815_s26  ;;  %p2820_p1 = scmp.lt.s32.totalorder %s2303_s23, %s2303_s23 }
 0x753   :  { %p2821_p2 = scmp.lt.s32.totalorder %s2819_s13, %s2815_s26 }
 0x755   :  { %p2822_p3 = por %p2821_p2, %p2820_p1 }
 0x757   :  { %p2823_p4 = pnand %p2822_p3, %p2816_p0 }
 0x789   :  { %v2249_v61 = vpop.permute.xlu1 %2248 }
 0x78b   :  { %v2251_v63 = vpop.permute.xlu0 %2250 }
 0x78c   :  { %v2252_v55 = vsel %vm1167_vm2, %v2249_v61, %v2251_v63 }
 0x78d   :  { %2813 = vrcp.f32 %v2252_v55  ;;  %v1723_v2 = vpop.permute.xlu1 %1722 }
 0x78f   :  { %v1454_v4 = vpop.permute.xlu0 %1453 }
 0x790   :  { %v1455_v13 = vsel %vm1167_vm2, %v1452_v53, %v1454_v4 }
 0x791   :  { %v873_v1 = vpop.permute.xlu1 %872  ;;  %v1457_v19 = vsub.f32 %v1444_v16, %v1455_v13 }
 0x792   :  { %v881_v30 = vsel %vm685_vm7, %v873_v1, 0.0 }
 0x793   :  { %v1725_v28 = vpop.permute.xlu0 %1724  ;;  %v2385_v7 = vadd.f32 -0.9189385, %v1457_v19 }
 0x794   :  { %v1726_v42 = vsel %vm1167_vm2, %v1723_v2, %v1725_v28 }
 0x795   :  { %v1994_v6 = vpop.permute.xlu1 %1993  ;;  %v1728_v41 = vsub.f32 %v1715_v40, %v1726_v42  ;;  %v1467_v20 = vmul.f32 %v2387_v3, %v2385_v7 }
 0x797   :  { %v875_v23 = vpop.permute.xlu0 %874  ;;  %v2409_v21 = vadd.f32 -0.9189385, %v1728_v41  ;;  %v1468_v51 = vsel %vm1196_vm9, %v1467_v20, 0.0 }
 0x798   :  { %v882_v60 = vsel %vm685_vm7, %v875_v23, 0.0 }
 0x799   :  { %v883_v32 = vadd.f32 %v882_v60, %v881_v30  ;;  %v877_v37 = vpop.permute.xlu1 %876  ;;  %v1738_v46 = vmul.f32 %v2411_v0, %v2409_v21 }
 0x79a   :  { %v2814_v8 = vpop.eup %2813  ;;  %v884_v15 = vsel %vm685_vm7, %v877_v37, 0.0  ;;  %vm897_vm7 = vcmask 0  }
 0x79b   :  { %v1996_v35 = vpop.permute.xlu0 %1995  ;;  %v885_v36 = vadd.f32 %v884_v15, %v883_v32  ;;  %v2255_v39 = vmul.f32 %v2814_v8, %v2245_v22  ;;  %v1739_v56 = vsel %vm1196_vm9, %v1738_v46, 0.0 }
 0x79c   :  { %v1997_v26 = vsel %vm1167_vm2, %v1994_v6, %v1996_v35 }
 0x79d   :  { %v1999_v24 = vsub.f32 %v1986_v34, %v1997_v26  ;;  %886 = vadd.xlane.f32.xlu0 %v885_v36  ;;  %v2256_v25 = vmul.f32 -0.5, %v2255_v39  ;;  %v2267_v45 = vpop.permute.xlu1 %2266 }
 0x79f   :  { %v2433_v17 = vadd.f32 -0.9189385, %v1999_v24  ;;  %v2257_v47 = vmul.f32 %v2256_v25, %v2255_v39  ;;  %v2265_v48 = vpop.permute.xlu0 %2264 }
 0x7a0   :  { %v2268_v50 = vsel %vm1167_vm2, %v2265_v48, %v2267_v45 }
 0x7a1   :  { %v2270_v43 = vsub.f32 %v2257_v47, %v2268_v50  ;;  %1469 = vadd.xlane.f32.xlu0 %v1468_v51  ;;  %v2009_v52 = vmul.f32 %v2435_v27, %v2433_v17 }
 0x7a3   :  { %v2457_v53 = vadd.f32 -0.9189385, %v2270_v43  ;;  %v2010_v18 = vsel %vm1196_vm9, %v2009_v52, 0.0 }
 0x7a4   :  { %2011 = vadd.xlane.f32.xlu1 %v2010_v18 }
 0x7a5   :  { %1740 = vadd.xlane.f32.xlu0 %v1739_v56  ;;  %v2280_v57 = vmul.f32 %v2459_v49, %v2457_v53 }
 0x7a7   :  { %v2281_v54 = vsel %vm1196_vm9, %v2280_v57, 0.0 }
 0x7a9   :  { %2282 = vadd.xlane.f32.xlu0 %v2281_v54 }
 0x7d8   :  { %v1199_v58 = vpop.xlane.xlu1 %1198 }
 0x7d9   :  { %v1200_v38 = vrot.slane %v1199_v58, 4 }
 0x7db   :  { %v1201_v14 = vadd.f32 %v1200_v38, %v1199_v58 }
 0x7dd   :  { %v1202_v61 = vrot.slane %v1201_v14, 2 }
 0x7df   :  { %v1203_v2 = vadd.f32 %v1202_v61, %v1201_v14 }
 0x7e1   :  { %v1204_v31 = vrot.slane %v1203_v2, 1 }
 0x7e3   :  { %v1205_v23 = vadd.f32 %v1204_v31, %v1203_v2 }
 0x826   :  { %v887_v44 = vpop.xlane.xlu0 %886 }
 0x827   :  { %v888_v62 = vrot.slane %v887_v44, 4 }
 0x829   :  { %v889_v63 = vadd.f32 %v888_v62, %v887_v44 }
 0x82a   :  { %v1470_v55 = vpop.xlane.xlu0 %1469 }
 0x82b   :  { %v890_v5 = vrot.slane %v889_v63, 2  ;;  %v1471_v9 = vrot.slane %v1470_v55, 4 }
 0x82d   :  { %v1472_v33 = vadd.f32 %v1471_v9, %v1470_v55  ;;  %v2012_v4 = vpop.xlane.xlu1 %2011  ;;  %v891_v10 = vadd.f32 %v890_v5, %v889_v63 }
 0x82e   :  { %v2013_v13 = vrot.slane %v2012_v4, 4  ;;  %v1741_v1 = vpop.xlane.xlu0 %1740 }
 0x82f   :  { %v1473_v16 = vrot.slane %v1472_v33, 2  ;;  %v1742_v12 = vrot.slane %v1741_v1, 4  ;;  %v892_v28 = vrot.slane %v891_v10, 1 }
 0x830   :  { %v2014_v29 = vadd.f32 %v2013_v13, %v2012_v4 }
 0x831   :  { %v1743_v19 = vadd.f32 %v1742_v12, %v1741_v1  ;;  %v893_v42 = vadd.f32 %v892_v28, %v891_v10  ;;  %v1474_v6 = vadd.f32 %v1473_v16, %v1472_v33 }
 0x832   :  { %v2015_v40 = vrot.slane %v2014_v29, 2  ;;  %v2283_v59 = vpop.xlane.xlu0 %2282 }
 0x833   :  { %v1744_v11 = vrot.slane %v1743_v19, 2  ;;  %v2284_v7 = vrot.slane %v2283_v59, 4  ;;  %2587 = vpush %v893_v42  ;;  %v1475_v30 = vrot.slane %v1474_v6, 1 }
 0x834   :  { %v2016_v41 = vadd.f32 %v2015_v40, %v2014_v29  ;;  %2589 = vpush %v1205_v23 }
 0x835   :  { %v2285_v60 = vadd.f32 %v2284_v7, %v2283_v59  ;;  %v1476_v32 = vadd.f32 %v1475_v30, %v1474_v6  ;;  %v1745_v37 = vadd.f32 %v1744_v11, %v1743_v19 }
 0x836   :  { %v2017_v22 = vrot.slane %v2016_v41, 1 }
 0x837   :  { %v2286_v3 = vrot.slane %v2285_v60, 2  ;;  %2591 = vpush %v1476_v32  ;;  %v1746_v8 = vrot.slane %v1745_v37, 1 }
 0x838   :  { %v2018_v15 = vadd.f32 %v2017_v22, %v2016_v41 }
 0x839   :  { %v2287_v34 = vadd.f32 %v2286_v3, %v2285_v60  ;;  %v1747_v35 = vadd.f32 %v1746_v8, %v1745_v37 }
 0x83b   :  { %2593 = vpush %v1747_v35  ;;  %v2288_v36 = vrot.slane %v2287_v34, 1 }
 0x83c   :  { %2595 = vpush %v2018_v15 }
 0x83d   :  { %v2289_v39 = vadd.f32 %v2288_v36, %v2287_v34 }
 0x83f   :  { %2597 = vpush %v2289_v39 }
 0x864   :  { %s2588_s24 = spop %2587 }
 0x865   :  { %v895_v21 = vstv %s2588_s24  ;;  %s2590_s17 = spop %2589 }
 0x866   :  { %v896_v26 = vmul.f32 0.05, %v895_v21  ;;  %v1207_v20 = vstv %s2590_s17 }
 0x868   :  { %s2592_s25 = spop %2591  ;;  %898 = vst.msk [vmem:[#allocation3] sm:$0x1] %vm897_vm7, %v896_v26 }
 0x869   :  { %v1478_v24 = vstv %s2592_s25 }
 0x86a   :  { %2826 = shalt.err (!%p2823_p4)
}
 0x86b   :  { %2305 = dma.vmem_to_hbm [thread:$0]  %s2303_s23, 16, %s3706_s19, [#allocation4]   ;;  %v1479_v25 = vmul.f32 0.071428575, %v1478_v24  ;;  %v1208_v0 = vmul.f32 0.083333336, %v1207_v20 }
 0x86c   :  { %s2594_s10 = spop %2593  ;;  %s2867_s12 = smov [#allocation5]  }
 0x86d   :  { %v1749_v27 = vstv %s2594_s10  ;;  %s2596_s28 = spop %2595  ;;  %v1480_v17 = vadd.f32 %v1479_v25, %v1208_v0  ;;  %s2312_s14 = sshll.u32 %s2867_s12, 4  ;;  %s2313_s14 = int_to_ptr.vmem [resolvable:$true] %s2312_s14 }
 0x86e   :  { %v1750_v45 = vmul.f32 0.09090909, %v1749_v27  ;;  %v2020_v47 = vstv %s2596_s28  ;;  %s2835_s19 = scalar_lea.vmem %s2313_s14, 16  ;;  %s2839_s16 = scalar_lea.vmem %s2313_s14, 32 }
 0x86f   :  { %v2021_v50 = vmul.f32 0.083333336, %v2020_v47  ;;  %p2836_p5 = scmp.ne.s32.totalorder %s2313_s14, %s2835_s19  ;;  %p2840_p6 = scmp.lt.s32.totalorder %s2313_s14, %s2313_s14 }
 0x870   :  { %v1751_v48 = vadd.f32 %v1750_v45, %v1480_v17  ;;  %s2598_s18 = spop %2597  ;;  %p2841_p7 = scmp.lt.s32.totalorder %s2839_s16, %s2835_s19 }
 0x871   :  { %v2291_v51 = vstv %s2598_s18 }
 0x872   :  { %v2022_v46 = vadd.f32 %v2021_v50, %v1751_v48  ;;  %v2292_v43 = vmul.f32 0.083333336, %v2291_v51  ;;  %p2842_p8 = por %p2841_p7, %p2840_p6 }
 0x874   :  { %v2293_v52 = vadd.f32 %v2292_v43, %v2022_v46  ;;  %p2843_p9 = pnand %p2842_p8, %p2836_p5 }
 0x876   :  { %v2294_v49 = vmul.f32 0.05, %v2293_v52 }
 0x878   :  { %2295 = vst.msk [vmem:[#allocation5] sm:$0x1] %vm897_vm7, %v2294_v49 }
 0x879   :  { %2846 = shalt.err (!%p2843_p9)
}
 0x87a   :  { %2315 = dma.vmem_to_hbm [thread:$0]  %s2313_s14, 16, %s3707_s20, [#allocation6]  }
 0x87b   :  { %2855 = dma.done.wait [#allocation4], 16  }
 0x87c   :  { %2856 = vsyncadd [#allocation4], 4294967280 }
 0x87d   :  { %2857 = dma.done.wait [#allocation6], 16  }
 0x87e   :  { %2858 = vsyncadd [#allocation6], 4294967280 }
 0x87f   :  { %2322 = vsyncpa [#allocation4], 1 }
 0x880   :  { %2323 = vsyncpa [#allocation6], 1 }

</bundles_post_ra>
